<compile_context>
chip_gen: v7x
topology: tpu7x:2x2x1
jax: 0.10.0
libtpu: 0.0.40
codegen_flags: <defaults>
</compile_context>

<pallas_src>
import jax
import jax.numpy as jnp
from jax import lax
from jax.experimental import pallas as pl
from jax.experimental.pallas import tpu as pltpu

_EPS = 1e-5  # PyTorch BatchNorm2d default eps


# --------------------------------------------------------------------------
# Heuristics.
# --------------------------------------------------------------------------
def _pick_nb(n, h, w, cin, depth):
    """Batch elements per grid step: raise the matmul M for the MXU while
    keeping >= 2 grid steps (pipelining / megacore) and bounding the slab."""
    slab_cap = 6 * 1024 * 1024                 # soft cap on per-step slab bytes
    nb = 1
    for cand in range(2, n + 1):
        if n % cand or (n // cand) < 2:
            continue
        if cand * h * w * 9 * max(cin, depth) * 4 > slab_cap:
            break
        nb = cand
        if cand * h * w >= 1024:               # MXU M target reached
            break
    return nb


def _vmem_limit_bytes():
    """Per-generation VMEM budget (review): ~80% of physical capacity
    (~102 MiB on v5e/v6e, ~51 MiB on v7x).  Safe fallback if the query fails."""
    try:
        cap = int(pltpu.get_tpu_info().vmem_capacity_bytes)
    except Exception:
        cap = 64 * 1024 * 1024
    return int(min(max(cap * 4 // 5, 32 * 1024 * 1024), 112 * 1024 * 1024))


# --------------------------------------------------------------------------
# Fully-fused bottleneck_IR_SE kernel (nb batch elements per grid step).
# --------------------------------------------------------------------------
def _make_bottleneck_kernel(stride, has_conv_sc):
    def kernel(*refs):
        if has_conv_sc:
            (x_ref, bn1s_ref, bn1b_ref, w1_ref, alpha_ref, w2_ref,
             bn2s_ref, bn2b_ref, sew1_ref, sew2_ref,
             wsc_ref, bnscs_ref, bnscb_ref,
             out_ref, xpad_ref, y1pad_ref, oscr_ref) = refs
        else:
            (x_ref, bn1s_ref, bn1b_ref, w1_ref, alpha_ref, w2_ref,
             bn2s_ref, bn2b_ref, sew1_ref, sew2_ref,
             out_ref, xpad_ref, y1pad_ref, oscr_ref) = refs

        nb, H, W, Cin = x_ref.shape
        D = y1pad_ref.shape[3]
        Ho = (H - 1) // stride + 1
        Wo = (W - 1) // stride + 1

        def window(ref, dy, dx, rows, cols):
            # (nb, rows, cols, C) window of `ref` starting at (dy, dx), strided.
            if stride == 1:
                return ref[:, dy:dy + rows, dx:dx + cols, :]
            return ref[:, pl.ds(dy, rows, stride=stride),
                       pl.ds(dx, cols, stride=stride), :]

        def zero_halo(ref, rows, cols, ch):
            # Only the 1-px halo is zeroed (interior is fully overwritten).
            # Done every step on purpose: with "parallel" megacore sharding a
            # pl.when(program_id==0) hoist would leave the second core's
            # scratch halos uninitialised on its first iteration.
            zr = jnp.zeros((nb, 1, cols + 2, ch), ref.dtype)
            zc = jnp.zeros((nb, rows, 1, ch), ref.dtype)
            ref[:, 0:1, :, :] = zr
            ref[:, rows + 1:rows + 2, :, :] = zr
            ref[:, 1:rows + 1, 0:1, :] = zc
            ref[:, 1:rows + 1, cols + 1:cols + 2, :] = zc

        # ----------------- res branch: BN1 (inference, folded) -----------------
        x = x_ref[...]                                            # (nb, H, W, Cin)
        xbn = (x.astype(jnp.float32) * bn1s_ref[...].reshape(1, 1, 1, Cin)
               + bn1b_ref[...].reshape(1, 1, 1, Cin))

        xpad_ref[:, 1:H + 1, 1:W + 1, :] = xbn                    # pad = 1 copy
        zero_halo(xpad_ref, H, W, Cin)

        # conv1: 3x3 / stride 1 / pad 1 as ONE im2col matmul (K = 9*Cin), bf16.
        slab1 = jnp.concatenate(
            [xpad_ref[:, dy:dy + H, dx:dx + W, :]
             for dy in range(3) for dx in range(3)],
            axis=-1).reshape(nb * H * W, 9 * Cin)
        acc1 = jnp.dot(slab1.astype(jnp.bfloat16), w1_ref[...],
                       preferred_element_type=jnp.float32)        # (nb*H*W, D)

        # PReLU (per-output-channel alpha), f32.
        y1 = jnp.where(acc1 > 0, acc1, alpha_ref[...] * acc1)

        y1pad_ref[:, 1:H + 1, 1:W + 1, :] = y1.reshape(nb, H, W, D)
        zero_halo(y1pad_ref, H, W, D)

        # conv2: 3x3 / pad 1 evaluated DIRECTLY at the output stride
        # (strided window reads), again one im2col matmul (K = 9*D).
        slab2 = jnp.concatenate(
            [window(y1pad_ref, dy, dx, Ho, Wo)
             for dy in range(3) for dx in range(3)],
            axis=-1).reshape(nb * Ho * Wo, 9 * D)
        acc2 = jnp.dot(slab2.astype(jnp.bfloat16), w2_ref[...],
                       preferred_element_type=jnp.float32)        # (nb*Ho*Wo, D)

        # BN2 (inference, folded).
        res = acc2 * bn2s_ref[...] + bn2b_ref[...]                # f32

        # Park the residual in VMEM scratch so the per-image SE / shortcut
        # stage and the lane-dense fold below use plain ref indexing only.
        if nb > 1:
            oscr_ref[...] = res

        inv_hw = 1.0 / float(Ho * Wo)
        for b in range(nb):                                       # static, small
            rows = slice(b * Ho * Wo, (b + 1) * Ho * Wo)
            rb = res if nb == 1 else oscr_ref[rows, :]            # (Ho*Wo, D) f32

            # SEModule: global avg pool -> fc1 -> ReLU -> fc2 -> sigmoid -> scale.
            pooled = jnp.sum(rb, axis=0, keepdims=True) * inv_hw
            z = jnp.maximum(
                jnp.dot(pooled.astype(jnp.bfloat16), sew1_ref[...],
                        preferred_element_type=jnp.float32), 0.0)
            gate = jax.nn.sigmoid(
                jnp.dot(z.astype(jnp.bfloat16), sew2_ref[...],
                        preferred_element_type=jnp.float32))       # (1, D)

            # ----------------- shortcut branch -----------------
            if stride == 1:
                sc_in = x_ref[b:b + 1, :, :, :]                    # identity view
            else:                                                  # MaxPool2d(1, s)
                sc_in = x_ref[b:b + 1,
                              pl.ds(0, Ho, stride=stride),
                              pl.ds(0, Wo, stride=stride), :]
            sc_in = sc_in.reshape(Ho * Wo, Cin)
            if has_conv_sc:
                sc = jnp.dot(sc_in.astype(jnp.bfloat16), wsc_ref[...],
                             preferred_element_type=jnp.float32)
                sc = sc * bnscs_ref[...] + bnscb_ref[...]
            else:
                sc = sc_in.astype(jnp.float32)

            oscr_ref[rows, :] = rb * gate + sc                     # final values

        # Lane-dense output store (review item #1): gather the Wo output
        # column groups back with strided ref reads and concatenate them onto
        # the lane axis -> a (nb*Ho, Wo*D) block with unmasked full-lane
        # stores and a dense HBM write-back (bytes identical to NHWC).
        out_ref[...] = jnp.concatenate(
            [oscr_ref[pl.ds(w_, nb * Ho, stride=Wo), :] for w_ in range(Wo)],
            axis=-1)

    return kernel


# --------------------------------------------------------------------------
# Wrapper: parameter re-layout + single fused pallas_call.
# --------------------------------------------------------------------------
def bottleneck_ir_se_forward(x_nchw, p, in_channel, depth, stride):
    N, _, H, W = x_nchw.shape
    Ho = (H - 1) // stride + 1
    Wo = (W - 1) // stride + 1
    nb = _pick_nb(N, H, W, in_channel, depth)

    # bf16 input halves HBM reads (memory-bound on v5e/v6e); kept f32 for
    # stride > 1 so the strided shortcut subsample stays a 32-bit ref read.
    x_dtype = jnp.bfloat16 if stride == 1 else jnp.float32
    x = jnp.transpose(x_nchw, (0, 2, 3, 1)).astype(x_dtype)       # NHWC

    def bn_fold(g, b, m, v):
        s = g / jnp.sqrt(v + _EPS)
        return (s.reshape(1, -1).astype(jnp.float32),
                (b - m * s).reshape(1, -1).astype(jnp.float32))

    bn1_s, bn1_b = bn_fold(p['bn1_g'], p['bn1_b'], p['bn1_m'], p['bn1_v'])
    bn2_s, bn2_b = bn_fold(p['bn2_g'], p['bn2_b'], p['bn2_m'], p['bn2_v'])

    # torch conv weight (Cout, Cin, kh, kw) -> im2col layout (kh*kw*Cin, Cout), bf16.
    w1_k = jnp.transpose(p['w1'], (2, 3, 1, 0)).reshape(9 * in_channel, depth)
    w1_k = w1_k.astype(jnp.bfloat16)
    w2_k = jnp.transpose(p['w2'], (2, 3, 1, 0)).reshape(9 * depth, depth)
    w2_k = w2_k.astype(jnp.bfloat16)
    alpha = p['alpha'].reshape(1, depth).astype(jnp.float32)
    se_w1 = jnp.transpose(p['se_w1'][:, :, 0, 0]).astype(jnp.bfloat16)  # (D, D//16)
    se_w2 = jnp.transpose(p['se_w2'][:, :, 0, 0]).astype(jnp.bfloat16)  # (D//16, D)

    const2d = lambda n: (0, 0)      # noqa: E731  (replicated parameter blocks)

    # Constant-index parameter blocks could be single-buffered
    # (pipeline_mode=pl.Buffered(1)) to save VMEM; left at the default here.
    in_specs = [
        pl.BlockSpec((nb, H, W, in_channel), lambda n: (n, 0, 0, 0)),  # x
        pl.BlockSpec((1, in_channel), const2d),                        # bn1 scale
        pl.BlockSpec((1, in_channel), const2d),                        # bn1 shift
        pl.BlockSpec((9 * in_channel, depth), const2d),                # w1 (im2col)
        pl.BlockSpec((1, depth), const2d),                             # prelu alpha
        pl.BlockSpec((9 * depth, depth), const2d),                     # w2 (im2col)
        pl.BlockSpec((1, depth), const2d),                             # bn2 scale
        pl.BlockSpec((1, depth), const2d),                             # bn2 shift
        pl.BlockSpec((depth, depth // 16), const2d),                   # SE fc1
        pl.BlockSpec((depth // 16, depth), const2d),                   # SE fc2
    ]
    inputs = [x, bn1_s, bn1_b, w1_k, alpha, w2_k, bn2_s, bn2_b, se_w1, se_w2]

    has_conv_sc = (in_channel != depth)
    if has_conv_sc:
        wsc_k = jnp.transpose(p['wsc'][:, :, 0, 0]).astype(jnp.bfloat16)  # (Cin, D)
        bnsc_s, bnsc_b = bn_fold(p['bnsc_g'], p['bnsc_b'], p['bnsc_m'], p['bnsc_v'])
        in_specs += [pl.BlockSpec((in_channel, depth), const2d),
                     pl.BlockSpec((1, depth), const2d),
                     pl.BlockSpec((1, depth), const2d)]
        inputs += [wsc_k, bnsc_s, bnsc_b]

    # Output is a lane-dense (N*Ho, Wo*depth) slab (contiguous NHWC bytes).
    out2d = pl.pallas_call(
        _make_bottleneck_kernel(stride, has_conv_sc),
        out_shape=jax.ShapeDtypeStruct((N * Ho, Wo * depth), jnp.float32),
        grid=(N // nb,),
        in_specs=in_specs,
        out_specs=pl.BlockSpec((nb * Ho, Wo * depth), lambda n: (n, 0)),
        scratch_shapes=[pltpu.VMEM((nb, H + 2, W + 2, in_channel), jnp.float32),
                        pltpu.VMEM((nb, H + 2, W + 2, depth), jnp.float32),
                        pltpu.VMEM((nb * Ho * Wo, depth), jnp.float32)],
        compiler_params=pltpu.CompilerParams(
            dimension_semantics=("parallel",),        # batch groups across TCs
            vmem_limit_bytes=_vmem_limit_bytes()),    # per-generation budget
    )(*inputs)

    out_nhwc = out2d.reshape(N, Ho, Wo, depth)
    return jnp.transpose(out_nhwc, (0, 3, 1, 2))                  # back to NCHW


# --------------------------------------------------------------------------
# Deterministic synthetic parameters (PyTorch tensor shapes).
# --------------------------------------------------------------------------
def init_params(key, in_channel, depth, reduction=16):
    ks = jax.random.split(key, 20)

    def nrm(i, shape, scale):
        return scale * jax.random.normal(ks[i], shape, jnp.float32)

    p = {
        'bn1_g': 1.0 + 0.1 * jax.random.normal(ks[0], (in_channel,), jnp.float32),
        'bn1_b': 0.1 * jax.random.normal(ks[1], (in_channel,), jnp.float32),
        'bn1_m': 0.1 * jax.random.normal(ks[2], (in_channel,), jnp.float32),
        'bn1_v': 0.5 + 0.5 * jax.random.uniform(ks[3], (in_channel,), jnp.float32),
        'w1': nrm(4, (depth, in_channel, 3, 3), 0.08),
        'alpha': 0.25 * jnp.ones((depth,), jnp.float32),
        'w2': nrm(5, (depth, depth, 3, 3), 0.06),
        'bn2_g': 1.0 + 0.1 * jax.random.normal(ks[6], (depth,), jnp.float32),
        'bn2_b': 0.1 * jax.random.normal(ks[7], (depth,), jnp.float32),
        'bn2_m': 0.1 * jax.random.normal(ks[8], (depth,), jnp.float32),
        'bn2_v': 0.5 + 0.5 * jax.random.uniform(ks[9], (depth,), jnp.float32),
        'se_w1': nrm(10, (depth // reduction, depth, 1, 1), 0.2),
        'se_w2': nrm(11, (depth, depth // reduction, 1, 1), 0.2),
    }
    if in_channel != depth:
        p['wsc'] = nrm(12, (depth, in_channel, 1, 1), 0.2)
        p['bnsc_g'] = 1.0 + 0.1 * jax.random.normal(ks[13], (depth,), jnp.float32)
        p['bnsc_b'] = 0.1 * jax.random.normal(ks[14], (depth,), jnp.float32)
        p['bnsc_m'] = 0.1 * jax.random.normal(ks[15], (depth,), jnp.float32)
        p['bnsc_v'] = 0.5 + 0.5 * jax.random.uniform(ks[16], (depth,), jnp.float32)
    return p


# --------------------------------------------------------------------------
# Pure-JAX reference (mirrors the PyTorch forward, eval-mode BN).
# --------------------------------------------------------------------------
def reference_forward(x_nchw, p, in_channel, depth, stride):
    def bn(x, g, b, m, v):
        g = g.reshape(1, -1, 1, 1); b = b.reshape(1, -1, 1, 1)
        m = m.reshape(1, -1, 1, 1); v = v.reshape(1, -1, 1, 1)
        return (x - m) / jnp.sqrt(v + _EPS) * g + b

    def conv(x, w, s, pad):
        return lax.conv_general_dilated(
            x, w, (s, s), [(pad, pad), (pad, pad)],
            dimension_numbers=('NCHW', 'OIHW', 'NCHW'),
            precision=lax.Precision.HIGHEST)

    if in_channel == depth:
        sc = x_nchw[:, :, ::stride, ::stride]       # MaxPool2d(1, stride)
    else:
        sc = conv(x_nchw, p['wsc'], stride, 0)
        sc = bn(sc, p['bnsc_g'], p['bnsc_b'], p['bnsc_m'], p['bnsc_v'])

    r = bn(x_nchw, p['bn1_g'], p['bn1_b'], p['bn1_m'], p['bn1_v'])
    r = conv(r, p['w1'], 1, 1)
    a = p['alpha'].reshape(1, -1, 1, 1)
    r = jnp.where(r > 0, r, a * r)                  # PReLU
    r = conv(r, p['w2'], stride, 1)
    r = bn(r, p['bn2_g'], p['bn2_b'], p['bn2_m'], p['bn2_v'])

    pooled = jnp.mean(r, axis=(2, 3), keepdims=True)
    z = jnp.maximum(conv(pooled, p['se_w1'], 1, 0), 0.0)
    gate = jax.nn.sigmoid(conv(z, p['se_w2'], 1, 0))
    r = r * gate
    return r + sc


if __name__ == "__main__":
    key = jax.random.PRNGKey(0)
    cases = [
        dict(N=2, in_channel=16, depth=32, H=16, W=16, stride=2),  # conv shortcut
        dict(N=2, in_channel=32, depth=32, H=16, W=16, stride=1),  # identity
        dict(N=4, in_channel=32, depth=32, H=16, W=16, stride=1),  # nb=2, identity
        dict(N=4, in_channel=16, depth=32, H=16, W=16, stride=2),  # nb=2, conv sc
    ]
    all_ok = True
    for cfg in cases:
        key, kp, kx = jax.random.split(key, 3)
        p = init_params(kp, cfg['in_channel'], cfg['depth'])
        x = jax.random.normal(
            kx, (cfg['N'], cfg['in_channel'], cfg['H'], cfg['W']), jnp.float32)

        out = bottleneck_ir_se_forward(x, p, cfg['in_channel'], cfg['depth'],
                                       cfg['stride'])
        out = jax.block_until_ready(out)

        ref = reference_forward(x, p, cfg['in_channel'], cfg['depth'], cfg['stride'])
        err = float(jnp.max(jnp.abs(out - ref)))
        if out.shape != ref.shape or not (err < 5e-2):
            all_ok = False
            print(f"MISMATCH: stride={cfg['stride']} N={cfg['N']} "
                  f"shape {out.shape} vs {ref.shape}, max abs err {err}")

    if all_ok:
        print("KERNEL_OK")
</pallas_src>

<mosaic_0001>
module attributes {stable_mosaic.version = 11 : i64} {
  func.func @kernel(%arg0: i32, %arg1: memref<1x16x16x16xf32, #tpu.memory_space<vmem>>, %arg2: memref<1x16xf32, #tpu.memory_space<vmem>>, %arg3: memref<1x16xf32, #tpu.memory_space<vmem>>, %arg4: memref<144x32xbf16, #tpu.memory_space<vmem>>, %arg5: memref<1x32xf32, #tpu.memory_space<vmem>>, %arg6: memref<288x32xbf16, #tpu.memory_space<vmem>>, %arg7: memref<1x32xf32, #tpu.memory_space<vmem>>, %arg8: memref<1x32xf32, #tpu.memory_space<vmem>>, %arg9: memref<32x2xbf16, #tpu.memory_space<vmem>>, %arg10: memref<2x32xbf16, #tpu.memory_space<vmem>>, %arg11: memref<16x32xbf16, #tpu.memory_space<vmem>>, %arg12: memref<1x32xf32, #tpu.memory_space<vmem>>, %arg13: memref<1x32xf32, #tpu.memory_space<vmem>>, %arg14: memref<8x256xf32, #tpu.memory_space<vmem>>, %arg15: memref<1x18x18x16xf32, #tpu.memory_space<vmem>>, %arg16: memref<1x18x18x32xf32, #tpu.memory_space<vmem>>, %arg17: memref<64x32xf32, #tpu.memory_space<vmem>>) attributes {dimension_semantics = [#tpu.dimension_semantics<parallel>], iteration_bounds = array<i64: 2>, scalar_prefetch = 0 : i64, scratch_operands = 3 : i64, tpu.core_type = #tpu.core_type<tc>, window_params = [{transform_indices = @transform_0, window_bounds = array<i64: 1, 16, 16, 16>}, {pipeline_mode = #tpu.pipeline_mode<synchronous>, transform_indices = @transform_1, window_bounds = array<i64: 1, 16>}, {pipeline_mode = #tpu.pipeline_mode<synchronous>, transform_indices = @transform_2, window_bounds = array<i64: 1, 16>}, {pipeline_mode = #tpu.pipeline_mode<synchronous>, transform_indices = @transform_3, window_bounds = array<i64: 144, 32>}, {pipeline_mode = #tpu.pipeline_mode<synchronous>, transform_indices = @transform_4, window_bounds = array<i64: 1, 32>}, {pipeline_mode = #tpu.pipeline_mode<synchronous>, transform_indices = @transform_5, window_bounds = array<i64: 288, 32>}, {pipeline_mode = #tpu.pipeline_mode<synchronous>, transform_indices = @transform_6, window_bounds = array<i64: 1, 32>}, {pipeline_mode = #tpu.pipeline_mode<synchronous>, transform_indices = @transform_7, window_bounds = array<i64: 1, 32>}, {pipeline_mode = #tpu.pipeline_mode<synchronous>, transform_indices = @transform_8, window_bounds = array<i64: 32, 2>}, {pipeline_mode = #tpu.pipeline_mode<synchronous>, transform_indices = @transform_9, window_bounds = array<i64: 2, 32>}, {pipeline_mode = #tpu.pipeline_mode<synchronous>, transform_indices = @transform_10, window_bounds = array<i64: 16, 32>}, {pipeline_mode = #tpu.pipeline_mode<synchronous>, transform_indices = @transform_11, window_bounds = array<i64: 1, 32>}, {pipeline_mode = #tpu.pipeline_mode<synchronous>, transform_indices = @transform_12, window_bounds = array<i64: 1, 32>}, {transform_indices = @transform_13, window_bounds = array<i64: 8, 256>}]} {
    %c0 = arith.constant 0 : index
    %c0_0 = arith.constant 0 : index
    %c0_1 = arith.constant 0 : index
    %c0_2 = arith.constant 0 : index
    %0 = vector.load %arg1[%c0, %c0_0, %c0_1, %c0_2] : memref<1x16x16x16xf32, #tpu.memory_space<vmem>>, vector<1x16x16x16xf32>
    %c0_3 = arith.constant 0 : index
    %c0_4 = arith.constant 0 : index
    %1 = vector.load %arg2[%c0_3, %c0_4] : memref<1x16xf32, #tpu.memory_space<vmem>>, vector<1x16xf32>
    %2 = vector.shape_cast %1 : vector<1x16xf32> to vector<1x1x1x16xf32>
    %3 = vector.broadcast %2 : vector<1x1x1x16xf32> to vector<1x16x16x16xf32>
    %4 = arith.mulf %0, %3 : vector<1x16x16x16xf32>
    %c0_5 = arith.constant 0 : index
    %c0_6 = arith.constant 0 : index
    %5 = vector.load %arg3[%c0_5, %c0_6] : memref<1x16xf32, #tpu.memory_space<vmem>>, vector<1x16xf32>
    %6 = vector.shape_cast %5 : vector<1x16xf32> to vector<1x1x1x16xf32>
    %7 = vector.broadcast %6 : vector<1x1x1x16xf32> to vector<1x16x16x16xf32>
    %8 = arith.addf %4, %7 : vector<1x16x16x16xf32>
    %c0_7 = arith.constant 0 : index
    %c1 = arith.constant 1 : index
    %c1_8 = arith.constant 1 : index
    %c0_9 = arith.constant 0 : index
    %9 = vector.load %arg15[%c0_7, %c1, %c1_8, %c0_9] : memref<1x18x18x16xf32, #tpu.memory_space<vmem>>, vector<1x16x16x16xf32>
    tpu.vector_store %arg15[%c0_7, %c1, %c1_8, %c0_9], %8 {strides = array<i32>} : memref<1x18x18x16xf32, #tpu.memory_space<vmem>>, vector<1x16x16x16xf32>,
    %cst = arith.constant 0.000000e+00 : f32
    %10 = vector.broadcast %cst : f32 to vector<1x1x18x16xf32>
    %cst_10 = arith.constant 0.000000e+00 : f32
    %11 = vector.broadcast %cst_10 : f32 to vector<1x16x1x16xf32>
    %c0_11 = arith.constant 0 : index
    %c0_12 = arith.constant 0 : index
    %c0_13 = arith.constant 0 : index
    %c0_14 = arith.constant 0 : index
    %12 = vector.load %arg15[%c0_11, %c0_12, %c0_13, %c0_14] : memref<1x18x18x16xf32, #tpu.memory_space<vmem>>, vector<1x1x18x16xf32>
    tpu.vector_store %arg15[%c0_11, %c0_12, %c0_13, %c0_14], %10 {strides = array<i32>} : memref<1x18x18x16xf32, #tpu.memory_space<vmem>>, vector<1x1x18x16xf32>,
    %c0_15 = arith.constant 0 : index
    %c17 = arith.constant 17 : index
    %c0_16 = arith.constant 0 : index
    %c0_17 = arith.constant 0 : index
    %13 = vector.load %arg15[%c0_15, %c17, %c0_16, %c0_17] : memref<1x18x18x16xf32, #tpu.memory_space<vmem>>, vector<1x1x18x16xf32>
    tpu.vector_store %arg15[%c0_15, %c17, %c0_16, %c0_17], %10 {strides = array<i32>} : memref<1x18x18x16xf32, #tpu.memory_space<vmem>>, vector<1x1x18x16xf32>,
    %c0_18 = arith.constant 0 : index
    %c1_19 = arith.constant 1 : index
    %c0_20 = arith.constant 0 : index
    %c0_21 = arith.constant 0 : index
    %14 = vector.load %arg15[%c0_18, %c1_19, %c0_20, %c0_21] : memref<1x18x18x16xf32, #tpu.memory_space<vmem>>, vector<1x16x1x16xf32>
    tpu.vector_store %arg15[%c0_18, %c1_19, %c0_20, %c0_21], %11 {strides = array<i32>} : memref<1x18x18x16xf32, #tpu.memory_space<vmem>>, vector<1x16x1x16xf32>,
    %c0_22 = arith.constant 0 : index
    %c1_23 = arith.constant 1 : index
    %c17_24 = arith.constant 17 : index
    %c0_25 = arith.constant 0 : index
    %15 = vector.load %arg15[%c0_22, %c1_23, %c17_24, %c0_25] : memref<1x18x18x16xf32, #tpu.memory_space<vmem>>, vector<1x16x1x16xf32>
    tpu.vector_store %arg15[%c0_22, %c1_23, %c17_24, %c0_25], %11 {strides = array<i32>} : memref<1x18x18x16xf32, #tpu.memory_space<vmem>>, vector<1x16x1x16xf32>,
    %c0_26 = arith.constant 0 : index
    %c0_27 = arith.constant 0 : index
    %c0_28 = arith.constant 0 : index
    %c0_29 = arith.constant 0 : index
    %16 = vector.load %arg15[%c0_26, %c0_27, %c0_28, %c0_29] : memref<1x18x18x16xf32, #tpu.memory_space<vmem>>, vector<1x16x16x16xf32>
    %c0_30 = arith.constant 0 : index
    %c0_31 = arith.constant 0 : index
    %c1_32 = arith.constant 1 : index
    %c0_33 = arith.constant 0 : index
    %17 = vector.load %arg15[%c0_30, %c0_31, %c1_32, %c0_33] : memref<1x18x18x16xf32, #tpu.memory_space<vmem>>, vector<1x16x16x16xf32>
    %c0_34 = arith.constant 0 : index
    %c0_35 = arith.constant 0 : index
    %c2 = arith.constant 2 : index
    %c0_36 = arith.constant 0 : index
    %18 = vector.load %arg15[%c0_34, %c0_35, %c2, %c0_36] : memref<1x18x18x16xf32, #tpu.memory_space<vmem>>, vector<1x16x16x16xf32>
    %c0_37 = arith.constant 0 : index
    %c1_38 = arith.constant 1 : index
    %c0_39 = arith.constant 0 : index
    %c0_40 = arith.constant 0 : index
    %19 = vector.load %arg15[%c0_37, %c1_38, %c0_39, %c0_40] : memref<1x18x18x16xf32, #tpu.memory_space<vmem>>, vector<1x16x16x16xf32>
    %c0_41 = arith.constant 0 : index
    %c1_42 = arith.constant 1 : index
    %c1_43 = arith.constant 1 : index
    %c0_44 = arith.constant 0 : index
    %20 = vector.load %arg15[%c0_41, %c1_42, %c1_43, %c0_44] : memref<1x18x18x16xf32, #tpu.memory_space<vmem>>, vector<1x16x16x16xf32>
    %c0_45 = arith.constant 0 : index
    %c1_46 = arith.constant 1 : index
    %c2_47 = arith.constant 2 : index
    %c0_48 = arith.constant 0 : index
    %21 = vector.load %arg15[%c0_45, %c1_46, %c2_47, %c0_48] : memref<1x18x18x16xf32, #tpu.memory_space<vmem>>, vector<1x16x16x16xf32>
    %c0_49 = arith.constant 0 : index
    %c2_50 = arith.constant 2 : index
    %c0_51 = arith.constant 0 : index
    %c0_52 = arith.constant 0 : index
    %22 = vector.load %arg15[%c0_49, %c2_50, %c0_51, %c0_52] : memref<1x18x18x16xf32, #tpu.memory_space<vmem>>, vector<1x16x16x16xf32>
    %c0_53 = arith.constant 0 : index
    %c2_54 = arith.constant 2 : index
    %c1_55 = arith.constant 1 : index
    %c0_56 = arith.constant 0 : index
    %23 = vector.load %arg15[%c0_53, %c2_54, %c1_55, %c0_56] : memref<1x18x18x16xf32, #tpu.memory_space<vmem>>, vector<1x16x16x16xf32>
    %c0_57 = arith.constant 0 : index
    %c2_58 = arith.constant 2 : index
    %c2_59 = arith.constant 2 : index
    %c0_60 = arith.constant 0 : index
    %24 = vector.load %arg15[%c0_57, %c2_58, %c2_59, %c0_60] : memref<1x18x18x16xf32, #tpu.memory_space<vmem>>, vector<1x16x16x16xf32>
    %25 = tpu.concatenate %16, %17, %18, %19, %20, %21, %22, %23, %24 in 3 : vector<1x16x16x16xf32>, vector<1x16x16x16xf32>, vector<1x16x16x16xf32>, vector<1x16x16x16xf32>, vector<1x16x16x16xf32>, vector<1x16x16x16xf32>, vector<1x16x16x16xf32>, vector<1x16x16x16xf32>, vector<1x16x16x16xf32> -> vector<1x16x16x144xf32>
    %26 = vector.shape_cast %25 : vector<1x16x16x144xf32> to vector<256x144xf32>
    %27 = arith.truncf %26 : vector<256x144xf32> to vector<256x144xbf16>
    %c0_61 = arith.constant 0 : index
    %c0_62 = arith.constant 0 : index
    %28 = vector.load %arg4[%c0_61, %c0_62] : memref<144x32xbf16, #tpu.memory_space<vmem>>, vector<144x32xbf16>
    %cst_63 = arith.constant dense<0.000000e+00> : vector<256x32xf32>
    %29 = tpu.matmul %27, %28, %cst_63 {dimension_numbers = #tpu.dot_dimension_numbers<[1], [0], [0], [1], [0, 0, 1, 1], [], []>} : vector<256x144xbf16>, vector<144x32xbf16>, vector<256x32xf32> -> vector<256x32xf32>
    %cst_64 = arith.constant 0.000000e+00 : f32
    %30 = vector.broadcast %cst_64 : f32 to vector<256x32xf32>
    %31 = arith.cmpf ogt, %29, %30 : vector<256x32xf32>
    %c0_65 = arith.constant 0 : index
    %c0_66 = arith.constant 0 : index
    %32 = vector.load %arg5[%c0_65, %c0_66] : memref<1x32xf32, #tpu.memory_space<vmem>>, vector<1x32xf32>
    %33 = vector.broadcast %32 : vector<1x32xf32> to vector<256x32xf32>
    %34 = arith.mulf %33, %29 : vector<256x32xf32>
    %35 = arith.select %31, %29, %34 : vector<256x32xi1>, vector<256x32xf32>
    %36 = vector.shape_cast %35 : vector<256x32xf32> to vector<1x16x16x32xf32>
    %c0_67 = arith.constant 0 : index
    %c1_68 = arith.constant 1 : index
    %c1_69 = arith.constant 1 : index
    %c0_70 = arith.constant 0 : index
    %37 = vector.load %arg16[%c0_67, %c1_68, %c1_69, %c0_70] : memref<1x18x18x32xf32, #tpu.memory_space<vmem>>, vector<1x16x16x32xf32>
    tpu.vector_store %arg16[%c0_67, %c1_68, %c1_69, %c0_70], %36 {strides = array<i32>} : memref<1x18x18x32xf32, #tpu.memory_space<vmem>>, vector<1x16x16x32xf32>,
    %cst_71 = arith.constant 0.000000e+00 : f32
    %38 = vector.broadcast %cst_71 : f32 to vector<1x1x18x32xf32>
    %cst_72 = arith.constant 0.000000e+00 : f32
    %39 = vector.broadcast %cst_72 : f32 to vector<1x16x1x32xf32>
    %c0_73 = arith.constant 0 : index
    %c0_74 = arith.constant 0 : index
    %c0_75 = arith.constant 0 : index
    %c0_76 = arith.constant 0 : index
    %40 = vector.load %arg16[%c0_73, %c0_74, %c0_75, %c0_76] : memref<1x18x18x32xf32, #tpu.memory_space<vmem>>, vector<1x1x18x32xf32>
    tpu.vector_store %arg16[%c0_73, %c0_74, %c0_75, %c0_76], %38 {strides = array<i32>} : memref<1x18x18x32xf32, #tpu.memory_space<vmem>>, vector<1x1x18x32xf32>,
    %c0_77 = arith.constant 0 : index
    %c17_78 = arith.constant 17 : index
    %c0_79 = arith.constant 0 : index
    %c0_80 = arith.constant 0 : index
    %41 = vector.load %arg16[%c0_77, %c17_78, %c0_79, %c0_80] : memref<1x18x18x32xf32, #tpu.memory_space<vmem>>, vector<1x1x18x32xf32>
    tpu.vector_store %arg16[%c0_77, %c17_78, %c0_79, %c0_80], %38 {strides = array<i32>} : memref<1x18x18x32xf32, #tpu.memory_space<vmem>>, vector<1x1x18x32xf32>,
    %c0_81 = arith.constant 0 : index
    %c1_82 = arith.constant 1 : index
    %c0_83 = arith.constant 0 : index
    %c0_84 = arith.constant 0 : index
    %42 = vector.load %arg16[%c0_81, %c1_82, %c0_83, %c0_84] : memref<1x18x18x32xf32, #tpu.memory_space<vmem>>, vector<1x16x1x32xf32>
    tpu.vector_store %arg16[%c0_81, %c1_82, %c0_83, %c0_84], %39 {strides = array<i32>} : memref<1x18x18x32xf32, #tpu.memory_space<vmem>>, vector<1x16x1x32xf32>,
    %c0_85 = arith.constant 0 : index
    %c1_86 = arith.constant 1 : index
    %c17_87 = arith.constant 17 : index
    %c0_88 = arith.constant 0 : index
    %43 = vector.load %arg16[%c0_85, %c1_86, %c17_87, %c0_88] : memref<1x18x18x32xf32, #tpu.memory_space<vmem>>, vector<1x16x1x32xf32>
    tpu.vector_store %arg16[%c0_85, %c1_86, %c17_87, %c0_88], %39 {strides = array<i32>} : memref<1x18x18x32xf32, #tpu.memory_space<vmem>>, vector<1x16x1x32xf32>,
    %c0_89 = arith.constant 0 : index
    %c0_90 = arith.constant 0 : index
    %c0_91 = arith.constant 0 : index
    %c0_92 = arith.constant 0 : index
    %44 = tpu.strided_load %arg16[%c0_89, %c0_90, %c0_91, %c0_92] {strides = array<i32: 1, 2, 2, 1>} : memref<1x18x18x32xf32, #tpu.memory_space<vmem>>, vector<1x8x8x32xf32>
    %c0_93 = arith.constant 0 : index
    %c0_94 = arith.constant 0 : index
    %c1_95 = arith.constant 1 : index
    %c0_96 = arith.constant 0 : index
    %45 = tpu.strided_load %arg16[%c0_93, %c0_94, %c1_95, %c0_96] {strides = array<i32: 1, 2, 2, 1>} : memref<1x18x18x32xf32, #tpu.memory_space<vmem>>, vector<1x8x8x32xf32>
    %c0_97 = arith.constant 0 : index
    %c0_98 = arith.constant 0 : index
    %c2_99 = arith.constant 2 : index
    %c0_100 = arith.constant 0 : index
    %46 = tpu.strided_load %arg16[%c0_97, %c0_98, %c2_99, %c0_100] {strides = array<i32: 1, 2, 2, 1>} : memref<1x18x18x32xf32, #tpu.memory_space<vmem>>, vector<1x8x8x32xf32>
    %c0_101 = arith.constant 0 : index
    %c1_102 = arith.constant 1 : index
    %c0_103 = arith.constant 0 : index
    %c0_104 = arith.constant 0 : index
    %47 = tpu.strided_load %arg16[%c0_101, %c1_102, %c0_103, %c0_104] {strides = array<i32: 1, 2, 2, 1>} : memref<1x18x18x32xf32, #tpu.memory_space<vmem>>, vector<1x8x8x32xf32>
    %c0_105 = arith.constant 0 : index
    %c1_106 = arith.constant 1 : index
    %c1_107 = arith.constant 1 : index
    %c0_108 = arith.constant 0 : index
    %48 = tpu.strided_load %arg16[%c0_105, %c1_106, %c1_107, %c0_108] {strides = array<i32: 1, 2, 2, 1>} : memref<1x18x18x32xf32, #tpu.memory_space<vmem>>, vector<1x8x8x32xf32>
    %c0_109 = arith.constant 0 : index
    %c1_110 = arith.constant 1 : index
    %c2_111 = arith.constant 2 : index
    %c0_112 = arith.constant 0 : index
    %49 = tpu.strided_load %arg16[%c0_109, %c1_110, %c2_111, %c0_112] {strides = array<i32: 1, 2, 2, 1>} : memref<1x18x18x32xf32, #tpu.memory_space<vmem>>, vector<1x8x8x32xf32>
    %c0_113 = arith.constant 0 : index
    %c2_114 = arith.constant 2 : index
    %c0_115 = arith.constant 0 : index
    %c0_116 = arith.constant 0 : index
    %50 = tpu.strided_load %arg16[%c0_113, %c2_114, %c0_115, %c0_116] {strides = array<i32: 1, 2, 2, 1>} : memref<1x18x18x32xf32, #tpu.memory_space<vmem>>, vector<1x8x8x32xf32>
    %c0_117 = arith.constant 0 : index
    %c2_118 = arith.constant 2 : index
    %c1_119 = arith.constant 1 : index
    %c0_120 = arith.constant 0 : index
    %51 = tpu.strided_load %arg16[%c0_117, %c2_118, %c1_119, %c0_120] {strides = array<i32: 1, 2, 2, 1>} : memref<1x18x18x32xf32, #tpu.memory_space<vmem>>, vector<1x8x8x32xf32>
    %c0_121 = arith.constant 0 : index
    %c2_122 = arith.constant 2 : index
    %c2_123 = arith.constant 2 : index
    %c0_124 = arith.constant 0 : index
    %52 = tpu.strided_load %arg16[%c0_121, %c2_122, %c2_123, %c0_124] {strides = array<i32: 1, 2, 2, 1>} : memref<1x18x18x32xf32, #tpu.memory_space<vmem>>, vector<1x8x8x32xf32>
    %53 = tpu.concatenate %44, %45, %46, %47, %48, %49, %50, %51, %52 in 3 : vector<1x8x8x32xf32>, vector<1x8x8x32xf32>, vector<1x8x8x32xf32>, vector<1x8x8x32xf32>, vector<1x8x8x32xf32>, vector<1x8x8x32xf32>, vector<1x8x8x32xf32>, vector<1x8x8x32xf32>, vector<1x8x8x32xf32> -> vector<1x8x8x288xf32>
    %54 = vector.shape_cast %53 : vector<1x8x8x288xf32> to vector<64x288xf32>
    %55 = arith.truncf %54 : vector<64x288xf32> to vector<64x288xbf16>
    %c0_125 = arith.constant 0 : index
    %c0_126 = arith.constant 0 : index
    %56 = vector.load %arg6[%c0_125, %c0_126] : memref<288x32xbf16, #tpu.memory_space<vmem>>, vector<288x32xbf16>
    %cst_127 = arith.constant dense<0.000000e+00> : vector<64x32xf32>
    %57 = tpu.matmul %55, %56, %cst_127 {dimension_numbers = #tpu.dot_dimension_numbers<[1], [0], [0], [1], [0, 0, 1, 1], [], []>} : vector<64x288xbf16>, vector<288x32xbf16>, vector<64x32xf32> -> vector<64x32xf32>
    %c0_128 = arith.constant 0 : index
    %c0_129 = arith.constant 0 : index
    %58 = vector.load %arg7[%c0_128, %c0_129] : memref<1x32xf32, #tpu.memory_space<vmem>>, vector<1x32xf32>
    %59 = vector.broadcast %58 : vector<1x32xf32> to vector<64x32xf32>
    %60 = arith.mulf %57, %59 : vector<64x32xf32>
    %c0_130 = arith.constant 0 : index
    %c0_131 = arith.constant 0 : index
    %61 = vector.load %arg8[%c0_130, %c0_131] : memref<1x32xf32, #tpu.memory_space<vmem>>, vector<1x32xf32>
    %62 = vector.broadcast %61 : vector<1x32xf32> to vector<64x32xf32>
    %63 = arith.addf %60, %62 : vector<64x32xf32>
    %cst_132 = arith.constant dense<0.000000e+00> : vector<32xf32>
    %64 = vector.multi_reduction <add>, %63, %cst_132 [0] : vector<64x32xf32> to vector<32xf32>
    %65 = vector.shape_cast %64 : vector<32xf32> to vector<1x32xf32>
    %cst_133 = arith.constant 1.562500e-02 : f32
    %66 = vector.broadcast %cst_133 : f32 to vector<1x32xf32>
    %67 = arith.mulf %65, %66 : vector<1x32xf32>
    %68 = arith.truncf %67 : vector<1x32xf32> to vector<1x32xbf16>
    %c0_134 = arith.constant 0 : index
    %c0_135 = arith.constant 0 : index
    %69 = vector.load %arg9[%c0_134, %c0_135] : memref<32x2xbf16, #tpu.memory_space<vmem>>, vector<32x2xbf16>
    %cst_136 = arith.constant dense<0.000000e+00> : vector<1x2xf32>
    %70 = tpu.matmul %68, %69, %cst_136 {dimension_numbers = #tpu.dot_dimension_numbers<[1], [0], [0], [1], [0, 0, 1, 1], [], []>} : vector<1x32xbf16>, vector<32x2xbf16>, vector<1x2xf32> -> vector<1x2xf32>
    %cst_137 = arith.constant 0.000000e+00 : f32
    %71 = vector.broadcast %cst_137 : f32 to vector<1x2xf32>
    %72 = arith.maximumf %70, %71 : vector<1x2xf32>
    %73 = arith.truncf %72 : vector<1x2xf32> to vector<1x2xbf16>
    %c0_138 = arith.constant 0 : index
    %c0_139 = arith.constant 0 : index
    %74 = vector.load %arg10[%c0_138, %c0_139] : memref<2x32xbf16, #tpu.memory_space<vmem>>, vector<2x32xbf16>
    %cst_140 = arith.constant dense<0.000000e+00> : vector<1x32xf32>
    %75 = tpu.matmul %73, %74, %cst_140 {dimension_numbers = #tpu.dot_dimension_numbers<[1], [0], [0], [1], [0, 0, 1, 1], [], []>} : vector<1x2xbf16>, vector<2x32xbf16>, vector<1x32xf32> -> vector<1x32xf32>
    %76 = arith.negf %75 : vector<1x32xf32>
    %77 = math.exp %76 : vector<1x32xf32>
    %cst_141 = arith.constant 1.000000e+00 : f32
    %78 = vector.broadcast %cst_141 : f32 to vector<1x32xf32>
    %79 = arith.addf %78, %77 : vector<1x32xf32>
    %80 = arith.divf %78, %79 : vector<1x32xf32>
    %c0_142 = arith.constant 0 : index
    %c0_143 = arith.constant 0 : index
    %c0_144 = arith.constant 0 : index
    %c0_145 = arith.constant 0 : index
    %81 = tpu.strided_load %arg1[%c0_142, %c0_143, %c0_144, %c0_145] {strides = array<i32: 1, 2, 2, 1>} : memref<1x16x16x16xf32, #tpu.memory_space<vmem>>, vector<1x8x8x16xf32>
    %82 = vector.shape_cast %81 : vector<1x8x8x16xf32> to vector<64x16xf32>
    %83 = arith.truncf %82 : vector<64x16xf32> to vector<64x16xbf16>
    %c0_146 = arith.constant 0 : index
    %c0_147 = arith.constant 0 : index
    %84 = vector.load %arg11[%c0_146, %c0_147] : memref<16x32xbf16, #tpu.memory_space<vmem>>, vector<16x32xbf16>
    %cst_148 = arith.constant dense<0.000000e+00> : vector<64x32xf32>
    %85 = tpu.matmul %83, %84, %cst_148 {dimension_numbers = #tpu.dot_dimension_numbers<[1], [0], [0], [1], [0, 0, 1, 1], [], []>} : vector<64x16xbf16>, vector<16x32xbf16>, vector<64x32xf32> -> vector<64x32xf32>
    %c0_149 = arith.constant 0 : index
    %c0_150 = arith.constant 0 : index
    %86 = vector.load %arg12[%c0_149, %c0_150] : memref<1x32xf32, #tpu.memory_space<vmem>>, vector<1x32xf32>
    %87 = vector.broadcast %86 : vector<1x32xf32> to vector<64x32xf32>
    %88 = arith.mulf %85, %87 : vector<64x32xf32>
    %c0_151 = arith.constant 0 : index
    %c0_152 = arith.constant 0 : index
    %89 = vector.load %arg13[%c0_151, %c0_152] : memref<1x32xf32, #tpu.memory_space<vmem>>, vector<1x32xf32>
    %90 = vector.broadcast %89 : vector<1x32xf32> to vector<64x32xf32>
    %91 = arith.addf %88, %90 : vector<64x32xf32>
    %92 = vector.broadcast %80 : vector<1x32xf32> to vector<64x32xf32>
    %93 = arith.mulf %63, %92 : vector<64x32xf32>
    %94 = arith.addf %93, %91 : vector<64x32xf32>
    %c0_153 = arith.constant 0 : index
    %c0_154 = arith.constant 0 : index
    %95 = vector.load %arg17[%c0_153, %c0_154] : memref<64x32xf32, #tpu.memory_space<vmem>>, vector<64x32xf32>
    tpu.vector_store %arg17[%c0_153, %c0_154], %94 {strides = array<i32>} : memref<64x32xf32, #tpu.memory_space<vmem>>, vector<64x32xf32>,
    %c0_155 = arith.constant 0 : index
    %c0_156 = arith.constant 0 : index
    %96 = tpu.strided_load %arg17[%c0_155, %c0_156] {strides = array<i32: 8, 1>} : memref<64x32xf32, #tpu.memory_space<vmem>>, vector<8x32xf32>
    %c1_157 = arith.constant 1 : index
    %c0_158 = arith.constant 0 : index
    %97 = tpu.strided_load %arg17[%c1_157, %c0_158] {strides = array<i32: 8, 1>} : memref<64x32xf32, #tpu.memory_space<vmem>>, vector<8x32xf32>
    %c2_159 = arith.constant 2 : index
    %c0_160 = arith.constant 0 : index
    %98 = tpu.strided_load %arg17[%c2_159, %c0_160] {strides = array<i32: 8, 1>} : memref<64x32xf32, #tpu.memory_space<vmem>>, vector<8x32xf32>
    %c3 = arith.constant 3 : index
    %c0_161 = arith.constant 0 : index
    %99 = tpu.strided_load %arg17[%c3, %c0_161] {strides = array<i32: 8, 1>} : memref<64x32xf32, #tpu.memory_space<vmem>>, vector<8x32xf32>
    %c4 = arith.constant 4 : index
    %c0_162 = arith.constant 0 : index
    %100 = tpu.strided_load %arg17[%c4, %c0_162] {strides = array<i32: 8, 1>} : memref<64x32xf32, #tpu.memory_space<vmem>>, vector<8x32xf32>
    %c5 = arith.constant 5 : index
    %c0_163 = arith.constant 0 : index
    %101 = tpu.strided_load %arg17[%c5, %c0_163] {strides = array<i32: 8, 1>} : memref<64x32xf32, #tpu.memory_space<vmem>>, vector<8x32xf32>
    %c6 = arith.constant 6 : index
    %c0_164 = arith.constant 0 : index
    %102 = tpu.strided_load %arg17[%c6, %c0_164] {strides = array<i32: 8, 1>} : memref<64x32xf32, #tpu.memory_space<vmem>>, vector<8x32xf32>
    %c7 = arith.constant 7 : index
    %c0_165 = arith.constant 0 : index
    %103 = tpu.strided_load %arg17[%c7, %c0_165] {strides = array<i32: 8, 1>} : memref<64x32xf32, #tpu.memory_space<vmem>>, vector<8x32xf32>
    %104 = tpu.concatenate %96, %97, %98, %99, %100, %101, %102, %103 in 1 : vector<8x32xf32>, vector<8x32xf32>, vector<8x32xf32>, vector<8x32xf32>, vector<8x32xf32>, vector<8x32xf32>, vector<8x32xf32>, vector<8x32xf32> -> vector<8x256xf32>
    %c0_166 = arith.constant 0 : index
    %c0_167 = arith.constant 0 : index
    %105 = vector.load %arg14[%c0_166, %c0_167] : memref<8x256xf32, #tpu.memory_space<vmem>>, vector<8x256xf32>
    tpu.vector_store %arg14[%c0_166, %c0_167], %104 {strides = array<i32>} : memref<8x256xf32, #tpu.memory_space<vmem>>, vector<8x256xf32>,
    return
  }
  func.func @transform_0(%arg0: i32) -> (i32, i32, i32, i32) {
    %c0_i32 = arith.constant 0 : i32
    %c0_i32_0 = arith.constant 0 : i32
    %c0_i32_1 = arith.constant 0 : i32
    %c0_i32_2 = arith.constant 0 : i32
    return %arg0, %c0_i32, %c0_i32_0, %c0_i32_1 : i32, i32, i32, i32
  }
  func.func @transform_1(%arg0: i32) -> (i32, i32) {
    %c0_i32 = arith.constant 0 : i32
    %c0_i32_0 = arith.constant 0 : i32
    %c0_i32_1 = arith.constant 0 : i32
    return %c0_i32, %c0_i32_0 : i32, i32
  }
  func.func @transform_2(%arg0: i32) -> (i32, i32) {
    %c0_i32 = arith.constant 0 : i32
    %c0_i32_0 = arith.constant 0 : i32
    %c0_i32_1 = arith.constant 0 : i32
    return %c0_i32, %c0_i32_0 : i32, i32
  }
  func.func @transform_3(%arg0: i32) -> (i32, i32) {
    %c0_i32 = arith.constant 0 : i32
    %c0_i32_0 = arith.constant 0 : i32
    %c0_i32_1 = arith.constant 0 : i32
    return %c0_i32, %c0_i32_0 : i32, i32
  }
  func.func @transform_4(%arg0: i32) -> (i32, i32) {
    %c0_i32 = arith.constant 0 : i32
    %c0_i32_0 = arith.constant 0 : i32
    %c0_i32_1 = arith.constant 0 : i32
    return %c0_i32, %c0_i32_0 : i32, i32
  }
  func.func @transform_5(%arg0: i32) -> (i32, i32) {
    %c0_i32 = arith.constant 0 : i32
    %c0_i32_0 = arith.constant 0 : i32
    %c0_i32_1 = arith.constant 0 : i32
    return %c0_i32, %c0_i32_0 : i32, i32
  }
  func.func @transform_6(%arg0: i32) -> (i32, i32) {
    %c0_i32 = arith.constant 0 : i32
    %c0_i32_0 = arith.constant 0 : i32
    %c0_i32_1 = arith.constant 0 : i32
    return %c0_i32, %c0_i32_0 : i32, i32
  }
  func.func @transform_7(%arg0: i32) -> (i32, i32) {
    %c0_i32 = arith.constant 0 : i32
    %c0_i32_0 = arith.constant 0 : i32
    %c0_i32_1 = arith.constant 0 : i32
    return %c0_i32, %c0_i32_0 : i32, i32
  }
  func.func @transform_8(%arg0: i32) -> (i32, i32) {
    %c0_i32 = arith.constant 0 : i32
    %c0_i32_0 = arith.constant 0 : i32
    %c0_i32_1 = arith.constant 0 : i32
    return %c0_i32, %c0_i32_0 : i32, i32
  }
  func.func @transform_9(%arg0: i32) -> (i32, i32) {
    %c0_i32 = arith.constant 0 : i32
    %c0_i32_0 = arith.constant 0 : i32
    %c0_i32_1 = arith.constant 0 : i32
    return %c0_i32, %c0_i32_0 : i32, i32
  }
  func.func @transform_10(%arg0: i32) -> (i32, i32) {
    %c0_i32 = arith.constant 0 : i32
    %c0_i32_0 = arith.constant 0 : i32
    %c0_i32_1 = arith.constant 0 : i32
    return %c0_i32, %c0_i32_0 : i32, i32
  }
  func.func @transform_11(%arg0: i32) -> (i32, i32) {
    %c0_i32 = arith.constant 0 : i32
    %c0_i32_0 = arith.constant 0 : i32
    %c0_i32_1 = arith.constant 0 : i32
    return %c0_i32, %c0_i32_0 : i32, i32
  }
  func.func @transform_12(%arg0: i32) -> (i32, i32) {
    %c0_i32 = arith.constant 0 : i32
    %c0_i32_0 = arith.constant 0 : i32
    %c0_i32_1 = arith.constant 0 : i32
    return %c0_i32, %c0_i32_0 : i32, i32
  }
  func.func @transform_13(%arg0: i32) -> (i32, i32) {
    %c0_i32 = arith.constant 0 : i32
    %c0_i32_0 = arith.constant 0 : i32
    return %arg0, %c0_i32 : i32, i32
  }
}

</mosaic_0001>

<bundles_post_ra>
// kernel: tpu_custom_call.1
= control target key start
LH: loop header
LB: loop body
LE: loop exit
PB: predicated region body
PF: predicated region fallthrough
CT: control target
= control target key end

     0   :  { %18 = vsyncpa [#allocation6], 0  ;;  %s6122_s0 = inlined_call_operand.hbm [shape: f32[2,16,16,16], index: 0, kind: input, shape index: {}]   ;;  %s6123_s1 = inlined_call_operand.vmem [shape: f32[1,16], index: 1, kind: input, shape index: {}]   ;;  %s6124_s2 = inlined_call_operand.vmem [shape: f32[1,16], index: 2, kind: input, shape index: {}]   ;;  %s6125_s3 = inlined_call_operand.vmem [shape: bf16[144,32], index: 3, kind: input, shape index: {}]   ;;  %s6126_s4 = inlined_call_operand.vmem [shape: f32[1,32], index: 4, kind: input, shape index: {}]   ;;  %s6127_s5 = inlined_call_operand.vmem [shape: bf16[288,32], index: 5, kind: input, shape index: {}]   ;;  %s6128_s6 = inlined_call_operand.vmem [shape: f32[1,32], index: 6, kind: input, shape index: {}]   ;;  %s6129_s7 = inlined_call_operand.vmem [shape: f32[1,32], index: 7, kind: input, shape index: {}]   ;;  %s6130_s8 = inlined_call_operand.vmem [shape: bf16[32,2], index: 8, kind: input, shape index: {}]   ;;  %s6131_s9 = inlined_call_operand.vmem [shape: bf16[2,32], index: 9, kind: input, shape index: {}]   ;;  %s6132_s10 = inlined_call_operand.vmem [shape: bf16[16,32], index: 10, kind: input, shape index: {}]   ;;  %s6133_s11 = inlined_call_operand.vmem [shape: f32[1,32], index: 11, kind: input, shape index: {}]   ;;  %s6134_s12 = inlined_call_operand.vmem [shape: f32[1,32], index: 12, kind: input, shape index: {}]   ;;  %s6135_s13 = inlined_call_operand.hbm [shape: f32[16,256], index: 13, kind: output, shape index: {}]  }
   0x1   :  { %20 = vsyncpa [#allocation6 + $0x1], 0 }
   0x2   :  { %21 = vsyncpa [#allocation7], 0 }
   0x3   :  { %23 = vsyncpa [#allocation7 + $0x1], 0  ;;  %s4890_s25 = smov 0   ;;  %s4892_s26 = smov 0  }
   0x4   :  { %s4894_s27 = smov 0   ;;  %s4896_s28 = smov 0  }
   0x5 LB: > { %6147 = sst [smem:[#allocation11_spill]] %s4792_s25  ;;  %s4911_s29 = sadd.s32 4294967295, %s4804_s28   ;;  %s4804_s28 = sphi %s4896_s28, %s6163_s28   ;;  %s4800_s27 = sphi %s4894_s27, %s6165_s27   ;;  %s4796_s26 = sphi %s4892_s26, %s6167_s26   ;;  %s4792_s25 = sphi %s4890_s25, %s6166_s25  }
   0x6   : > { %6148 = sst [smem:[#allocation12_spill]] %s4800_s27  ;;  %s3755_s30 = sadd.s32 4294967294, %s4804_s28  }
   0x7   : > { %s4915_s14 = sadd.s32 1, %s4804_s28   ;;  %s36_s15 = sadd.s32 1, %s4800_s27 }
   0x8   : > { %6149 = sst [smem:[#allocation13_spill]] %s4915_s14  ;;  %s33_s16 = ssub.s32 %s4804_s28, %s4915_s14 }
   0x9   : > { %p43_p0 = scmp.ne.s32.totalorder %s4800_s27, %s4796_s26  ;;  %p34_p1 = scmp.eq.s32.totalorder %s33_s16, 0 }
   0xa   : > { %p44_p2 = scmp.eq.s32.totalorder %s4804_s28, 0  ;;  %p49_p3 = scmp.ne.s32.totalorder %s4796_s26, %s4792_s25 }
   0xb   : > { %p50_p4 = scmp.eq.s32.totalorder %s4911_s29, 0  ;;  %p325_p7 = scmp.eq.s32.totalorder %s4911_s29, 1 }
   0xc   : > { %s4927_s17 = scalar_select %p34_p1, %s4800_s27, %s36_s15  }
   0xd   : > { %p4929_p5 = por %p44_p2, %p43_p0  ;;  %p4933_p6 = por %p50_p4, %p49_p3 }
   0xe   : > { %6150 = sst [smem:[#allocation14_spill]] %s4927_s17  ;;  %p331_p8 = scmp.eq.s32.totalorder %s3755_s30, 1 }
   0xf   : > { %p3946_p10 = scmp.lt.s32.totalorder %s4804_s28, 2  ;;  %p4940_p11 = por %p325_p7, %p43_p0 }
  0x10   : > { %p4944_p12 = por %p331_p8, %p49_p3  ;;  %s387_s22 = sand.u32 1, %s4800_s27  }
  0x11   : > { %s6153_s20 = scalar_select %p4940_p11, 1, 0 }
  0x12   : > { %s6154_s21 = scalar_select %p4944_p12, 1, 0 }
  0x13   : > { %s3840_s23 = sshll.u32 %s4804_s28, 12  ;;  %s3758_s24 = sshll.u32 %s387_s22, 8 }
  0x14   : > { %s4953_s17 = scalar_lea.hbm %s6122_s0, %s3840_s23  ;;  %s391_s30 = scalar_lea.vmem [#allocation5], %s3758_s24 }
  0x15   : > { %s398_s14 = sshll.u32 %s391_s30, 4  ;;  %p4957_p13 = pnand %p3946_p10, %p4929_p5  ;;  %s4961_s14 = int_to_ptr.vmem [resolvable:$true] %s398_s14 }
  0x16   : > { %s4963_s27 = scalar_lea.sflag [#allocation6], %s387_s22  ;;  %s4708_s15 = scalar_lea.hbm %s4953_s17, 4096 }
  0x17   : > { %p4709_p0 = scmp.ne.s32.totalorder %s4953_s17, %s4708_s15  ;;  %p4710_p1 = pneg %p4957_p13 }
  0x18   : > { %s4713_s24 = scalar_lea.hbm %s6122_s0, 8192  ;;  %p4714_p4 = scmp.lt.u32.totalorder %s4953_s17, %s6122_s0 }
  0x19   : > { %p4711_p2 = pnand %p4710_p1, %p4709_p0  ;;  %p4715_p5 = scmp.lt.u32.totalorder %s4713_s24, %s4708_s15 }
  0x1a   : > { %p4717_p8 = scmp.lt.u32.totalorder %s4708_s15, %s4953_s17 }
  0x1b   : > { %p4712_p3 = pneg %p4711_p2  ;;  %p4716_p7 = por %p4715_p5, %p4714_p4 }
  0x1d   : > { %p4718_p10 = por %p4717_p8, %p4716_p7 }
  0x1f   : > { %p4719_p9 = pnand %p4718_p10, %p4712_p3 }
  0x21   : > { %4722 = shalt.err (!%p4719_p9)
}
  0x22   : > { %s4723_s22 = scalar_lea.vmem %s4961_s14, 4096  ;;  %s4806_s23 = smov [#allocation5]  }
  0x23   : > { %p4724_p0 = scmp.ne.s32.totalorder %s4961_s14, %s4723_s22  ;;  %s4728_s18 = sshll.u32 %s4806_s23, 4  ;;  %s4729_s18 = int_to_ptr.vmem [resolvable:$false] %s4728_s18 }
  0x24   : > { %s4730_s16 = scalar_lea.vmem %s4729_s18, 8192  ;;  %p4731_p11 = scmp.lt.s32.totalorder %s4961_s14, %s4729_s18 }
  0x25   : > { %p4726_p2 = pnand %p4724_p0, %p4710_p1  ;;  %p4732_p4 = scmp.lt.s32.totalorder %s4730_s16, %s4723_s22 }
  0x27   : > { %p4727_p12 = pneg %p4726_p2  ;;  %p4733_p5 = por %p4732_p4, %p4731_p11 }
  0x29   : > { %p4734_p7 = pnand %p4733_p5, %p4727_p12 }
  0x2b   : > { %4737 = shalt.err (!%p4734_p7)
}
  0x2c   : > { %s4807_s15 = smov 128   ;;  %s4808_s24 = smov 8  }
  0x2d   : > { %3941 = dma.hbm_to_vmem [thread:$0]  (!%p4957_p13), %s4953_s17, 4096, %s4961_s14, %s4963_s27, %s4807_s15, %s4807_s15, %s4808_s24  }
  0x2e   : > { %p3761_p9 = scmp.ge.s32.totalorder %s4804_s28, 1  ;;  %p406_p1 = scmp.lt.s32.totalorder %s4804_s28, 3 }
  0x30   : > { %p407_p3 = pnand %p3761_p9, %p406_p1 }
  0x31   : > { %s4994_s30 = sand.u32 (!%p407_p3), 1, %s4796_s26  }
  0x32   : > { %410 = sbr.rel (%p407_p3) target bundleno = 1652 (0x674), region = 72  ;;  %s3762_s22 = sshll.u32 (!%p407_p3), %s4994_s30, 8 }
  0x33   : > { %s413_s23 = scalar_lea.sflag (!%p407_p3), [#allocation6], %s4994_s30  ;;  %s4998_s18 = scalar_lea.vmem (!%p407_p3), [#allocation5], %s3762_s22 }
  0x39   : > { %4783 = dma.done.wait (%p4933_p6), %s413_s23, 4096  }
  0x3a   : > { %4785 = vsyncadd (%p4933_p6), %s413_s23, 4294963200  ;;  %vm1862_vm0 = vcmask 261120   ;;  %vm571_vm1 = vcmask 130048   ;;  %vm606_vm2 = vcmask 123904   ;;  %v4809_v0 = vmov 0.0   ;;  %v460_v2 = vld [vmem:[%s4998_s18] sm:$0xff] }
  0x3b   : > { %2509 = vst.msk [vmem:[#allocation3] sm:$0xff] %vm1862_vm0, %v4809_v0  ;;  %2510 = vst.msk [vmem:[#allocation3 + $0x8] sm:$0xff] %vm1862_vm0, %v4809_v0  ;;  %vm612_vm3 = vcmask 122880   ;;  %v4810_v1 = vmov 0   ;;  %v461_v3 = vld [vmem:[%s4998_s18 + $0x8] sm:$0xff]  ;;  %v462_v13 = vld [vmem:[%s4998_s18 + $0x10] sm:$0xff] }
  0x3c   : > { %604 = vst.msk [vmem:[#allocation2] sm:$0xff] %vm571_vm1, %v4809_v0  ;;  %605 = vst.msk [vmem:[#allocation2 + $0x8] sm:$0xff] %vm571_vm1, %v4809_v0  ;;  %2212 = vmatprep.subr.bf16.mxu0 %v4810_v1  ;;  %v5088_v4 = vld [vmem:[%s6123_s1] ss:$0 sm:$0xff]  ;;  %v463_v16 = vld [vmem:[%s4998_s18 + $0x18] sm:$0xff]  ;;  %s4811_s19 = smov 16  }
  0x3d   : > { %607 = vst.msk [vmem:[#allocation2 + $0x10] sm:$0x3] %vm606_vm2, %v4809_v0  ;;  %611 = vst.msk [vmem:[#allocation2 + $0x1a8] sm:$0x3] %vm606_vm2, %v4809_v0  ;;  %v499_v8 = vmul.f32 %v5088_v4, %v460_v2  ;;  %v500_v9 = vmul.f32 %v5088_v4, %v461_v3  ;;  %v5095_v12 = vld [vmem:[%s6124_s2] ss:$0 sm:$0xff]  ;;  %v501_v17 = vmul.f32 %v5088_v4, %v462_v13 }
  0x3e   : > { %609 = vst.msk [vmem:[#allocation2 + $0x198] sm:$0xff] %vm571_vm1, %v4809_v0  ;;  %610 = vst.msk [vmem:[#allocation2 + $0x1a0] sm:$0xff] %vm571_vm1, %v4809_v0  ;;  %v464_v18 = vld [vmem:[%s4998_s18 + $0x20] sm:$0xff]  ;;  %v465_v19 = vld [vmem:[%s4998_s18 + $0x28] sm:$0xff]  ;;  %v502_v21 = vmul.f32 %v5088_v4, %v463_v16  ;;  %s6145_s16 = smov 32   ;;  %s4813_s14 = smov 48  }
  0x3f   : > { %613 = vst.msk [vmem:[#allocation2 + $0x18] sm:$0x1] %vm612_vm3, %v4809_v0  ;;  %614 = vst.msk [vmem:[#allocation2 + $0x30] sm:$0x1] %vm612_vm3, %v4809_v0  ;;  %v538_v14 = vadd.f32 %v5095_v12, %v499_v8  ;;  %v539_v15 = vadd.f32 %v5095_v12, %v500_v9  ;;  %v503_v22 = vmul.f32 %v5088_v4, %v464_v18  ;;  %v466_v24 = vld [vmem:[%s4998_s18 + $0x30] sm:$0xff]  ;;  %v467_v25 = vld [vmem:[%s4998_s18 + $0x38] sm:$0xff] }
  0x40   : > { %615 = vst.msk [vmem:[#allocation2 + $0x48] sm:$0x1] %vm612_vm3, %v4809_v0  ;;  %616 = vst.msk [vmem:[#allocation2 + $0x60] sm:$0x1] %vm612_vm3, %v4809_v0  ;;  %v504_v23 = vmul.f32 %v5088_v4, %v465_v19  ;;  %v468_v26 = vld [vmem:[%s4998_s18 + $0x40] sm:$0xff]  ;;  %v540_v27 = vadd.f32 %v5095_v12, %v501_v17  ;;  %v505_v28 = vmul.f32 %v5088_v4, %v466_v24  ;;  %v469_v30 = vld [vmem:[%s4998_s18 + $0x48] sm:$0xff] }
  0x41   : > { %617 = vst.msk [vmem:[#allocation2 + $0x78] sm:$0x1] %vm612_vm3, %v4809_v0  ;;  %618 = vst.msk [vmem:[#allocation2 + $0x90] sm:$0x1] %vm612_vm3, %v4809_v0  ;;  %v506_v29 = vmul.f32 %v5088_v4, %v467_v25  ;;  %v507_v31 = vmul.f32 %v5088_v4, %v468_v26  ;;  %v470_v32 = vld [vmem:[%s4998_s18 + $0x50] sm:$0xff]  ;;  %v471_v33 = vld [vmem:[%s4998_s18 + $0x58] sm:$0xff]  ;;  %v541_v34 = vadd.f32 %v5095_v12, %v502_v21 }
  0x42   : > { %619 = vst.msk [vmem:[#allocation2 + $0xa8] sm:$0x1] %vm612_vm3, %v4809_v0  ;;  %620 = vst.msk [vmem:[#allocation2 + $0xc0] sm:$0x1] %vm612_vm3, %v4809_v0  ;;  %v542_v35 = vadd.f32 %v5095_v12, %v503_v22  ;;  %v543_v36 = vadd.f32 %v5095_v12, %v504_v23  ;;  %v508_v37 = vmul.f32 %v5088_v4, %v469_v30  ;;  %v472_v38 = vld [vmem:[%s4998_s18 + $0x60] sm:$0xff]  ;;  %v473_v39 = vld [vmem:[%s4998_s18 + $0x68] sm:$0xff] }
  0x43   : > { %621 = vst.msk [vmem:[#allocation2 + $0xd8] sm:$0x1] %vm612_vm3, %v4809_v0  ;;  %622 = vst.msk [vmem:[#allocation2 + $0xf0] sm:$0x1] %vm612_vm3, %v4809_v0  ;;  %v677_v5 = vld [vmem:[#allocation2 + $0x1] sm:$0xff]  ;;  %v474_v40 = vld [vmem:[%s4998_s18 + $0x70] sm:$0xff]  ;;  %v544_v41 = vadd.f32 %v5095_v12, %v505_v28  ;;  %v545_v42 = vadd.f32 %v5095_v12, %v506_v29  ;;  %v546_v43 = vadd.f32 %v5095_v12, %v507_v31 }
  0x44   : > { %623 = vst.msk [vmem:[#allocation2 + $0x108] sm:$0x1] %vm612_vm3, %v4809_v0  ;;  %624 = vst.msk [vmem:[#allocation2 + $0x120] sm:$0x1] %vm612_vm3, %v4809_v0  ;;  %v678_v6 = vld [vmem:[#allocation2 + $0x9] sm:$0xff]  ;;  %v509_v44 = vmul.f32 %v5088_v4, %v470_v32  ;;  %v475_v45 = vld [vmem:[%s4998_s18 + $0x78] sm:$0xff]  ;;  %v547_v46 = vadd.f32 %v5095_v12, %v508_v37  ;;  %v510_v47 = vmul.f32 %v5088_v4, %v471_v33 }
  0x45   : > { %625 = vst.msk [vmem:[#allocation2 + $0x138] sm:$0x1] %vm612_vm3, %v4809_v0  ;;  %626 = vst.msk [vmem:[#allocation2 + $0x150] sm:$0x1] %vm612_vm3, %v4809_v0  ;;  %v709_v7 = vld [vmem:[#allocation2 + $0x2] sm:$0xff]  ;;  %v3992_v10 = vpack.i.bf16 %v678_v6, %v677_v5  ;;  %v710_v11 = vld [vmem:[#allocation2 + $0xa] sm:$0xff]  ;;  %v511_v48 = vmul.f32 %v5088_v4, %v472_v38  ;;  %v512_v49 = vmul.f32 %v5088_v4, %v473_v39 }
  0x46   : > { %627 = vst.msk [vmem:[#allocation2 + $0x168] sm:$0x1] %vm612_vm3, %v4809_v0  ;;  %628 = vst.msk [vmem:[#allocation2 + $0x180] sm:$0x1] %vm612_vm3, %v4809_v0  ;;  %v3997_v20 = vpack.i.bf16 %v710_v11, %v709_v7  ;;  %v4672_v50 = vld [vmem:[%s6125_s3] sm:$0xff]   ;;  %v548_v51 = vadd.f32 %v5095_v12, %v509_v44  ;;  %v513_v52 = vmul.f32 %v5088_v4, %v474_v40  ;;  %v4673_v57 = vld [vmem:[%s6125_s3 + $0x8] sm:$0xff]  }
  0x47   : > { %629 = vst.msk [vmem:[#allocation2 + $0x29] sm:$0x1] %vm612_vm3, %v4809_v0  ;;  %630 = vst.msk [vmem:[#allocation2 + $0x41] sm:$0x1] %vm612_vm3, %v4809_v0  ;;  %3993 = vrot.lane.b32.xlu0 %v3992_v10, %s4811_s19  ;;  %v514_v53 = vmul.f32 %v5088_v4, %v475_v45  ;;  %v549_v54 = vadd.f32 %v5095_v12, %v510_v47  ;;  %v550_v55 = vadd.f32 %v5095_v12, %v511_v48  ;;  %v476_v58 = vld [vmem:[%s4998_s18 + $0x80] sm:$0xff]  ;;  %v477_v59 = vld [vmem:[%s4998_s18 + $0x88] sm:$0xff] }
  0x48   : > { %631 = vst.msk [vmem:[#allocation2 + $0x59] sm:$0x1] %vm612_vm3, %v4809_v0  ;;  %632 = vst.msk [vmem:[#allocation2 + $0x71] sm:$0x1] %vm612_vm3, %v4809_v0  ;;  %v551_v56 = vadd.f32 %v5095_v12, %v512_v49  ;;  %2213 = vmatpush1.bf16.msra.mxu0 %v4672_v50  ;;  %v552_v60 = vadd.f32 %v5095_v12, %v513_v52  ;;  %v515_v62 = vmul.f32 %v5088_v4, %v476_v58  ;;  %s4814_s17 = smov 80   ;;  %v4675_v24 = vld [vmem:[%s6125_s3 + $0x18] sm:$0xff]  }
  0x49   : > { %633 = vst.msk [vmem:[#allocation2 + $0x89] sm:$0x1] %vm612_vm3, %v4809_v0  ;;  %634 = vst.msk [vmem:[#allocation2 + $0xa1] sm:$0x1] %vm612_vm3, %v4809_v0  ;;  %v553_v61 = vadd.f32 %v5095_v12, %v514_v53  ;;  %2214 = vmatprep.subr.bf16.mxu0 %v4810_v1  ;;  %v516_v63 = vmul.f32 %v5088_v4, %v477_v59  ;;  %s6141_s22 = smov 64   ;;  %s4816_s23 = smov 112  }
  0x4a   : > { %635 = vst.msk [vmem:[#allocation2 + $0xb9] sm:$0x1] %vm612_vm3, %v4809_v0  ;;  %636 = vst.msk [vmem:[#allocation2 + $0xd1] sm:$0x1] %vm612_vm3, %v4809_v0  ;;  %v554_v10 = vadd.f32 %v5095_v12, %v515_v62  ;;  %s6143_s25 = smov 96   ;;  %v4676_v32 = vld [vmem:[%s6125_s3 + $0x20] sm:$0xff]  }
  0x4b   : > { %637 = vst.msk [vmem:[#allocation2 + $0xe9] sm:$0x1] %vm612_vm3, %v4809_v0  ;;  %638 = vst.msk [vmem:[#allocation2 + $0x101] sm:$0x1] %vm612_vm3, %v4809_v0  ;;  %3998 = vrot.lane.b32.xlu0 %v3997_v20, %s6145_s16  ;;  %v555_v11 = vadd.f32 %v5095_v12, %v516_v63  ;;  %v478_v37 = vld [vmem:[%s4998_s18 + $0x90] sm:$0xff]  ;;  %v479_v38 = vld [vmem:[%s4998_s18 + $0x98] sm:$0xff] }
  0x4c   : > { %639 = vst.msk [vmem:[#allocation2 + $0x119] sm:$0x1] %vm612_vm3, %v4809_v0  ;;  %640 = vst.msk [vmem:[#allocation2 + $0x131] sm:$0x1] %vm612_vm3, %v4809_v0  ;;  %2215 = vmatpush1.bf16.msra.mxu0 %v4673_v57  ;;  %v517_v39 = vmul.f32 %v5088_v4, %v478_v37  ;;  %v480_v44 = vld [vmem:[%s4998_s18 + $0xa0] sm:$0xff]  ;;  %v481_v45 = vld [vmem:[%s4998_s18 + $0xa8] sm:$0xff] }
  0x4d   : > { %641 = vst.msk [vmem:[#allocation2 + $0x149] sm:$0x1] %vm612_vm3, %v4809_v0  ;;  %642 = vst.msk [vmem:[#allocation2 + $0x161] sm:$0x1] %vm612_vm3, %v4809_v0  ;;  %2216 = vmatprep.subr.bf16.mxu0 %v4810_v1  ;;  %v519_v47 = vmul.f32 %v5088_v4, %v480_v44  ;;  %v520_v48 = vmul.f32 %v5088_v4, %v481_v45  ;;  %v482_v49 = vld [vmem:[%s4998_s18 + $0xb0] sm:$0xff]  ;;  %v483_v50 = vld [vmem:[%s4998_s18 + $0xb8] sm:$0xff] }
  0x4e   : > { %643 = vst.msk [vmem:[#allocation2 + $0x179] sm:$0x1] %vm612_vm3, %v4809_v0  ;;  %644 = vst.msk [vmem:[#allocation2 + $0x191] sm:$0x1] %vm612_vm3, %v4809_v0  ;;  %v485_v57 = vld [vmem:[%s4998_s18 + $0xc8] sm:$0xff]  ;;  %s6156_s15 = smov 64  }
  0x4f   : > { %572 = vst.msk [vmem:[#allocation2 + $0x19] sm:$0xff] %vm571_vm1, %v538_v14  ;;  %573 = vst.msk [vmem:[#allocation2 + $0x21] sm:$0xff] %vm571_vm1, %v539_v15  ;;  %v4674_v15 = vld [vmem:[%s6125_s3 + $0x10] sm:$0xff]   ;;  %v558_v62 = vadd.f32 %v5095_v12, %v519_v47  ;;  %v559_v63 = vadd.f32 %v5095_v12, %v520_v48  ;;  %vm1895_vm4 = vcmask 392192   ;;  %vm1928_vm5 = vcmask 523264   ;;  %p6159_p11 = scmp.ne.s32.totalorder %s6153_s20, 0 }
  0x50   : > { %574 = vst.msk [vmem:[#allocation2 + $0x31] sm:$0xff] %vm571_vm1, %v540_v27  ;;  %575 = vst.msk [vmem:[#allocation2 + $0x39] sm:$0xff] %vm571_vm1, %v541_v34  ;;  %2217 = vmatpush1.bf16.msra.mxu0 %v4674_v15  ;;  %vm1961_vm6 = vcmask 654336   ;;  %vm1994_vm7 = vcmask 785408   ;;  %vm2027_vm8 = vcmask 916480   ;;  %vm2517_vm9 = vcmask 253952  }
  0x51   : > { %576 = vst.msk [vmem:[#allocation2 + $0x49] sm:$0xff] %vm571_vm1, %v542_v35  ;;  %577 = vst.msk [vmem:[#allocation2 + $0x51] sm:$0xff] %vm571_vm1, %v543_v36  ;;  %2218 = vmatprep.subr.bf16.mxu0 %v4810_v1  ;;  %v4677_v36 = vld [vmem:[%s6125_s3 + $0x28] sm:$0xff]   ;;  %vm2511_vm10 = vcmask 254976   ;;  %s4819_s27 = smov [#allocation8]  }
  0x52   : > { %578 = vst.msk [vmem:[#allocation2 + $0x61] sm:$0xff] %vm571_vm1, %v544_v41  ;;  %579 = vst.msk [vmem:[#allocation2 + $0x69] sm:$0xff] %vm571_vm1, %v545_v42  ;;  %v518_v41 = vmul.f32 %v5088_v4, %v479_v38  ;;  %v4678_v42 = vld [vmem:[%s6125_s3 + $0x30] sm:$0xff]  }
  0x53   : > { %580 = vst.msk [vmem:[#allocation2 + $0x79] sm:$0xff] %vm571_vm1, %v546_v43  ;;  %581 = vst.msk [vmem:[#allocation2 + $0x81] sm:$0xff] %vm571_vm1, %v547_v46  ;;  %v556_v43 = vadd.f32 %v5095_v12, %v517_v39 }
  0x54   : > { %582 = vst.msk [vmem:[#allocation2 + $0x91] sm:$0xff] %vm571_vm1, %v548_v51  ;;  %583 = vst.msk [vmem:[#allocation2 + $0x99] sm:$0xff] %vm571_vm1, %v549_v54  ;;  %2219 = vmatpush1.bf16.msra.mxu0 %v4675_v24  ;;  %v557_v46 = vadd.f32 %v5095_v12, %v518_v41  ;;  %v484_v51 = vld [vmem:[%s4998_s18 + $0xc0] sm:$0xff]  ;;  %v4679_v54 = vld [vmem:[%s6125_s3 + $0x38] sm:$0xff]  }
  0x55   : > { %584 = vst.msk [vmem:[#allocation2 + $0xa9] sm:$0xff] %vm571_vm1, %v550_v55  ;;  %585 = vst.msk [vmem:[#allocation2 + $0xb1] sm:$0xff] %vm571_vm1, %v551_v56  ;;  %2220 = vmatprep.subr.bf16.mxu0 %v4810_v1  ;;  %v521_v55 = vmul.f32 %v5088_v4, %v482_v49  ;;  %v522_v56 = vmul.f32 %v5088_v4, %v483_v50  ;;  %v523_v58 = vmul.f32 %v5088_v4, %v484_v51  ;;  %v490_v51 = vld [vmem:[%s4998_s18 + $0xf0] sm:$0xff] }
  0x56   : > { %v5165_v2 = vld [vmem:[#allocation2 + $0x18] sm:$0xff]  ;;  %v5167_v3 = vld [vmem:[#allocation2 + $0x20] sm:$0xff]  ;;  %586 = vst.msk [vmem:[#allocation2 + $0xc1] sm:$0xff] %vm571_vm1, %v552_v60  ;;  %587 = vst.msk [vmem:[#allocation2 + $0xc9] sm:$0xff] %vm571_vm1, %v553_v61 }
  0x57   : > { %v773_v5 = vld [vmem:[#allocation2 + $0x19] sm:$0xff]  ;;  %v4002_v6 = vpack.i.bf16 %v5167_v3, %v5165_v2  ;;  %v774_v7 = vld [vmem:[#allocation2 + $0x21] sm:$0xff]  ;;  %v870_v14 = vld [vmem:[#allocation2 + $0x31] sm:$0xff]  ;;  %588 = vst.msk [vmem:[#allocation2 + $0xd9] sm:$0xff] %vm571_vm1, %v554_v10 }
  0x58   : > { %v805_v8 = vld [vmem:[#allocation2 + $0x1a] sm:$0xff]  ;;  %v806_v9 = vld [vmem:[#allocation2 + $0x22] sm:$0xff]  ;;  %v4007_v16 = vpack.i.bf16 %v774_v7, %v773_v5  ;;  %v5182_v17 = vld [vmem:[#allocation2 + $0x30] sm:$0xff]  ;;  %589 = vst.msk [vmem:[#allocation2 + $0xe1] sm:$0xff] %vm571_vm1, %v555_v11  ;;  %2221 = vmatpush1.bf16.msra.mxu0 %v4676_v32  ;;  %v524_v5 = vmul.f32 %v5088_v4, %v485_v57  ;;  %v561_v7 = vadd.f32 %v5095_v12, %v522_v56 }
  0x59   : > { %v4012_v13 = vpack.i.bf16 %v806_v9, %v805_v8  ;;  %4003 = vrot.lane.b32.xlu1 %v4002_v6, %s4813_s14  ;;  %v871_v18 = vld [vmem:[#allocation2 + $0x39] sm:$0xff]  ;;  %v5202_v26 = vld [vmem:[#allocation2 + $0x48] sm:$0xff]  ;;  %v5204_v27 = vld [vmem:[#allocation2 + $0x50] sm:$0xff]  ;;  %2222 = vmatprep.subr.bf16.mxu0 %v4810_v1  ;;  %590 = vst.msk [vmem:[#allocation2 + $0xf1] sm:$0xff] %vm571_vm1, %v556_v43  ;;  %v560_v6 = vadd.f32 %v5095_v12, %v521_v55 }
  0x5a   : > { %v5188_v19 = vld [vmem:[#allocation2 + $0x38] sm:$0xff]  ;;  %v4022_v20 = vpack.i.bf16 %v871_v18, %v870_v14  ;;  %v5207_v28 = vld [vmem:[#allocation2 + $0x4a] sm:$0xff]  ;;  %v4052_v30 = vpack.i.bf16 %v5204_v27, %v5202_v26  ;;  %v5246_v52 = vld [vmem:[#allocation2 + $0x62] sm:$0xff]  ;;  %591 = vst.msk [vmem:[#allocation2 + $0xf9] sm:$0xff] %vm571_vm1, %v557_v46  ;;  %v562_v8 = vadd.f32 %v5095_v12, %v523_v58  ;;  %v563_v10 = vadd.f32 %v5095_v12, %v524_v5 }
  0x5b   : > { %4013 = vrot.lane.b32.xlu0 %v4012_v13, %s4814_s17  ;;  %v807_v21 = vld [vmem:[#allocation2 + $0x32] sm:$0xff]  ;;  %v808_v22 = vld [vmem:[#allocation2 + $0x3a] sm:$0xff]  ;;  %v4017_v25 = vpack.i.bf16 %v5188_v19, %v5182_v17  ;;  %v872_v34 = vld [vmem:[#allocation2 + $0x49] sm:$0xff]  ;;  %592 = vst.msk [vmem:[#allocation2 + $0x109] sm:$0xff] %vm571_vm1, %v558_v62  ;;  %v529_v55 = vmul.f32 %v5088_v4, %v490_v51 }
  0x5c   : > { %v2061_v23 = vpack.c.bf16 %v808_v22, %v807_v21  ;;  %v5209_v29 = vld [vmem:[#allocation2 + $0x52] sm:$0xff]  ;;  %v4047_v33 = vpack.i.bf16 %v808_v22, %v807_v21  ;;  %2223 = vmatpush1.bf16.msra.mxu0 %v4677_v36  ;;  %v5248_v53 = vld [vmem:[#allocation2 + $0x6a] sm:$0xff]  ;;  %v874_v60 = vld [vmem:[#allocation2 + $0x61] sm:$0xff]  ;;  %593 = vst.msk [vmem:[#allocation2 + $0x111] sm:$0xff] %vm571_vm1, %v559_v63 }
  0x5d   : > { %4008 = vrot.lane.b32.xlu1 %v4007_v16, %s6141_s22  ;;  %v2063_v31 = vpack.c.bf16 %v5209_v29, %v5207_v28  ;;  %v873_v35 = vld [vmem:[#allocation2 + $0x51] sm:$0xff]  ;;  %2224 = vmatprep.subr.bf16.mxu0 %v4810_v1  ;;  %v4082_v59 = vpack.i.bf16 %v5209_v29, %v5207_v28  ;;  %v875_v61 = vld [vmem:[#allocation2 + $0x69] sm:$0xff]  ;;  %v2065_v9 = vpack.c.bf16 %v5248_v53, %v5246_v52  ;;  %v842_v11 = vld [vmem:[#allocation2 + $0x60] sm:$0xff] }
  0x5e   : > { %3775 = vmatprep.mubr.msk.bf16.mxu0 %vm571_vm1, %v2061_v23  ;;  %v5229_v40 = vpack.i.bf16 %v873_v35, %v872_v34  ;;  %v4680_v14 = vld [vmem:[%s6125_s3 + $0x40] sm:$0xff]   ;;  %594 = vst.msk [vmem:[#allocation2 + $0x121] sm:$0xff] %vm571_vm1, %v560_v6  ;;  %595 = vst.msk [vmem:[#allocation2 + $0x129] sm:$0xff] %vm571_vm1, %v561_v7  ;;  %v4092_v15 = vpack.i.bf16 %v875_v61, %v874_v60  ;;  %v844_v18 = vld [vmem:[#allocation2 + $0x78] sm:$0xff]  ;;  %v4117_v34 = vpack.i.bf16 %v5248_v53, %v5246_v52 }
  0x5f   : > { %4023 = vrot.lane.b32.xlu0 %v4022_v20, %s4816_s23  ;;  %596 = vst.msk [vmem:[#allocation2 + $0x139] sm:$0xff] %vm571_vm1, %v562_v8  ;;  %597 = vst.msk [vmem:[#allocation2 + $0x141] sm:$0xff] %vm571_vm1, %v563_v10  ;;  %v486_v21 = vld [vmem:[%s4998_s18 + $0xd0] sm:$0xff]  ;;  %v487_v22 = vld [vmem:[%s4998_s18 + $0xd8] sm:$0xff]  ;;  %v568_v57 = vadd.f32 %v5095_v12, %v529_v55 }
  0x60   : > { %2225 = vmatpush1.bf16.msra.mxu0 %v4678_v42  ;;  %v525_v23 = vmul.f32 %v5088_v4, %v486_v21  ;;  %v876_v32 = vld [vmem:[#allocation2 + $0x79] sm:$0xff]  ;;  %v489_v36 = vld [vmem:[%s4998_s18 + $0xe8] sm:$0xff]  ;;  %v878_v45 = vld [vmem:[#allocation2 + $0x91] sm:$0xff]  ;;  %2518 = vst.msk [vmem:[#allocation3 + $0x18] sm:$0x1] %vm2517_vm9, %v4809_v0 }
  0x61   : > { %4018 = vrot.lane.b32.xlu1 %v4017_v25, %s6143_s25  ;;  %2226 = vmatprep.subr.bf16.mxu0 %v4810_v1  ;;  %v488_v35 = vld [vmem:[%s4998_s18 + $0xe0] sm:$0xff]  ;;  %v528_v38 = vmul.f32 %v5088_v4, %v489_v36  ;;  %v846_v47 = vld [vmem:[#allocation2 + $0x90] sm:$0xff]  ;;  %v847_v48 = vld [vmem:[#allocation2 + $0x98] sm:$0xff]  ;;  %602 = vst.msk [vmem:[#allocation2 + $0x181] sm:$0xff] %vm571_vm1, %v568_v57 }
  0x62   : > { %v527_v37 = vmul.f32 %v5088_v4, %v488_v35  ;;  %v813_v42 = vld [vmem:[#allocation2 + $0x7a] sm:$0xff]  ;;  %v814_v43 = vld [vmem:[#allocation2 + $0x82] sm:$0xff]  ;;  %v4157_v50 = vpack.i.bf16 %v847_v48, %v846_v47  ;;  %v849_v60 = vld [vmem:[#allocation2 + $0xb0] sm:$0xff]  ;;  %2520 = vst.msk [vmem:[#allocation3 + $0x48] sm:$0x1] %vm2517_vm9, %v4809_v0 }
  0x63   : > { %4033 = vrot.lane.b32.xlu0 %v4012_v13, %s6145_s16  ;;  %v843_v13 = vld [vmem:[#allocation2 + $0x68] sm:$0xff]  ;;  %v567_v41 = vadd.f32 %v5095_v12, %v528_v38  ;;  %v4152_v44 = vpack.i.bf16 %v814_v43, %v813_v42  ;;  %v879_v46 = vld [vmem:[#allocation2 + $0x99] sm:$0xff]  ;;  %2519 = vst.msk [vmem:[#allocation3 + $0x30] sm:$0x1] %vm2517_vm9, %v4809_v0  ;;  %2521 = vst.msk [vmem:[#allocation3 + $0x60] sm:$0x1] %vm2517_vm9, %v4809_v0 }
  0x64   : > { %2227 = vmatpush1.bf16.msra.mxu0 %v4679_v54  ;;  %v4162_v49 = vpack.i.bf16 %v879_v46, %v878_v45  ;;  %v491_v54 = vld [vmem:[%s4998_s18 + $0xf8] sm:$0xff]  ;;  %v880_v5 = vld [vmem:[#allocation2 + $0xa9] sm:$0xff]  ;;  %v853_v21 = vld [vmem:[#allocation2 + $0xe0] sm:$0xff]  ;;  %2522 = vst.msk [vmem:[#allocation3 + $0x78] sm:$0x1] %vm2517_vm9, %v4809_v0 }
  0x65   : > { %4028 = vrot.lane.b32.xlu1 %v4007_v16, %s4811_s19  ;;  %2228 = vmatprep.subr.bf16.mxu0 %v4810_v1  ;;  %v4087_v16 = vpack.i.bf16 %v843_v13, %v842_v11  ;;  %v526_v1 = vmul.f32 %v5088_v4, %v487_v22  ;;  %601 = vst.msk [vmem:[#allocation2 + $0x171] sm:$0xff] %vm571_vm1, %v567_v41  ;;  %v815_v61 = vld [vmem:[#allocation2 + $0x92] sm:$0xff]  ;;  %v817_v7 = vld [vmem:[#allocation2 + $0xaa] sm:$0xff]  ;;  %v882_v11 = vld [vmem:[#allocation2 + $0xc1] sm:$0xff] }
  0x66   : > { %v530_v56 = vmul.f32 %v5088_v4, %v491_v54  ;;  %v816_v4 = vld [vmem:[#allocation2 + $0x9a] sm:$0xff]  ;;  %v818_v8 = vld [vmem:[#allocation2 + $0xb2] sm:$0xff]  ;;  %v883_v13 = vld [vmem:[#allocation2 + $0xc9] sm:$0xff]  ;;  %2523 = vst.msk [vmem:[#allocation3 + $0x90] sm:$0x1] %vm2517_vm9, %v4809_v0 }
  0x67   : > { %4043 = vrot.lane.b32.xlu0 %v4022_v20, %s6141_s22  ;;  %v4187_v63 = vpack.i.bf16 %v816_v4, %v815_v61  ;;  %v4222_v10 = vpack.i.bf16 %v818_v8, %v817_v7  ;;  %v819_v22 = vld [vmem:[#allocation2 + $0xc2] sm:$0xff]  ;;  %v887_v41 = vld [vmem:[#allocation2 + $0xf9] sm:$0xff]  ;;  %v854_v46 = vld [vmem:[#allocation2 + $0xf0] sm:$0xff]  ;;  %2524 = vst.msk [vmem:[#allocation3 + $0xa8] sm:$0x1] %vm2517_vm9, %v4809_v0  ;;  %s3625_s22 = scalar_lea.sflag [#allocation7], %s4994_s30 }
  0x68   : > { %2229 = vmatpush1.bf16.msra.mxu0 %v4680_v14  ;;  %v569_v58 = vadd.f32 %v5095_v12, %v530_v56  ;;  %v850_v14 = vld [vmem:[#allocation2 + $0xc0] sm:$0xff]  ;;  %v646_v42 = vld [vmem:[#allocation2 + $0x8] sm:$0xff]  ;;  %v855_v47 = vld [vmem:[#allocation2 + $0xf8] sm:$0xff]  ;;  %2525 = vst.msk [vmem:[#allocation3 + $0xc0] sm:$0x1] %vm2517_vm9, %v4809_v0 }
  0x69   : > { %4038 = vrot.lane.b32.xlu1 %v4017_v25, %s4813_s14  ;;  %v564_v25 = vadd.f32 %v5095_v12, %v525_v23  ;;  %v820_v23 = vld [vmem:[#allocation2 + $0xca] sm:$0xff]  ;;  %v822_v35 = vld [vmem:[#allocation2 + $0xe2] sm:$0xff]  ;;  %v4297_v57 = vpack.i.bf16 %v855_v47, %v854_v46  ;;  %2526 = vst.msk [vmem:[#allocation3 + $0xd8] sm:$0x1] %vm2517_vm9, %v4809_v0  ;;  %2527 = vst.msk [vmem:[#allocation3 + $0xf0] sm:$0x1] %vm2517_vm9, %v4809_v0 }
  0x6a   : > { %603 = vst.msk [vmem:[#allocation2 + $0x189] sm:$0xff] %vm571_vm1, %v569_v58  ;;  %v645_v43 = vld [vmem:[#allocation2] sm:$0xff]  ;;  %v825_v29 = vld [vmem:[#allocation2 + $0x10a] sm:$0xff] }
  0x6b   : > { %4053 = vrot.lane.b32.xlu0 %v4052_v30, %s6143_s25  ;;  %598 = vst.msk [vmem:[#allocation2 + $0x151] sm:$0xff] %vm571_vm1, %v564_v25  ;;  %v884_v25 = vld [vmem:[#allocation2 + $0xd9] sm:$0xff] }
  0x6c   : > { %2528 = vst.msk [vmem:[#allocation3 + $0x108] sm:$0x1] %vm2517_vm9, %v4809_v0  ;;  %2529 = vst.msk [vmem:[#allocation3 + $0x120] sm:$0x1] %vm2517_vm9, %v4809_v0 }
  0x6d   : > { %4048 = vrot.lane.b32.xlu1 %v4047_v33, %s4814_s17  ;;  %2530 = vst.msk [vmem:[#allocation3 + $0x138] sm:$0x1] %vm2517_vm9, %v4809_v0  ;;  %2531 = vst.msk [vmem:[#allocation3 + $0x150] sm:$0x1] %vm2517_vm9, %v4809_v0 }
  0x6e   : > { %2532 = vst.msk [vmem:[#allocation3 + $0x168] sm:$0x1] %vm2517_vm9, %v4809_v0  ;;  %2533 = vst.msk [vmem:[#allocation3 + $0x180] sm:$0x1] %vm2517_vm9, %v4809_v0 }
  0x6f   : > { %4063 = vrot.lane.b32.xlu0 %v4022_v20, %s4811_s19  ;;  %v845_v20 = vld [vmem:[#allocation2 + $0x80] sm:$0xff]  ;;  %2512 = vst.msk [vmem:[#allocation3 + $0x10] sm:$0x3] %vm2511_vm10, %v4809_v0 }
  0x70   : > { %v4122_v24 = vpack.i.bf16 %v845_v20, %v844_v18  ;;  %v852_v20 = vld [vmem:[#allocation2 + $0xd8] sm:$0xff] }
  0x71   : > { %4058 = vrot.lane.b32.xlu1 %v5229_v40, %s4816_s23 }
  0x73   : > { %4073 = vrot.lane.b32.xlu0 %v4052_v30, %s4813_s14  ;;  %v565_v30 = vadd.f32 %v5095_v12, %v526_v1  ;;  %v4262_v1 = vpack.i.bf16 %v853_v21, %v852_v20 }
  0x75   : > { %4068 = vrot.lane.b32.xlu1 %v4047_v33, %s6145_s16  ;;  %v877_v33 = vld [vmem:[#allocation2 + $0x81] sm:$0xff]  ;;  %599 = vst.msk [vmem:[#allocation2 + $0x159] sm:$0xff] %vm571_vm1, %v565_v30 }
  0x76   : > { %v4127_v39 = vpack.i.bf16 %v877_v33, %v876_v32  ;;  %v885_v30 = vld [vmem:[#allocation2 + $0xe1] sm:$0xff] }
  0x77   : > { %4083 = vrot.lane.b32.xlu0 %v4082_v59, %s4814_s17  ;;  %v4267_v32 = vpack.i.bf16 %v885_v30, %v884_v25  ;;  %v824_v25 = vld [vmem:[#allocation2 + $0xfa] sm:$0xff] }
  0x79   : > { %4078 = vrot.lane.b32.xlu1 %v5229_v40, %s6156_s15 }
  0x7b   : > { %4093 = vrot.lane.b32.xlu0 %v4092_v15, %s4816_s23 }
  0x7d   : > { %4088 = vrot.lane.b32.xlu1 %v4087_v16, %s6143_s25 }
  0x7f   : > { %4103 = vrot.lane.b32.xlu0 %v4082_v59, %s6145_s16  ;;  %v848_v59 = vld [vmem:[#allocation2 + $0xa8] sm:$0xff] }
  0x80   : > { %v4192_v62 = vpack.i.bf16 %v849_v60, %v848_v59 }
  0x81   : > { %4098 = vrot.lane.b32.xlu1 %v5229_v40, %s4811_s19  ;;  %v566_v40 = vadd.f32 %v5095_v12, %v527_v37  ;;  %v881_v12 = vld [vmem:[#allocation2 + $0xb1] sm:$0xff] }
  0x82   : > { %v4197_v6 = vpack.i.bf16 %v881_v12, %v880_v5 }
  0x83   : > { %4113 = vrot.lane.b32.xlu0 %v4092_v15, %s6156_s15  ;;  %600 = vst.msk [vmem:[#allocation2 + $0x169] sm:$0xff] %vm571_vm1, %v566_v40  ;;  %v886_v40 = vld [vmem:[#allocation2 + $0xf1] sm:$0xff] }
  0x84   : > { %v5356_v48 = vpack.i.bf16 %v887_v41, %v886_v40 }
  0x85   : > { %4108 = vrot.lane.b32.xlu1 %v4087_v16, %s4813_s14  ;;  %v4232_v16 = vpack.i.bf16 %v883_v13, %v882_v11 }
  0x87   : > { %4123 = vrot.lane.b32.xlu0 %v4122_v24, %s6143_s25 }
  0x89   : > { %4118 = vrot.lane.b32.xlu1 %v4117_v34, %s4814_s17 }
  0x8b   : > { %4133 = vrot.lane.b32.xlu0 %v4092_v15, %s4811_s19  ;;  %v851_v15 = vld [vmem:[#allocation2 + $0xc8] sm:$0xff] }
  0x8c   : > { %v4227_v18 = vpack.i.bf16 %v851_v15, %v850_v14  ;;  %v856_v14 = vld [vmem:[#allocation2 + $0x108] sm:$0xff]  ;;  %v857_v15 = vld [vmem:[#allocation2 + $0x110] sm:$0xff] }
  0x8d   : > { %4128 = vrot.lane.b32.xlu1 %v4127_v39, %s4816_s23  ;;  %v4332_v30 = vpack.i.bf16 %v857_v15, %v856_v14 }
  0x8f   : > { %4143 = vrot.lane.b32.xlu0 %v4122_v24, %s4813_s14  ;;  %v4257_v24 = vpack.i.bf16 %v820_v23, %v819_v22 }
  0x91   : > { %4138 = vrot.lane.b32.xlu1 %v4117_v34, %s6145_s16  ;;  %v821_v34 = vld [vmem:[#allocation2 + $0xda] sm:$0xff] }
  0x92   : > { %v4292_v36 = vpack.i.bf16 %v822_v35, %v821_v34 }
  0x93   : > { %4153 = vrot.lane.b32.xlu0 %v4152_v44, %s4814_s17 }
  0x95   : > { %4148 = vrot.lane.b32.xlu1 %v4127_v39, %s6156_s15 }
  0x97   : > { %4163 = vrot.lane.b32.xlu0 %v4162_v49, %s4816_s23 }
  0x99   : > { %4158 = vrot.lane.b32.xlu1 %v4157_v50, %s6143_s25 }
  0x9b   : > { %4173 = vrot.lane.b32.xlu0 %v4152_v44, %s6145_s16 }
  0x9d   : > { %4168 = vrot.lane.b32.xlu1 %v4127_v39, %s4811_s19 }
  0x9f   : > { %4183 = vrot.lane.b32.xlu0 %v4162_v49, %s6156_s15 }
  0xa1   : > { %4178 = vrot.lane.b32.xlu1 %v4157_v50, %s4813_s14 }
  0xa3   : > { %4193 = vrot.lane.b32.xlu0 %v4192_v62, %s6143_s25 }
  0xa5   : > { %4188 = vrot.lane.b32.xlu1 %v4187_v63, %s4814_s17 }
  0xa7   : > { %4203 = vrot.lane.b32.xlu0 %v4162_v49, %s4811_s19 }
  0xa9   : > { %4198 = vrot.lane.b32.xlu1 %v4197_v6, %s4816_s23 }
  0xab   : > { %4213 = vrot.lane.b32.xlu0 %v4192_v62, %s4813_s14 }
  0xad   : > { %4208 = vrot.lane.b32.xlu1 %v4187_v63, %s6145_s16 }
  0xaf   : > { %4223 = vrot.lane.b32.xlu0 %v4222_v10, %s4814_s17 }
  0xb1   : > { %4218 = vrot.lane.b32.xlu1 %v4197_v6, %s6156_s15 }
  0xb3   : > { %4233 = vrot.lane.b32.xlu0 %v4232_v16, %s4816_s23 }
  0xb5   : > { %4228 = vrot.lane.b32.xlu1 %v4227_v18, %s6143_s25 }
  0xb7   : > { %4243 = vrot.lane.b32.xlu0 %v4222_v10, %s6145_s16 }
  0xb9   : > { %4238 = vrot.lane.b32.xlu1 %v4197_v6, %s4811_s19  ;;  %v3994_v33 = vpop.permute.xlu0 %3993 }
  0xba   : > { %v3996_v37 = vunpack.i.h.bf16 %v3994_v33  ;;  %v3995_v38 = vunpack.i.l.bf16 %v3994_v33 }
  0xbb   : > { %4253 = vrot.lane.b32.xlu0 %v4232_v16, %s6156_s15 }
  0xbc   : > { %v1831_v49 = vsel %vm571_vm1, %v646_v42, %v3996_v37  ;;  %v1830_v50 = vsel %vm571_vm1, %v645_v43, %v3995_v38  ;;  %v888_v42 = vld [vmem:[#allocation2 + $0x109] sm:$0xff]  ;;  %v889_v43 = vld [vmem:[#allocation2 + $0x111] sm:$0xff] }
  0xbd   : > { %4248 = vrot.lane.b32.xlu1 %v4227_v18, %s4813_s14  ;;  %v3999_v39 = vpop.permute.xlu0 %3998 }
  0xbe   : > { %v4001_v44 = vunpack.i.h.bf16 %v3999_v39  ;;  %v4000_v45 = vunpack.i.l.bf16 %v3999_v39 }
  0xbf   : > { %4263 = vrot.lane.b32.xlu0 %v4262_v1, %s6143_s25 }
  0xc0   : > { %v1863_v58 = vsel %vm1862_vm0, %v1830_v50, %v4000_v45  ;;  %v1864_v59 = vsel %vm1862_vm0, %v1831_v49, %v4001_v44 }
  0xc1   : > { %4258 = vrot.lane.b32.xlu1 %v4257_v24, %s4814_s17 }
  0xc3   : > { %4273 = vrot.lane.b32.xlu0 %v4232_v16, %s4811_s19 }
  0xc5   : > { %4268 = vrot.lane.b32.xlu1 %v4267_v32, %s4816_s23 }
  0xc7   : > { %4283 = vrot.lane.b32.xlu0 %v4262_v1, %s4813_s14 }
  0xc9   : > { %4278 = vrot.lane.b32.xlu1 %v4257_v24, %s6145_s16  ;;  %v823_v24 = vld [vmem:[#allocation2 + $0xf2] sm:$0xff] }
  0xca   : > { %v4327_v41 = vpack.i.bf16 %v824_v25, %v823_v24 }
  0xcb   : > { %4293 = vrot.lane.b32.xlu0 %v4292_v36, %s4814_s17  ;;  %v4004_v51 = vpop.permute.xlu1 %4003 }
  0xcc   : > { %v4006_v55 = vunpack.i.h.bf16 %v4004_v51  ;;  %v4005_v56 = vunpack.i.l.bf16 %v4004_v51  ;;  %v5390_v51 = vpack.i.bf16 %v889_v43, %v888_v42 }
  0xcd   : > { %v4014_v54 = vpop.permute.xlu0 %4013  ;;  %4288 = vrot.lane.b32.xlu1 %v4267_v32, %s6156_s15 }
  0xce   : > { %v1897_v63 = vsel %vm1895_vm4, %v1864_v59, %v4006_v55  ;;  %v1896_v5 = vsel %vm1895_vm4, %v1863_v58, %v4005_v56  ;;  %v4016_v12 = vunpack.i.h.bf16 %v4014_v54  ;;  %v4015_v6 = vunpack.i.l.bf16 %v4014_v54 }
  0xcf   : > { %4303 = vrot.lane.b32.xlu0 %v5356_v48, %s4816_s23  ;;  %v4009_v60 = vpop.permute.xlu1 %4008 }
  0xd0   : > { %v4011_v61 = vunpack.i.h.bf16 %v4009_v60  ;;  %v4010_v4 = vunpack.i.l.bf16 %v4009_v60 }
  0xd1   : > { %v4024_v62 = vpop.permute.xlu0 %4023  ;;  %4298 = vrot.lane.b32.xlu1 %v4297_v57, %s6143_s25 }
  0xd2   : > { %v1929_v7 = vsel %vm1928_vm5, %v1896_v5, %v4010_v4  ;;  %v1930_v8 = vsel %vm1928_vm5, %v1897_v63, %v4011_v61  ;;  %v4026_v11 = vunpack.i.h.bf16 %v4024_v62  ;;  %v4025_v13 = vunpack.i.l.bf16 %v4024_v62 }
  0xd3   : > { %4313 = vrot.lane.b32.xlu0 %v4292_v36, %s6145_s16  ;;  %v4019_v10 = vpop.permute.xlu1 %4018  ;;  %v1962_v21 = vsel %vm1961_vm6, %v1929_v7, %v4015_v6  ;;  %v1963_v22 = vsel %vm1961_vm6, %v1930_v8, %v4016_v12 }
  0xd4   : > { %v4021_v16 = vunpack.i.h.bf16 %v4019_v10  ;;  %v4020_v18 = vunpack.i.l.bf16 %v4019_v10  ;;  %v890_v10 = vld [vmem:[#allocation2 + $0x121] sm:$0xff] }
  0xd5   : > { %v4034_v20 = vpop.permute.xlu0 %4033  ;;  %4308 = vrot.lane.b32.xlu1 %v4267_v32, %s4811_s19 }
  0xd6   : > { %v1995_v23 = vsel %vm1994_vm7, %v1962_v21, %v4020_v18  ;;  %v1996_v1 = vsel %vm1994_vm7, %v1963_v22, %v4021_v16  ;;  %v4036_v32 = vunpack.i.h.bf16 %v4034_v20  ;;  %v4035_v40 = vunpack.i.l.bf16 %v4034_v20  ;;  %v858_v22 = vld [vmem:[#allocation2 + $0x120] sm:$0xff] }
  0xd7   : > { %4323 = vrot.lane.b32.xlu0 %v5356_v48, %s6156_s15  ;;  %v4029_v33 = vpop.permute.xlu1 %4028  ;;  %v2028_v34 = vsel %vm2027_vm8, %v1995_v23, %v4025_v13  ;;  %v2029_v35 = vsel %vm2027_vm8, %v1996_v1, %v4026_v11  ;;  %v891_v11 = vld [vmem:[#allocation2 + $0x129] sm:$0xff] }
  0xd8   : > { %v4031_v36 = vunpack.i.h.bf16 %v4029_v33  ;;  %v4030_v37 = vunpack.i.l.bf16 %v4029_v33  ;;  %v2060_v38 = vpack.c.bf16 %v2029_v35, %v2028_v34  ;;  %v859_v23 = vld [vmem:[#allocation2 + $0x128] sm:$0xff]  ;;  %v5412_v1 = vpack.i.bf16 %v891_v11, %v890_v10  ;;  %v892_v11 = vld [vmem:[#allocation2 + $0x139] sm:$0xff] }
  0xd9   : > { %v4044_v39 = vpop.permute.xlu0 %4043  ;;  %4318 = vrot.lane.b32.xlu1 %v4297_v57, %s4813_s14 }
  0xda   : > { %v1832_v44 = vsel %vm571_vm1, %v5165_v2, %v4030_v37  ;;  %v1833_v45 = vsel %vm571_vm1, %v5167_v3, %v4031_v36  ;;  %2245 = vmatmul.mubr.bf16.vlgmr.msra.gmra.mrb[0].mxu0 %v2060_v38  ;;  %v4046_v55 = vunpack.i.h.bf16 %v4044_v39  ;;  %v4045_v3 = vunpack.i.l.bf16 %v4044_v39 }
  0xdb   : > { %4333 = vrot.lane.b32.xlu0 %v4332_v30, %s6143_s25  ;;  %v4039_v46 = vpop.permute.xlu1 %4038  ;;  %3776 = vmatprep.mubr.msk.bf16.mxu0 %vm571_vm1, %v2063_v31  ;;  %v1865_v54 = vsel %vm1862_vm0, %v1832_v44, %v4035_v40  ;;  %v1866_v2 = vsel %vm1862_vm0, %v1833_v45, %v4036_v32  ;;  %v826_v31 = vld [vmem:[#allocation2 + $0x112] sm:$0xff]  ;;  %v4367_v39 = vpack.i.bf16 %v859_v23, %v858_v22 }
  0xdc   : > { %v4041_v47 = vunpack.i.h.bf16 %v4039_v46  ;;  %v4040_v49 = vunpack.i.l.bf16 %v4039_v46 }
  0xdd   : > { %v4054_v50 = vpop.permute.xlu0 %4053  ;;  %4328 = vrot.lane.b32.xlu1 %v4327_v41, %s4814_s17 }
  0xde   : > { %v1898_v56 = vsel %vm1895_vm4, %v1865_v54, %v4040_v49  ;;  %v1899_v57 = vsel %vm1895_vm4, %v1866_v2, %v4041_v47  ;;  %v4056_v62 = vunpack.i.h.bf16 %v4054_v50  ;;  %v4055_v63 = vunpack.i.l.bf16 %v4054_v50  ;;  %v860_v50 = vld [vmem:[#allocation2 + $0x138] sm:$0xff]  ;;  %v861_v54 = vld [vmem:[#allocation2 + $0x140] sm:$0xff] }
  0xdf   : > { %4343 = vrot.lane.b32.xlu0 %v5356_v48, %s4811_s19  ;;  %v4049_v28 = vpop.permute.xlu1 %4048  ;;  %v1931_v61 = vsel %vm1928_vm5, %v1898_v56, %v4045_v3  ;;  %v1932_v4 = vsel %vm1928_vm5, %v1899_v57, %v4046_v55  ;;  %v4362_v48 = vpack.i.bf16 %v826_v31, %v825_v29  ;;  %v908_v56 = vld [vmem:[#allocation2 + $0x7a] sm:$0xff]  ;;  %v909_v57 = vld [vmem:[#allocation2 + $0x82] sm:$0xff] }
  0xe0   : > { %v4051_v58 = vunpack.i.h.bf16 %v4049_v28  ;;  %v4050_v59 = vunpack.i.l.bf16 %v4049_v28 }
  0xe1   : > { %v4064_v60 = vpop.permute.xlu0 %4063  ;;  %4338 = vrot.lane.b32.xlu1 %v5390_v51, %s4816_s23 }
  0xe2   : > { %v1964_v5 = vsel %vm1961_vm6, %v1931_v61, %v4050_v59  ;;  %v1965_v12 = vsel %vm1961_vm6, %v1932_v4, %v4051_v58  ;;  %v4066_v7 = vunpack.i.h.bf16 %v4064_v60  ;;  %v4065_v8 = vunpack.i.l.bf16 %v4064_v60  ;;  %v5442_v59 = vld [vmem:[#allocation2 + $0x122] sm:$0xff]  ;;  %v5444_v60 = vld [vmem:[#allocation2 + $0x12a] sm:$0xff] }
  0xe3   : > { %4353 = vrot.lane.b32.xlu0 %v4332_v30, %s4813_s14  ;;  %v4059_v6 = vpop.permute.xlu1 %4058  ;;  %v1997_v16 = vsel %vm1994_vm7, %v1964_v5, %v4055_v63  ;;  %v1998_v18 = vsel %vm1994_vm7, %v1965_v12, %v4056_v62  ;;  %v4402_v61 = vpack.i.bf16 %v861_v54, %v860_v50  ;;  %v2067_v5 = vpack.c.bf16 %v909_v57, %v908_v56  ;;  %v654_v50 = vld [vmem:[#allocation2 + $0x68] sm:$0xff]  ;;  %v5485_v57 = vld [vmem:[#allocation2 + $0x150] sm:$0xff] }
  0xe4   : > { %v4061_v13 = vunpack.i.h.bf16 %v4059_v6  ;;  %v4060_v14 = vunpack.i.l.bf16 %v4059_v6  ;;  %v1835_v24 = vsel %vm571_vm1, %v5188_v19, %v4066_v7  ;;  %v1834_v25 = vsel %vm571_vm1, %v5182_v17, %v4065_v8 }
  0xe5   : > { %v4074_v15 = vpop.permute.xlu0 %4073  ;;  %4348 = vrot.lane.b32.xlu1 %v4327_v41, %s6145_s16  ;;  %v4397_v10 = vpack.i.bf16 %v5444_v60, %v5442_v59 }
  0xe6   : > { %v2030_v20 = vsel %vm2027_vm8, %v1997_v16, %v4060_v14  ;;  %v2031_v21 = vsel %vm2027_vm8, %v1998_v18, %v4061_v13  ;;  %v4076_v37 = vunpack.i.h.bf16 %v4074_v15  ;;  %v4075_v38 = vunpack.i.l.bf16 %v4074_v15  ;;  %v893_v13 = vld [vmem:[#allocation2 + $0x141] sm:$0xff] }
  0xe7   : > { %4363 = vrot.lane.b32.xlu0 %v4362_v48, %s4814_s17  ;;  %v4069_v30 = vpop.permute.xlu1 %4068  ;;  %v2062_v33 = vpack.c.bf16 %v2031_v21, %v2030_v20  ;;  %v5457_v22 = vpack.i.bf16 %v893_v13, %v892_v11 }
  0xe8   : > { %v4071_v34 = vunpack.i.h.bf16 %v4069_v30  ;;  %v4070_v35 = vunpack.i.l.bf16 %v4069_v30 }
  0xe9   : > { %v4084_v36 = vpop.permute.xlu0 %4083  ;;  %4358 = vrot.lane.b32.xlu1 %v5390_v51, %s6156_s15  ;;  %2253 = vmatmul.mubr.bf16.gmra.mrb[4].mxu0 %v2062_v33 }
  0xea   : > { %v1868_v32 = vsel %vm1862_vm0, %v1835_v24, %v4071_v34  ;;  %v1867_v40 = vsel %vm1862_vm0, %v1834_v25, %v4070_v35  ;;  %3777 = vmatprep.mubr.msk.bf16.mxu0 %vm571_vm1, %v2065_v9  ;;  %v4086_v45 = vunpack.i.h.bf16 %v4084_v36  ;;  %v4085_v46 = vunpack.i.l.bf16 %v4084_v36  ;;  %v5466_v34 = vld [vmem:[#allocation2 + $0x13a] sm:$0xff]  ;;  %v5468_v35 = vld [vmem:[#allocation2 + $0x142] sm:$0xff] }
  0xeb   : > { %4373 = vrot.lane.b32.xlu0 %v5412_v1, %s4816_s23  ;;  %v4079_v17 = vpop.permute.xlu1 %4078  ;;  %v1900_v43 = vsel %vm1895_vm4, %v1867_v40, %v4075_v38  ;;  %v1901_v44 = vsel %vm1895_vm4, %v1868_v32, %v4076_v37 }
  0xec   : > { %v4081_v19 = vunpack.i.h.bf16 %v4079_v17  ;;  %v4080_v41 = vunpack.i.l.bf16 %v4079_v17 }
  0xed   : > { %v4094_v42 = vpop.permute.xlu0 %4093  ;;  %4368 = vrot.lane.b32.xlu1 %v4367_v39, %s6143_s25 }
  0xee   : > { %v1933_v47 = vsel %vm1928_vm5, %v1900_v43, %v4080_v41  ;;  %v1934_v49 = vsel %vm1928_vm5, %v1901_v44, %v4081_v19  ;;  %v4096_v53 = vunpack.i.h.bf16 %v4094_v42  ;;  %v4095_v9 = vunpack.i.l.bf16 %v4094_v42  ;;  %v894_v42 = vld [vmem:[#allocation2 + $0x151] sm:$0xff] }
  0xef   : > { %4383 = vrot.lane.b32.xlu0 %v4362_v48, %s6145_s16  ;;  %v4089_v52 = vpop.permute.xlu1 %4088  ;;  %v1966_v28 = vsel %vm1961_vm6, %v1933_v47, %v4085_v46  ;;  %v1967_v29 = vsel %vm1961_vm6, %v1934_v49, %v4086_v45  ;;  %v4432_v41 = vpack.i.bf16 %v5468_v35, %v5466_v34  ;;  %v895_v46 = vld [vmem:[#allocation2 + $0x159] sm:$0xff] }
  0xf0   : > { %v4091_v2 = vunpack.i.h.bf16 %v4089_v52  ;;  %v4090_v55 = vunpack.i.l.bf16 %v4089_v52  ;;  %v910_v47 = vld [vmem:[#allocation2 + $0x92] sm:$0xff]  ;;  %v911_v49 = vld [vmem:[#allocation2 + $0x9a] sm:$0xff] }
  0xf1   : > { %v4104_v3 = vpop.permute.xlu0 %4103  ;;  %4378 = vrot.lane.b32.xlu1 %v5390_v51, %s4811_s19 }
  0xf2   : > { %v1999_v31 = vsel %vm1994_vm7, %v1966_v28, %v4090_v55  ;;  %v2000_v58 = vsel %vm1994_vm7, %v1967_v29, %v4091_v2  ;;  %v4106_v7 = vunpack.i.h.bf16 %v4104_v3  ;;  %v4105_v8 = vunpack.i.l.bf16 %v4104_v3  ;;  %v5487_v28 = vld [vmem:[#allocation2 + $0x158] sm:$0xff] }
  0xf3   : > { %4393 = vrot.lane.b32.xlu0 %v5412_v1, %s6156_s15  ;;  %v4099_v4 = vpop.permute.xlu1 %4098  ;;  %v2032_v62 = vsel %vm2027_vm8, %v1999_v31, %v4095_v9  ;;  %v2033_v63 = vsel %vm2027_vm8, %v2000_v58, %v4096_v53  ;;  %v653_v9 = vld [vmem:[#allocation2 + $0x60] sm:$0xff]  ;;  %v5489_v29 = vpack.i.bf16 %v895_v46, %v894_v42  ;;  %v2069_v31 = vpack.c.bf16 %v911_v49, %v910_v47 }
  0xf4   : > { %v4101_v12 = vunpack.i.h.bf16 %v4099_v4  ;;  %v4100_v51 = vunpack.i.l.bf16 %v4099_v4  ;;  %v2064_v48 = vpack.c.bf16 %v2033_v63, %v2032_v62 }
  0xf5   : > { %v4114_v6 = vpop.permute.xlu0 %4113  ;;  %4388 = vrot.lane.b32.xlu1 %v4367_v39, %s4813_s14 }
  0xf6   : > { %v1837_v14 = vsel %vm571_vm1, %v5204_v27, %v4101_v12  ;;  %v1836_v15 = vsel %vm571_vm1, %v5202_v26, %v4100_v51  ;;  %2261 = vmatmul.mubr.bf16.gmra.mrb[8].mxu0 %v2064_v48  ;;  %v4116_v25 = vunpack.i.h.bf16 %v4114_v6  ;;  %v4115_v27 = vunpack.i.l.bf16 %v4114_v6 }
  0xf7   : > { %4403 = vrot.lane.b32.xlu0 %v4402_v61, %s6143_s25  ;;  %v4109_v16 = vpop.permute.xlu1 %4108  ;;  %3778 = vmatprep.mubr.msk.bf16.mxu0 %vm571_vm1, %v2067_v5  ;;  %v1869_v23 = vsel %vm1862_vm0, %v1836_v15, %v4105_v8  ;;  %v1870_v24 = vsel %vm1862_vm0, %v1837_v14, %v4106_v7  ;;  %v4437_v6 = vpack.i.bf16 %v5487_v28, %v5485_v57 }
  0xf8   : > { %v4111_v18 = vunpack.i.h.bf16 %v4109_v16  ;;  %v4110_v20 = vunpack.i.l.bf16 %v4109_v16 }
  0xf9   : > { %v4124_v21 = vpop.permute.xlu0 %4123  ;;  %4398 = vrot.lane.b32.xlu1 %v4397_v10, %s4814_s17 }
  0xfa   : > { %v1902_v26 = vsel %vm1895_vm4, %v1869_v23, %v4110_v20  ;;  %v1903_v30 = vsel %vm1895_vm4, %v1870_v24, %v4111_v18  ;;  %v4126_v40 = vunpack.i.h.bf16 %v4124_v21  ;;  %v4125_v17 = vunpack.i.l.bf16 %v4124_v21 }
  0xfb   : > { %4413 = vrot.lane.b32.xlu0 %v5412_v1, %s4811_s19  ;;  %v4119_v33 = vpop.permute.xlu1 %4118  ;;  %v1935_v39 = vsel %vm1928_vm5, %v1902_v26, %v4115_v27  ;;  %v1936_v32 = vsel %vm1928_vm5, %v1903_v30, %v4116_v25  ;;  %v864_v26 = vld [vmem:[#allocation2 + $0x168] sm:$0xff]  ;;  %v865_v30 = vld [vmem:[#allocation2 + $0x170] sm:$0xff] }
  0xfc   : > { %v4121_v36 = vunpack.i.h.bf16 %v4119_v33  ;;  %v4120_v37 = vunpack.i.l.bf16 %v4119_v33  ;;  %v4472_v42 = vpack.i.bf16 %v865_v30, %v864_v26 }
  0xfd   : > { %v4134_v38 = vpop.permute.xlu0 %4133  ;;  %4408 = vrot.lane.b32.xlu1 %v5457_v22, %s4816_s23 }
  0xfe   : > { %v1968_v19 = vsel %vm1961_vm6, %v1935_v39, %v4120_v37  ;;  %v1969_v1 = vsel %vm1961_vm6, %v1936_v32, %v4121_v36  ;;  %v4136_v44 = vunpack.i.h.bf16 %v4134_v38  ;;  %v4135_v45 = vunpack.i.l.bf16 %v4134_v38  ;;  %v912_v38 = vld [vmem:[#allocation2 + $0xaa] sm:$0xff]  ;;  %v913_v39 = vld [vmem:[#allocation2 + $0xb2] sm:$0xff] }
  0xff   : > { %4423 = vrot.lane.b32.xlu0 %v4402_v61, %s4813_s14  ;;  %v4129_v43 = vpop.permute.xlu1 %4128  ;;  %v2001_v2 = vsel %vm1994_vm7, %v1968_v19, %v4125_v17  ;;  %v2002_v55 = vsel %vm1994_vm7, %v1969_v1, %v4126_v40  ;;  %v5516_v1 = vld [vmem:[#allocation2 + $0x152] sm:$0xff] }
 0x100   : > { %v4131_v52 = vunpack.i.h.bf16 %v4129_v43  ;;  %v4130_v53 = vunpack.i.l.bf16 %v4129_v43  ;;  %v1839_v58 = vsel %vm571_vm1, %v654_v50, %v4136_v44  ;;  %v1838_v61 = vsel %vm571_vm1, %v653_v9, %v4135_v45  ;;  %v655_v43 = vld [vmem:[#allocation2 + $0x78] sm:$0xff]  ;;  %v656_v44 = vld [vmem:[#allocation2 + $0x80] sm:$0xff] }
 0x101   : > { %v4144_v54 = vpop.permute.xlu0 %4143  ;;  %4418 = vrot.lane.b32.xlu1 %v4397_v10, %s6145_s16 }
 0x102   : > { %v2034_v3 = vsel %vm2027_vm8, %v2001_v2, %v4130_v53  ;;  %v2035_v56 = vsel %vm2027_vm8, %v2002_v55, %v4131_v52  ;;  %v4146_v51 = vunpack.i.h.bf16 %v4144_v54  ;;  %v4145_v48 = vunpack.i.l.bf16 %v4144_v54  ;;  %v896_v55 = vld [vmem:[#allocation2 + $0x169] sm:$0xff] }
 0x103   : > { %4433 = vrot.lane.b32.xlu0 %v4432_v41, %s4814_s17  ;;  %v4139_v4 = vpop.permute.xlu1 %4138  ;;  %v2066_v62 = vpack.c.bf16 %v2035_v56, %v2034_v3  ;;  %v897_v3 = vld [vmem:[#allocation2 + $0x171] sm:$0xff] }
 0x104   : > { %v4141_v63 = vunpack.i.h.bf16 %v4139_v4  ;;  %v4140_v5 = vunpack.i.l.bf16 %v4139_v4 }
 0x105   : > { %v4154_v12 = vpop.permute.xlu0 %4153  ;;  %4428 = vrot.lane.b32.xlu1 %v5457_v22, %s6156_s15  ;;  %2269 = vmatmul.mubr.bf16.gmra.mrb[12].mxu0 %v2066_v62 }
 0x106   : > { %v1872_v7 = vsel %vm1862_vm0, %v1839_v58, %v4141_v63  ;;  %v1871_v8 = vsel %vm1862_vm0, %v1838_v61, %v4140_v5  ;;  %3779 = vmatprep.mubr.msk.bf16.mxu0 %vm571_vm1, %v2069_v31  ;;  %v4156_v18 = vunpack.i.h.bf16 %v4154_v12  ;;  %v4155_v20 = vunpack.i.l.bf16 %v4154_v12 }
 0x107   : > { %4443 = vrot.lane.b32.xlu0 %v5489_v29, %s4816_s23  ;;  %v4149_v10 = vpop.permute.xlu1 %4148  ;;  %v1904_v15 = vsel %vm1895_vm4, %v1871_v8, %v4145_v48  ;;  %v1905_v16 = vsel %vm1895_vm4, %v1872_v7, %v4146_v51  ;;  %v5529_v63 = vpack.i.bf16 %v897_v3, %v896_v55 }
 0x108   : > { %v4151_v11 = vunpack.i.h.bf16 %v4149_v10  ;;  %v4150_v13 = vunpack.i.l.bf16 %v4149_v10  ;;  %v5538_v10 = vld [vmem:[#allocation2 + $0x16a] sm:$0xff] }
 0x109   : > { %v4164_v14 = vpop.permute.xlu0 %4163  ;;  %4438 = vrot.lane.b32.xlu1 %v4437_v6, %s6143_s25 }
 0x10a   : > { %v1937_v21 = vsel %vm1928_vm5, %v1904_v15, %v4150_v13  ;;  %v1938_v23 = vsel %vm1928_vm5, %v1905_v16, %v4151_v11  ;;  %v4166_v25 = vunpack.i.h.bf16 %v4164_v14  ;;  %v4165_v27 = vunpack.i.l.bf16 %v4164_v14  ;;  %v5540_v11 = vld [vmem:[#allocation2 + $0x172] sm:$0xff] }
 0x10b   : > { %4453 = vrot.lane.b32.xlu0 %v4432_v41, %s6145_s16  ;;  %v4159_v24 = vpop.permute.xlu1 %4158  ;;  %v1970_v32 = vsel %vm1961_vm6, %v1937_v21, %v4155_v20  ;;  %v1971_v40 = vsel %vm1961_vm6, %v1938_v23, %v4156_v18  ;;  %v5518_v41 = vld [vmem:[#allocation2 + $0x15a] sm:$0xff] }
 0x10c   : > { %v4161_v33 = vunpack.i.h.bf16 %v4159_v24  ;;  %v4160_v36 = vunpack.i.l.bf16 %v4159_v24  ;;  %v4467_v2 = vpack.i.bf16 %v5518_v41, %v5516_v1  ;;  %v4502_v24 = vpack.i.bf16 %v5540_v11, %v5538_v10 }
 0x10d   : > { %v4174_v37 = vpop.permute.xlu0 %4173  ;;  %4448 = vrot.lane.b32.xlu1 %v5457_v22, %s4811_s19  ;;  %v2071_v22 = vpack.c.bf16 %v913_v39, %v912_v38 }
 0x10e   : > { %v2003_v17 = vsel %vm1994_vm7, %v1970_v32, %v4160_v36  ;;  %v2004_v19 = vsel %vm1994_vm7, %v1971_v40, %v4161_v33  ;;  %v4176_v50 = vunpack.i.h.bf16 %v4174_v37  ;;  %v4175_v54 = vunpack.i.l.bf16 %v4174_v37  ;;  %v899_v33 = vld [vmem:[#allocation2 + $0x189] sm:$0xff]  ;;  %v658_v40 = vld [vmem:[#allocation2 + $0x98] sm:$0xff] }
 0x10f   : > { %4463 = vrot.lane.b32.xlu0 %v5489_v29, %s6156_s15  ;;  %v4169_v45 = vpop.permute.xlu1 %4168  ;;  %v2036_v46 = vsel %vm2027_vm8, %v2003_v17, %v4165_v27  ;;  %v2037_v47 = vsel %vm2027_vm8, %v2004_v19, %v4166_v25  ;;  %v898_v25 = vld [vmem:[#allocation2 + $0x181] sm:$0xff]  ;;  %v915_v37 = vld [vmem:[#allocation2 + $0xca] sm:$0xff] }
 0x110   : > { %v4171_v49 = vunpack.i.h.bf16 %v4169_v45  ;;  %v4170_v52 = vunpack.i.l.bf16 %v4169_v45  ;;  %v2068_v53 = vpack.c.bf16 %v2037_v47, %v2036_v46  ;;  %v914_v36 = vld [vmem:[#allocation2 + $0xc2] sm:$0xff]  ;;  %v657_v32 = vld [vmem:[#allocation2 + $0x90] sm:$0xff]  ;;  %v4512_v47 = vpack.i.bf16 %v899_v33, %v898_v25 }
 0x111   : > { %v4184_v9 = vpop.permute.xlu0 %4183  ;;  %4458 = vrot.lane.b32.xlu1 %v4437_v6, %s4813_s14  ;;  %v866_v45 = vld [vmem:[#allocation2 + $0x180] sm:$0xff]  ;;  %v867_v46 = vld [vmem:[#allocation2 + $0x188] sm:$0xff] }
 0x112   : > { %v1841_v56 = vsel %vm571_vm1, %v656_v44, %v4171_v49  ;;  %v1840_v31 = vsel %vm571_vm1, %v655_v43, %v4170_v52  ;;  %2277 = vmatmul.mubr.bf16.gmra.mrb[16].mxu0 %v2068_v53  ;;  %v4186_v51 = vunpack.i.h.bf16 %v4184_v9  ;;  %v4185_v48 = vunpack.i.l.bf16 %v4184_v9  ;;  %v917_v25 = vld [vmem:[#allocation2 + $0xe2] sm:$0xff] }
 0x113   : > { %4473 = vrot.lane.b32.xlu0 %v4472_v42, %s6143_s25  ;;  %v4179_v58 = vpop.permute.xlu1 %4178  ;;  %3780 = vmatprep.mubr.msk.bf16.mxu0 %vm571_vm1, %v2071_v22  ;;  %v1873_v5 = vsel %vm1862_vm0, %v1840_v31, %v4175_v54  ;;  %v1874_v12 = vsel %vm1862_vm0, %v1841_v56, %v4176_v50  ;;  %v2073_v22 = vpack.c.bf16 %v915_v37, %v914_v36  ;;  %v5578_v33 = vld [vmem:[#allocation2 + $0x182] sm:$0xff]  ;;  %v5580_v36 = vld [vmem:[#allocation2 + $0x18a] sm:$0xff] }
 0x114   : > { %v4181_v61 = vunpack.i.h.bf16 %v4179_v58  ;;  %v4180_v4 = vunpack.i.l.bf16 %v4179_v58  ;;  %v4507_v56 = vpack.i.bf16 %v867_v46, %v866_v45 }
 0x115   : > { %v4194_v62 = vpop.permute.xlu0 %4193  ;;  %4468 = vrot.lane.b32.xlu1 %v4467_v2, %s4814_s17 }
 0x116   : > { %v1906_v6 = vsel %vm1895_vm4, %v1873_v5, %v4180_v4  ;;  %v1907_v7 = vsel %vm1895_vm4, %v1874_v12, %v4181_v61  ;;  %v4196_v20 = vunpack.i.h.bf16 %v4194_v62  ;;  %v4195_v21 = vunpack.i.l.bf16 %v4194_v62 }
 0x117   : > { %4483 = vrot.lane.b32.xlu0 %v5489_v29, %s4811_s19  ;;  %v4189_v8 = vpop.permute.xlu1 %4188  ;;  %v1939_v16 = vsel %vm1928_vm5, %v1906_v6, %v4185_v48  ;;  %v1940_v18 = vsel %vm1928_vm5, %v1907_v7, %v4186_v51 }
 0x118   : > { %v4191_v13 = vunpack.i.h.bf16 %v4189_v8  ;;  %v4190_v14 = vunpack.i.l.bf16 %v4189_v8 }
 0x119   : > { %v4204_v15 = vpop.permute.xlu0 %4203  ;;  %4478 = vrot.lane.b32.xlu1 %v5529_v63, %s4816_s23 }
 0x11a   : > { %v1972_v23 = vsel %vm1961_vm6, %v1939_v16, %v4190_v14  ;;  %v1973_v29 = vsel %vm1961_vm6, %v1940_v18, %v4191_v13  ;;  %v4206_v26 = vunpack.i.h.bf16 %v4204_v15  ;;  %v4205_v30 = vunpack.i.l.bf16 %v4204_v15  ;;  %v868_v16 = vld [vmem:[#allocation2 + $0x198] sm:$0xff]  ;;  %v869_v18 = vld [vmem:[#allocation2 + $0x1a0] sm:$0xff] }
 0x11b   : > { %4493 = vrot.lane.b32.xlu0 %v4472_v42, %s4813_s14  ;;  %v4199_v27 = vpop.permute.xlu1 %4198  ;;  %v2005_v19 = vsel %vm1994_vm7, %v1972_v23, %v4195_v21  ;;  %v2006_v42 = vsel %vm1994_vm7, %v1973_v29, %v4196_v20  ;;  %v916_v29 = vld [vmem:[#allocation2 + $0xda] sm:$0xff]  ;;  %v4542_v37 = vpack.i.bf16 %v869_v18, %v868_v16 }
 0x11c   : > { %v4201_v38 = vunpack.i.h.bf16 %v4199_v27  ;;  %v4200_v39 = vunpack.i.l.bf16 %v4199_v27  ;;  %v1843_v49 = vsel %vm571_vm1, %v658_v40, %v4206_v26  ;;  %v1842_v52 = vsel %vm571_vm1, %v657_v32, %v4205_v30 }
 0x11d   : > { %v4214_v17 = vpop.permute.xlu0 %4213  ;;  %4488 = vrot.lane.b32.xlu1 %v4467_v2, %s6145_s16 }
 0x11e   : > { %v2038_v43 = vsel %vm2027_vm8, %v2005_v19, %v4200_v39  ;;  %v2039_v44 = vsel %vm2027_vm8, %v2006_v42, %v4201_v38  ;;  %v4216_v55 = vunpack.i.h.bf16 %v4214_v17  ;;  %v4215_v3 = vunpack.i.l.bf16 %v4214_v17  ;;  %v659_v38 = vld [vmem:[#allocation2 + $0xa8] sm:$0xff]  ;;  %v660_v39 = vld [vmem:[#allocation2 + $0xb0] sm:$0xff] }
 0x11f   : > { %4503 = vrot.lane.b32.xlu0 %v4502_v24, %s4814_s17  ;;  %v4209_v53 = vpop.permute.xlu1 %4208  ;;  %v2070_v9 = vpack.c.bf16 %v2039_v44, %v2038_v43  ;;  %v2075_v19 = vpack.c.bf16 %v917_v25, %v916_v29  ;;  %v661_v25 = vld [vmem:[#allocation2 + $0xc0] sm:$0xff] }
 0x120   : > { %v4211_v50 = vunpack.i.h.bf16 %v4209_v53  ;;  %v4210_v54 = vunpack.i.l.bf16 %v4209_v53 }
 0x121   : > { %v4224_v2 = vpop.permute.xlu0 %4223  ;;  %4498 = vrot.lane.b32.xlu1 %v5529_v63, %s6156_s15  ;;  %2285 = vmatmul.mubr.bf16.gmra.mrb[20].mxu0 %v2070_v9 }
 0x122   : > { %v1876_v31 = vsel %vm1862_vm0, %v1843_v49, %v4211_v50  ;;  %v1875_v58 = vsel %vm1862_vm0, %v1842_v52, %v4210_v54  ;;  %3781 = vmatprep.mubr.msk.bf16.mxu0 %vm571_vm1, %v2073_v22  ;;  %v4226_v48 = vunpack.i.h.bf16 %v4224_v2  ;;  %v4225_v6 = vunpack.i.l.bf16 %v4224_v2  ;;  %v900_v22 = vld [vmem:[#allocation2 + $0x199] sm:$0xff]  ;;  %v901_v49 = vld [vmem:[#allocation2 + $0x1a1] sm:$0xff] }
 0x123   : > { %4513 = vrot.lane.b32.xlu0 %v4512_v47, %s4816_s23  ;;  %v4219_v61 = vpop.permute.xlu1 %4218  ;;  %v1908_v12 = vsel %vm1895_vm4, %v1875_v58, %v4215_v3  ;;  %v1909_v51 = vsel %vm1895_vm4, %v1876_v31, %v4216_v55  ;;  %v4547_v55 = vpack.i.bf16 %v901_v49, %v900_v22 }
 0x124   : > { %v4221_v4 = vunpack.i.h.bf16 %v4219_v61  ;;  %v4220_v62 = vunpack.i.l.bf16 %v4219_v61 }
 0x125   : > { %v4234_v5 = vpop.permute.xlu0 %4233  ;;  %4508 = vrot.lane.b32.xlu1 %v4507_v56, %s6143_s25 }
 0x126   : > { %v1941_v7 = vsel %vm1928_vm5, %v1908_v12, %v4220_v62  ;;  %v1942_v8 = vsel %vm1928_vm5, %v1909_v51, %v4221_v4  ;;  %v4236_v14 = vunpack.i.h.bf16 %v4234_v5  ;;  %v4235_v15 = vunpack.i.l.bf16 %v4234_v5 }
 0x127   : > { %4523 = vrot.lane.b32.xlu0 %v4502_v24, %s6145_s16  ;;  %v4229_v13 = vpop.permute.xlu1 %4228  ;;  %v1974_v27 = vsel %vm1961_vm6, %v1941_v7, %v4225_v6  ;;  %v1975_v26 = vsel %vm1961_vm6, %v1942_v8, %v4226_v48 }
 0x128   : > { %v4231_v20 = vunpack.i.h.bf16 %v4229_v13  ;;  %v4230_v21 = vunpack.i.l.bf16 %v4229_v13 }
 0x129   : > { %v4244_v23 = vpop.permute.xlu0 %4243  ;;  %4518 = vrot.lane.b32.xlu1 %v5529_v63, %s4811_s19  ;;  %s4742_s19 = sshll.u32 %s4819_s27, 4  ;;  %s4743_s19 = int_to_ptr.vmem [resolvable:$false] %s4742_s19 }
 0x12a   : > { %v2007_v30 = vsel %vm1994_vm7, %v1974_v27, %v4230_v21  ;;  %v2008_v24 = vsel %vm1994_vm7, %v1975_v26, %v4231_v20  ;;  %v4246_v45 = vunpack.i.h.bf16 %v4244_v23  ;;  %v4245_v46 = vunpack.i.l.bf16 %v4244_v23  ;;  %v918_v20 = vld [vmem:[#allocation2 + $0xf2] sm:$0xff]  ;;  %v919_v21 = vld [vmem:[#allocation2 + $0xfa] sm:$0xff]  ;;  %v662_v27 = vld [vmem:[#allocation2 + $0xc8] sm:$0xff] }
 0x12b   : > { %4533 = vrot.lane.b32.xlu0 %v4512_v47, %s6156_s15  ;;  %v4239_v32 = vpop.permute.xlu1 %4238  ;;  %v2040_v40 = vsel %vm2027_vm8, %v2007_v30, %v4235_v15  ;;  %v2041_v17 = vsel %vm2027_vm8, %v2008_v24, %v4236_v14  ;;  %v4537_v47 = vpack.i.bf16 %v5580_v36, %v5578_v33 }
 0x12c   : > { %v4241_v63 = vunpack.i.h.bf16 %v4239_v32  ;;  %v4240_v42 = vunpack.i.l.bf16 %v4239_v32  ;;  %v2072_v43 = vpack.c.bf16 %v2041_v17, %v2040_v40 }
 0x12d   : > { %v4254_v44 = vpop.permute.xlu0 %4253  ;;  %4528 = vrot.lane.b32.xlu1 %v4507_v56, %s4813_s14  ;;  %s4744_s14 = scalar_lea.vmem %s4743_s19, 512 }
 0x12e   : > { %v1845_v52 = vsel %vm571_vm1, %v660_v39, %v4241_v63  ;;  %v1844_v53 = vsel %vm571_vm1, %v659_v38, %v4240_v42  ;;  %2293 = vmatmul.mubr.bf16.gmra.mrb[24].mxu0 %v2072_v43  ;;  %v4256_v31 = vunpack.i.h.bf16 %v4254_v44  ;;  %v4255_v58 = vunpack.i.l.bf16 %v4254_v44 }
 0x12f   : > { %4543 = vrot.lane.b32.xlu0 %v4542_v37, %s6143_s25  ;;  %v4249_v9 = vpop.permute.xlu1 %4248  ;;  %3782 = vmatprep.mubr.msk.bf16.mxu0 %vm571_vm1, %v2075_v19  ;;  %v1877_v3 = vsel %vm1862_vm0, %v1844_v53, %v4245_v46  ;;  %v1878_v56 = vsel %vm1862_vm0, %v1845_v52, %v4246_v45  ;;  %v2077_v39 = vpack.c.bf16 %v919_v21, %v918_v20  ;;  %s6157_s25 = smov 96  }
 0x130   : > { %v4251_v50 = vunpack.i.h.bf16 %v4249_v9  ;;  %v4250_v54 = vunpack.i.l.bf16 %v4249_v9 }
 0x131   : > { %v4264_v2 = vpop.permute.xlu0 %4263  ;;  %4538 = vrot.lane.b32.xlu1 %v4537_v47, %s4814_s17  ;;  %s3763_s17 = sshll.u32 %s4994_s30, 4 }
 0x132   : > { %v1910_v61 = vsel %vm1895_vm4, %v1877_v3, %v4250_v54  ;;  %v1911_v4 = vsel %vm1895_vm4, %v1878_v56, %v4251_v50  ;;  %v4266_v7 = vunpack.i.h.bf16 %v4264_v2  ;;  %v4265_v8 = vunpack.i.l.bf16 %v4264_v2 }
 0x133   : > { %v4259_v62 = vpop.permute.xlu1 %4258  ;;  %v1943_v48 = vsel %vm1928_vm5, %v1910_v61, %v4255_v58  ;;  %v1944_v6 = vsel %vm1928_vm5, %v1911_v4, %v4256_v31 }
 0x134   : > { %v4261_v5 = vunpack.i.h.bf16 %v4259_v62  ;;  %v4260_v12 = vunpack.i.l.bf16 %v4259_v62 }
 0x135   : > { %v4274_v51 = vpop.permute.xlu0 %4273  ;;  %4548 = vrot.lane.b32.xlu1 %v4547_v55, %s4816_s23 }
 0x136   : > { %v1976_v13 = vsel %vm1961_vm6, %v1943_v48, %v4260_v12  ;;  %v1977_v14 = vsel %vm1961_vm6, %v1944_v6, %v4261_v5  ;;  %v4276_v16 = vunpack.i.h.bf16 %v4274_v51  ;;  %v4275_v18 = vunpack.i.l.bf16 %v4274_v51  ;;  %v920_v5 = vld [vmem:[#allocation2 + $0x10a] sm:$0xff]  ;;  %v921_v12 = vld [vmem:[#allocation2 + $0x112] sm:$0xff] }
 0x137   : > { %v4269_v15 = vpop.permute.xlu1 %4268  ;;  %v2009_v30 = vsel %vm1994_vm7, %v1976_v13, %v4265_v8  ;;  %v2010_v24 = vsel %vm1994_vm7, %v1977_v14, %v4266_v7  ;;  %v663_v8 = vld [vmem:[#allocation2 + $0xd8] sm:$0xff]  ;;  %v664_v13 = vld [vmem:[#allocation2 + $0xe0] sm:$0xff] }
 0x138   : > { %v4271_v23 = vunpack.i.h.bf16 %v4269_v15  ;;  %v4270_v29 = vunpack.i.l.bf16 %v4269_v15  ;;  %v1847_v32 = vsel %vm571_vm1, %v662_v27, %v4276_v16  ;;  %v1846_v40 = vsel %vm571_vm1, %v661_v25, %v4275_v18 }
 0x139   : > { %v4284_v26 = vpop.permute.xlu0 %4283  ;;  %v2079_v18 = vpack.c.bf16 %v921_v12, %v920_v5  ;;  %v2081_v12 = vpack.c.bf16 %v5444_v60, %v5442_v59 }
 0x13a   : > { %v2042_v37 = vsel %vm2027_vm8, %v2009_v30, %v4270_v29  ;;  %v2043_v38 = vsel %vm2027_vm8, %v2010_v24, %v4271_v23  ;;  %v4286_v44 = vunpack.i.h.bf16 %v4284_v26  ;;  %v4285_v45 = vunpack.i.l.bf16 %v4284_v26 }
 0x13b   : > { %v4279_v17 = vpop.permute.xlu1 %4278  ;;  %v2074_v19 = vpack.c.bf16 %v2043_v38, %v2042_v37 }
 0x13c   : > { %v4281_v63 = vunpack.i.h.bf16 %v4279_v17  ;;  %v4280_v42 = vunpack.i.l.bf16 %v4279_v17 }
 0x13d   : > { %v4294_v43 = vpop.permute.xlu0 %4293  ;;  %2301 = vmatmul.mubr.bf16.gmra.mrb[28].mxu0 %v2074_v19 }
 0x13e   : > { %v1880_v46 = vsel %vm1862_vm0, %v1847_v32, %v4281_v63  ;;  %v1879_v47 = vsel %vm1862_vm0, %v1846_v40, %v4280_v42  ;;  %3783 = vmatprep.mubr.msk.bf16.mxu0 %vm571_vm1, %v2077_v39  ;;  %v4296_v53 = vunpack.i.h.bf16 %v4294_v43  ;;  %v4295_v2 = vunpack.i.l.bf16 %v4294_v43 }
 0x13f   : > { %v4289_v22 = vpop.permute.xlu1 %4288  ;;  %v1912_v50 = vsel %vm1895_vm4, %v1879_v47, %v4285_v45  ;;  %v1913_v54 = vsel %vm1895_vm4, %v1880_v46, %v4286_v44 }
 0x140   : > { %v4291_v49 = vunpack.i.h.bf16 %v4289_v22  ;;  %v4290_v52 = vunpack.i.l.bf16 %v4289_v22 }
 0x141   : > { %v4304_v9 = vpop.permute.xlu0 %4303 }
 0x142   : > { %v1945_v55 = vsel %vm1928_vm5, %v1912_v50, %v4290_v52  ;;  %v1946_v3 = vsel %vm1928_vm5, %v1913_v54, %v4291_v49  ;;  %v4306_v31 = vunpack.i.h.bf16 %v4304_v9  ;;  %v4305_v58 = vunpack.i.l.bf16 %v4304_v9 }
 0x143   : > { %v4299_v56 = vpop.permute.xlu1 %4298  ;;  %v1978_v51 = vsel %vm1961_vm6, %v1945_v55, %v4295_v2  ;;  %v1979_v48 = vsel %vm1961_vm6, %v1946_v3, %v4296_v53 }
 0x144   : > { %v4301_v61 = vunpack.i.h.bf16 %v4299_v56  ;;  %v4300_v4 = vunpack.i.l.bf16 %v4299_v56  ;;  %v665_v56 = vld [vmem:[#allocation2 + $0xf0] sm:$0xff] }
 0x145   : > { %v4314_v62 = vpop.permute.xlu0 %4313 }
 0x146   : > { %v2011_v6 = vsel %vm1994_vm7, %v1978_v51, %v4300_v4  ;;  %v2012_v7 = vsel %vm1994_vm7, %v1979_v48, %v4301_v61  ;;  %v4316_v25 = vunpack.i.h.bf16 %v4314_v62  ;;  %v4315_v27 = vunpack.i.l.bf16 %v4314_v62 }
 0x147   : > { %v4309_v14 = vpop.permute.xlu1 %4308  ;;  %v2044_v15 = vsel %vm2027_vm8, %v2011_v6, %v4305_v58  ;;  %v2045_v16 = vsel %vm2027_vm8, %v2012_v7, %v4306_v31  ;;  %v666_v31 = vld [vmem:[#allocation2 + $0xf8] sm:$0xff] }
 0x148   : > { %v4311_v20 = vunpack.i.h.bf16 %v4309_v14  ;;  %v4310_v21 = vunpack.i.l.bf16 %v4309_v14  ;;  %v2076_v23 = vpack.c.bf16 %v2045_v16, %v2044_v15 }
 0x149   : > { %v4324_v29 = vpop.permute.xlu0 %4323 }
 0x14a   : > { %v1849_v26 = vsel %vm571_vm1, %v664_v13, %v4311_v20  ;;  %v1848_v30 = vsel %vm571_vm1, %v663_v8, %v4310_v21  ;;  %2309 = vmatmul.mubr.bf16.gmra.mrb[32].mxu0 %v2076_v23  ;;  %v4326_v17 = vunpack.i.h.bf16 %v4324_v29  ;;  %v4325_v19 = vunpack.i.l.bf16 %v4324_v29 }
 0x14b   : > { %v4319_v24 = vpop.permute.xlu1 %4318  ;;  %3784 = vmatprep.mubr.msk.bf16.mxu0 %vm571_vm1, %v2079_v18  ;;  %v1881_v32 = vsel %vm1862_vm0, %v1848_v30, %v4315_v27  ;;  %v1882_v40 = vsel %vm1862_vm0, %v1849_v26, %v4316_v25 }
 0x14c   : > { %v4321_v37 = vunpack.i.h.bf16 %v4319_v24  ;;  %v4320_v38 = vunpack.i.l.bf16 %v4319_v24 }
 0x14d   : > { %v4334_v39 = vpop.permute.xlu0 %4333 }
 0x14e   : > { %v1914_v63 = vsel %vm1895_vm4, %v1881_v32, %v4320_v38  ;;  %v1915_v42 = vsel %vm1895_vm4, %v1882_v40, %v4321_v37  ;;  %v4336_v49 = vunpack.i.h.bf16 %v4334_v39  ;;  %v4335_v52 = vunpack.i.l.bf16 %v4334_v39 }
 0x14f   : > { %v4329_v43 = vpop.permute.xlu1 %4328  ;;  %v1947_v47 = vsel %vm1928_vm5, %v1914_v63, %v4325_v19  ;;  %v1948_v22 = vsel %vm1928_vm5, %v1915_v42, %v4326_v17 }
 0x150   : > { %v4331_v44 = vunpack.i.h.bf16 %v4329_v43  ;;  %v4330_v45 = vunpack.i.l.bf16 %v4329_v43 }
 0x151   : > { %v4344_v46 = vpop.permute.xlu0 %4343 }
 0x152   : > { %v1980_v53 = vsel %vm1961_vm6, %v1947_v47, %v4330_v45  ;;  %v1981_v9 = vsel %vm1961_vm6, %v1948_v22, %v4331_v44  ;;  %v4346_v54 = vunpack.i.h.bf16 %v4344_v46  ;;  %v4345_v2 = vunpack.i.l.bf16 %v4344_v46  ;;  %v667_v44 = vld [vmem:[#allocation2 + $0x108] sm:$0xff]  ;;  %v668_v45 = vld [vmem:[#allocation2 + $0x110] sm:$0xff] }
 0x153   : > { %v4339_v50 = vpop.permute.xlu1 %4338  ;;  %v2013_v61 = vsel %vm1994_vm7, %v1980_v53, %v4335_v52  ;;  %v2014_v4 = vsel %vm1994_vm7, %v1981_v9, %v4336_v49  ;;  %v2083_v49 = vpack.c.bf16 %v5468_v35, %v5466_v34 }
 0x154   : > { %v4341_v55 = vunpack.i.h.bf16 %v4339_v50  ;;  %v4340_v3 = vunpack.i.l.bf16 %v4339_v50  ;;  %v1851_v51 = vsel %vm571_vm1, %v666_v31, %v4346_v54  ;;  %v1850_v48 = vsel %vm571_vm1, %v665_v56, %v4345_v2 }
 0x155   : > { %v4354_v58 = vpop.permute.xlu0 %4353 }
 0x156   : > { %v2046_v62 = vsel %vm2027_vm8, %v2013_v61, %v4340_v3  ;;  %v2047_v5 = vsel %vm2027_vm8, %v2014_v4, %v4341_v55  ;;  %v4356_v15 = vunpack.i.h.bf16 %v4354_v58  ;;  %v4355_v16 = vunpack.i.l.bf16 %v4354_v58 }
 0x157   : > { %v4349_v6 = vpop.permute.xlu1 %4348  ;;  %v2078_v7 = vpack.c.bf16 %v2047_v5, %v2046_v62 }
 0x158   : > { %v4351_v8 = vunpack.i.h.bf16 %v4349_v6  ;;  %v4350_v13 = vunpack.i.l.bf16 %v4349_v6 }
 0x159   : > { %v4364_v14 = vpop.permute.xlu0 %4363  ;;  %2317 = vmatmul.mubr.bf16.gmra.mrb[36].mxu0 %v2078_v7 }
 0x15a   : > { %v1884_v18 = vsel %vm1862_vm0, %v1851_v51, %v4351_v8  ;;  %v1883_v20 = vsel %vm1862_vm0, %v1850_v48, %v4350_v13  ;;  %3785 = vmatprep.mubr.msk.bf16.mxu0 %vm571_vm1, %v2081_v12  ;;  %v4366_v27 = vunpack.i.h.bf16 %v4364_v14  ;;  %v4365_v26 = vunpack.i.l.bf16 %v4364_v14 }
 0x15b   : > { %v4359_v21 = vpop.permute.xlu1 %4358  ;;  %v1916_v29 = vsel %vm1895_vm4, %v1883_v20, %v4355_v16  ;;  %v1917_v25 = vsel %vm1895_vm4, %v1884_v18, %v4356_v15 }
 0x15c   : > { %v4361_v59 = vunpack.i.h.bf16 %v4359_v21  ;;  %v4360_v60 = vunpack.i.l.bf16 %v4359_v21 }
 0x15d   : > { %v4374_v23 = vpop.permute.xlu0 %4373 }
 0x15e   : > { %v1949_v30 = vsel %vm1928_vm5, %v1916_v29, %v4360_v60  ;;  %v1950_v24 = vsel %vm1928_vm5, %v1917_v25, %v4361_v59  ;;  %v4376_v38 = vunpack.i.h.bf16 %v4374_v23  ;;  %v4375_v39 = vunpack.i.l.bf16 %v4374_v23  ;;  %v669_v29 = vld [vmem:[#allocation2 + $0x120] sm:$0xff]  ;;  %v670_v25 = vld [vmem:[#allocation2 + $0x128] sm:$0xff] }
 0x15f   : > { %v4369_v37 = vpop.permute.xlu1 %4368  ;;  %v1982_v19 = vsel %vm1961_vm6, %v1949_v30, %v4365_v26  ;;  %v1983_v63 = vsel %vm1961_vm6, %v1950_v24, %v4366_v27 }
 0x160   : > { %v4371_v32 = vunpack.i.h.bf16 %v4369_v37  ;;  %v4370_v40 = vunpack.i.l.bf16 %v4369_v37 }
 0x161   : > { %v4384_v17 = vpop.permute.xlu0 %4383 }
 0x162   : > { %v2015_v42 = vsel %vm1994_vm7, %v1982_v19, %v4370_v40  ;;  %v2016_v43 = vsel %vm1994_vm7, %v1983_v63, %v4371_v32  ;;  %v4386_v54 = vunpack.i.h.bf16 %v4384_v17  ;;  %v4385_v2 = vunpack.i.l.bf16 %v4384_v17 }
 0x163   : > { %v4379_v46 = vpop.permute.xlu1 %4378  ;;  %v2048_v47 = vsel %vm2027_vm8, %v2015_v42, %v4375_v39  ;;  %v2049_v22 = vsel %vm2027_vm8, %v2016_v43, %v4376_v38  ;;  %v2085_v38 = vpack.c.bf16 %v5518_v41, %v5516_v1 }
 0x164   : > { %v4381_v52 = vunpack.i.h.bf16 %v4379_v46  ;;  %v4380_v53 = vunpack.i.l.bf16 %v4379_v46  ;;  %v2080_v9 = vpack.c.bf16 %v2049_v22, %v2048_v47 }
 0x165   : > { %v4394_v50 = vpop.permute.xlu0 %4393 }
 0x166   : > { %v1853_v55 = vsel %vm571_vm1, %v668_v45, %v4381_v52  ;;  %v1852_v3 = vsel %vm571_vm1, %v667_v44, %v4380_v53  ;;  %2325 = vmatmul.mubr.bf16.gmra.mrb[40].mxu0 %v2080_v9  ;;  %v4396_v35 = vunpack.i.h.bf16 %v4394_v50  ;;  %v4395_v62 = vunpack.i.l.bf16 %v4394_v50 }
 0x167   : > { %v4389_v56 = vpop.permute.xlu1 %4388  ;;  %3786 = vmatprep.mubr.msk.bf16.mxu0 %vm571_vm1, %v2083_v49  ;;  %v1885_v4 = vsel %vm1862_vm0, %v1852_v3, %v4385_v2  ;;  %v1886_v34 = vsel %vm1862_vm0, %v1853_v55, %v4386_v54 }
 0x168   : > { %v4391_v31 = vunpack.i.h.bf16 %v4389_v56  ;;  %v4390_v58 = vunpack.i.l.bf16 %v4389_v56 }
 0x169   : > { %v4404_v61 = vpop.permute.xlu0 %4403 }
 0x16a   : > { %v1918_v5 = vsel %vm1895_vm4, %v1885_v4, %v4390_v58  ;;  %v1919_v12 = vsel %vm1895_vm4, %v1886_v34, %v4391_v31  ;;  %v4406_v14 = vunpack.i.h.bf16 %v4404_v61  ;;  %v4405_v15 = vunpack.i.l.bf16 %v4404_v61 }
 0x16b   : > { %v4399_v51 = vpop.permute.xlu1 %4398  ;;  %v1951_v8 = vsel %vm1928_vm5, %v1918_v5, %v4395_v62  ;;  %v1952_v13 = vsel %vm1928_vm5, %v1919_v12, %v4396_v35  ;;  %v671_v62 = vld [vmem:[#allocation2 + $0x138] sm:$0xff]  ;;  %v672_v5 = vld [vmem:[#allocation2 + $0x140] sm:$0xff] }
 0x16c   : > { %v4401_v48 = vunpack.i.h.bf16 %v4399_v51  ;;  %v4400_v6 = vunpack.i.l.bf16 %v4399_v51 }
 0x16d   : > { %v4414_v7 = vpop.permute.xlu0 %4413 }
 0x16e   : > { %v1984_v16 = vsel %vm1961_vm6, %v1951_v8, %v4400_v6  ;;  %v1985_v18 = vsel %vm1961_vm6, %v1952_v13, %v4401_v48  ;;  %v4416_v21 = vunpack.i.h.bf16 %v4414_v7  ;;  %v4415_v59 = vunpack.i.l.bf16 %v4414_v7 }
 0x16f   : > { %v4409_v20 = vpop.permute.xlu1 %4408  ;;  %v2017_v26 = vsel %vm1994_vm7, %v1984_v16, %v4405_v15  ;;  %v2018_v30 = vsel %vm1994_vm7, %v1985_v18, %v4406_v14  ;;  %v2087_v6 = vpack.c.bf16 %v5540_v11, %v5538_v10 }
 0x170   : > { %v4411_v60 = vunpack.i.h.bf16 %v4409_v20  ;;  %v4410_v23 = vunpack.i.l.bf16 %v4409_v20  ;;  %v1855_v39 = vsel %vm571_vm1, %v670_v25, %v4416_v21  ;;  %v1854_v32 = vsel %vm571_vm1, %v669_v29, %v4415_v59 }
 0x171   : > { %v4424_v27 = vpop.permute.xlu0 %4423 }
 0x172   : > { %v2050_v24 = vsel %vm2027_vm8, %v2017_v26, %v4410_v23  ;;  %v2051_v37 = vsel %vm2027_vm8, %v2018_v30, %v4411_v60  ;;  %v4426_v43 = vunpack.i.h.bf16 %v4424_v27  ;;  %v4425_v44 = vunpack.i.l.bf16 %v4424_v27 }
 0x173   : > { %v4419_v40 = vpop.permute.xlu1 %4418  ;;  %v2082_v17 = vpack.c.bf16 %v2051_v37, %v2050_v24 }
 0x174   : > { %v4421_v19 = vunpack.i.h.bf16 %v4419_v40  ;;  %v4420_v63 = vunpack.i.l.bf16 %v4419_v40 }
 0x175   : > { %v4434_v42 = vpop.permute.xlu0 %4433  ;;  %2333 = vmatmul.mubr.bf16.gmra.mrb[44].mxu0 %v2082_v17 }
 0x176   : > { %v1888_v45 = vsel %vm1862_vm0, %v1855_v39, %v4421_v19  ;;  %v1887_v46 = vsel %vm1862_vm0, %v1854_v32, %v4420_v63  ;;  %3787 = vmatprep.mubr.msk.bf16.mxu0 %vm571_vm1, %v2085_v38  ;;  %v4436_v53 = vunpack.i.h.bf16 %v4434_v42  ;;  %v4435_v9 = vunpack.i.l.bf16 %v4434_v42 }
 0x177   : > { %v4429_v47 = vpop.permute.xlu1 %4428  ;;  %v1920_v49 = vsel %vm1895_vm4, %v1887_v46, %v4425_v44  ;;  %v1921_v52 = vsel %vm1895_vm4, %v1888_v45, %v4426_v43 }
 0x178   : > { %v4431_v1 = vunpack.i.h.bf16 %v4429_v47  ;;  %v4430_v41 = vunpack.i.l.bf16 %v4429_v47 }
 0x179   : > { %v4444_v22 = vpop.permute.xlu0 %4443 }
 0x17a   : > { %v1953_v50 = vsel %vm1928_vm5, %v1920_v49, %v4430_v41  ;;  %v1954_v54 = vsel %vm1928_vm5, %v1921_v52, %v4431_v1  ;;  %v4446_v55 = vunpack.i.h.bf16 %v4444_v22  ;;  %v4445_v3 = vunpack.i.l.bf16 %v4444_v22 }
 0x17b   : > { %v4439_v2 = vpop.permute.xlu1 %4438  ;;  %v1986_v61 = vsel %vm1961_vm6, %v1953_v50, %v4435_v9  ;;  %v1987_v4 = vsel %vm1961_vm6, %v1954_v54, %v4436_v53  ;;  %v2089_v52 = vpack.c.bf16 %v5580_v36, %v5578_v33 }
 0x17c   : > { %v4441_v56 = vunpack.i.h.bf16 %v4439_v2  ;;  %v4440_v31 = vunpack.i.l.bf16 %v4439_v2 }
 0x17d   : > { %v4454_v58 = vpop.permute.xlu0 %4453 }
 0x17e   : > { %v2019_v34 = vsel %vm1994_vm7, %v1986_v61, %v4440_v31  ;;  %v2020_v35 = vsel %vm1994_vm7, %v1987_v4, %v4441_v56  ;;  %v4456_v15 = vunpack.i.h.bf16 %v4454_v58  ;;  %v4455_v16 = vunpack.i.l.bf16 %v4454_v58 }
 0x17f   : > { %v4449_v12 = vpop.permute.xlu1 %4448  ;;  %v2052_v51 = vsel %vm2027_vm8, %v2019_v34, %v4445_v3  ;;  %v2053_v48 = vsel %vm2027_vm8, %v2020_v35, %v4446_v55 }
 0x180   : > { %v4451_v7 = vunpack.i.h.bf16 %v4449_v12  ;;  %v4450_v8 = vunpack.i.l.bf16 %v4449_v12  ;;  %v2084_v13 = vpack.c.bf16 %v2053_v48, %v2052_v51 }
 0x181   : > { %v4464_v14 = vpop.permute.xlu0 %4463 }
 0x182   : > { %v1857_v18 = vsel %vm571_vm1, %v672_v5, %v4451_v7  ;;  %v1856_v20 = vsel %vm571_vm1, %v671_v62, %v4450_v8  ;;  %2341 = vmatmul.mubr.bf16.gmra.mrb[48].mxu0 %v2084_v13  ;;  %v4466_v11 = vunpack.i.h.bf16 %v4464_v14  ;;  %v4465_v25 = vunpack.i.l.bf16 %v4464_v14  ;;  %v932_v14 = vld [vmem:[#allocation2 + $0x19a] sm:$0xff] }
 0x183   : > { %v4459_v21 = vpop.permute.xlu1 %4458  ;;  %3788 = vmatprep.mubr.msk.bf16.mxu0 %vm571_vm1, %v2087_v6  ;;  %v1889_v29 = vsel %vm1862_vm0, %v1856_v20, %v4455_v16  ;;  %v1890_v10 = vsel %vm1862_vm0, %v1857_v18, %v4456_v15  ;;  %v933_v15 = vld [vmem:[#allocation2 + $0x1a2] sm:$0xff] }
 0x184   : > { %v4461_v59 = vunpack.i.h.bf16 %v4459_v21  ;;  %v4460_v60 = vunpack.i.l.bf16 %v4459_v21 }
 0x185   : > { %v4474_v23 = vpop.permute.xlu0 %4473 }
 0x186   : > { %v1922_v27 = vsel %vm1895_vm4, %v1889_v29, %v4460_v60  ;;  %v1923_v26 = vsel %vm1895_vm4, %v1890_v10, %v4461_v59  ;;  %v4476_v40 = vunpack.i.h.bf16 %v4474_v23  ;;  %v4475_v17 = vunpack.i.l.bf16 %v4474_v23 }
 0x187   : > { %v4469_v30 = vpop.permute.xlu1 %4468  ;;  %v1955_v39 = vsel %vm1928_vm5, %v1922_v27, %v4465_v25  ;;  %v1956_v32 = vsel %vm1928_vm5, %v1923_v26, %v4466_v11  ;;  %v2091_v29 = vpack.c.bf16 %v933_v15, %v932_v14  ;;  %v4681_v15 = vld [vmem:[%s6127_s5 + $0x40] sm:$0xff]  }
 0x188   : > { %v4471_v24 = vunpack.i.h.bf16 %v4469_v30  ;;  %v4470_v37 = vunpack.i.l.bf16 %v4469_v30  ;;  %3842 = vmatprep.subr.bf16.mxu1 %v4681_v15 }
 0x189   : > { %v4484_v38 = vpop.permute.xlu0 %4483 }
 0x18a   : > { %v1988_v19 = vsel %vm1961_vm6, %v1955_v39, %v4470_v37  ;;  %v1989_v63 = vsel %vm1961_vm6, %v1956_v32, %v4471_v24  ;;  %v4486_v43 = vunpack.i.h.bf16 %v4484_v38  ;;  %v4485_v44 = vunpack.i.l.bf16 %v4484_v38  ;;  %v4706_v24 = vld [vmem:[#allocation2 + $0x170] sm:$0xff]  ;;  %v4707_v38 = vld [vmem:[#allocation2 + $0x168] sm:$0xff] }
 0x18b   : > { %v4479_v42 = vpop.permute.xlu1 %4478  ;;  %v2021_v1 = vsel %vm1994_vm7, %v1988_v19, %v4475_v17  ;;  %v2022_v41 = vsel %vm1994_vm7, %v1989_v63, %v4476_v40 }
 0x18c   : > { %v4481_v45 = vunpack.i.h.bf16 %v4479_v42  ;;  %v4480_v46 = vunpack.i.l.bf16 %v4479_v42  ;;  %v1859_v53 = vsel %vm571_vm1, %v5487_v28, %v4486_v43  ;;  %v1858_v9 = vsel %vm571_vm1, %v5485_v57, %v4485_v44 }
 0x18d   : > { %v4494_v47 = vpop.permute.xlu0 %4493 }
 0x18e   : > { %v2054_v22 = vsel %vm2027_vm8, %v2021_v1, %v4480_v46  ;;  %v2055_v49 = vsel %vm2027_vm8, %v2022_v41, %v4481_v45  ;;  %v4496_v56 = vunpack.i.h.bf16 %v4494_v47  ;;  %v4495_v31 = vunpack.i.l.bf16 %v4494_v47 }
 0x18f   : > { %v4489_v50 = vpop.permute.xlu1 %4488  ;;  %v2086_v54 = vpack.c.bf16 %v2055_v49, %v2054_v22 }
 0x190   : > { %v4491_v2 = vunpack.i.h.bf16 %v4489_v50  ;;  %v4490_v55 = vunpack.i.l.bf16 %v4489_v50 }
 0x191   : > { %v4504_v3 = vpop.permute.xlu0 %4503  ;;  %2349 = vmatmul.mubr.bf16.gmra.mrb[52].mxu0 %v2086_v54 }
 0x192   : > { %v1892_v58 = vsel %vm1862_vm0, %v1859_v53, %v4491_v2  ;;  %v1891_v61 = vsel %vm1862_vm0, %v1858_v9, %v4490_v55  ;;  %3789 = vmatprep.mubr.msk.bf16.mxu0 %vm571_vm1, %v2089_v52  ;;  %v4506_v35 = vunpack.i.h.bf16 %v4504_v3  ;;  %v4505_v62 = vunpack.i.l.bf16 %v4504_v3 }
 0x193   : > { %v4499_v33 = vpop.permute.xlu1 %4498  ;;  %v1924_v57 = vsel %vm1895_vm4, %v1891_v61, %v4495_v31  ;;  %v1925_v34 = vsel %vm1895_vm4, %v1892_v58, %v4496_v56  ;;  %v5773_v61 = vld [vmem:[%s6126_s4] ss:$0 sm:$0xff] }
 0x194   : > { %v4501_v36 = vunpack.i.h.bf16 %v4499_v33  ;;  %v4500_v28 = vunpack.i.l.bf16 %v4499_v33 }
 0x195   : > { %v4514_v4 = vpop.permute.xlu0 %4513 }
 0x196   : > { %v1957_v5 = vsel %vm1928_vm5, %v1924_v57, %v4500_v28  ;;  %v1958_v12 = vsel %vm1928_vm5, %v1925_v34, %v4501_v36  ;;  %v4516_v48 = vunpack.i.h.bf16 %v4514_v4  ;;  %v4515_v6 = vunpack.i.l.bf16 %v4514_v4 }
 0x197   : > { %v4509_v51 = vpop.permute.xlu1 %4508  ;;  %v1990_v16 = vsel %vm1961_vm6, %v1957_v5, %v4505_v62  ;;  %v1991_v18 = vsel %vm1961_vm6, %v1958_v12, %v4506_v35 }
 0x198   : > { %v4511_v7 = vunpack.i.h.bf16 %v4509_v51  ;;  %v4510_v8 = vunpack.i.l.bf16 %v4509_v51 }
 0x199   : > { %v4524_v13 = vpop.permute.xlu0 %4523 }
 0x19a   : > { %v2023_v20 = vsel %vm1994_vm7, %v1990_v16, %v4510_v8  ;;  %v2024_v21 = vsel %vm1994_vm7, %v1991_v18, %v4511_v7  ;;  %v4526_v26 = vunpack.i.h.bf16 %v4524_v13  ;;  %v4525_v30 = vunpack.i.l.bf16 %v4524_v13  ;;  %v4682_v16 = vld [vmem:[%s6127_s5] sm:$0xff]   ;;  %v2566_v18 = vld [vmem:[#allocation3 + $0x1] ss:$2 sm:$0xff] }
 0x19b   : > { %v4519_v59 = vpop.permute.xlu1 %4518  ;;  %v2056_v60 = vsel %vm2027_vm8, %v2023_v20, %v4515_v6  ;;  %v2057_v23 = vsel %vm2027_vm8, %v2024_v21, %v4516_v48  ;;  %3843 = vmatpush3.bf16.msra.mxu1 %v4682_v16 }
 0x19c   : > { %v4521_v10 = vunpack.i.h.bf16 %v4519_v59  ;;  %v4520_v11 = vunpack.i.l.bf16 %v4519_v59  ;;  %v2088_v25 = vpack.c.bf16 %v2057_v23, %v2056_v60  ;;  %v4683_v59 = vld [vmem:[%s6127_s5 + $0x48] sm:$0xff]  }
 0x19d   : > { %v4534_v27 = vpop.permute.xlu0 %4533  ;;  %3844 = vmatprep.subr.bf16.mxu1 %v4683_v59 }
 0x19e   : > { %v1861_v37 = vsel %vm571_vm1, %v4706_v24, %v4521_v10  ;;  %v1860_v39 = vsel %vm571_vm1, %v4707_v38, %v4520_v11  ;;  %2357 = vmatmul.mubr.bf16.gmra.mrb[56].mxu0 %v2088_v25  ;;  %v4536_v42 = vunpack.i.h.bf16 %v4534_v27  ;;  %v4535_v43 = vunpack.i.l.bf16 %v4534_v27  ;;  %v2582_v11 = vld [vmem:[#allocation3 + $0x2] ss:$2 sm:$0xff]  ;;  %v4684_v27 = vld [vmem:[%s6127_s5 + $0x8] sm:$0xff]  }
 0x19f   : > { %v4529_v32 = vpop.permute.xlu1 %4528  ;;  %3790 = vmatprep.mubr.msk.bf16.mxu0 %vm571_vm1, %v2091_v29  ;;  %v1893_v19 = vsel %vm1862_vm0, %v1860_v39, %v4525_v30  ;;  %v1894_v63 = vsel %vm1862_vm0, %v1861_v37, %v4526_v26  ;;  %3845 = vmatpush3.bf16.msra.mxu1 %v4684_v27  ;;  %v4685_v37 = vld [vmem:[%s6127_s5 + $0x50] sm:$0xff]  }
 0x1a0   : > { %v4531_v40 = vunpack.i.h.bf16 %v4529_v32  ;;  %v4530_v17 = vunpack.i.l.bf16 %v4529_v32  ;;  %v4686_v32 = vld [vmem:[%s6127_s5 + $0x10] sm:$0xff]   ;;  %3846 = vmatprep.subr.bf16.mxu1 %v4685_v37 }
 0x1a1   : > { %v4544_v46 = vpop.permute.xlu0 %4543 }
 0x1a2   : > { %v1926_v44 = vsel %vm1895_vm4, %v1893_v19, %v4530_v17  ;;  %v1927_v45 = vsel %vm1895_vm4, %v1894_v63, %v4531_v40  ;;  %v4546_v52 = vunpack.i.h.bf16 %v4544_v46  ;;  %v4545_v53 = vunpack.i.l.bf16 %v4544_v46  ;;  %v4687_v40 = vld [vmem:[%s6127_s5 + $0x58] sm:$0xff]  }
 0x1a3   : > { %v4539_v47 = vpop.permute.xlu1 %4538  ;;  %v1959_v22 = vsel %vm1928_vm5, %v1926_v44, %v4535_v43  ;;  %v1960_v49 = vsel %vm1928_vm5, %v1927_v45, %v4536_v42  ;;  %3847 = vmatpush3.bf16.msra.mxu1 %v4686_v32  ;;  %v4688_v17 = vld [vmem:[%s6127_s5 + $0x18] sm:$0xff]   ;;  %v4689_v42 = vld [vmem:[%s6127_s5 + $0x60] sm:$0xff]  }
 0x1a4   : > { %v4541_v1 = vunpack.i.h.bf16 %v4539_v47  ;;  %v4540_v41 = vunpack.i.l.bf16 %v4539_v47  ;;  %3848 = vmatprep.subr.bf16.mxu1 %v4687_v40  ;;  %v4690_v45 = vld [vmem:[%s6127_s5 + $0x20] sm:$0xff]  }
 0x1a6   : > { %v1992_v9 = vsel %vm1961_vm6, %v1959_v22, %v4540_v41  ;;  %v1993_v50 = vsel %vm1961_vm6, %v1960_v49, %v4541_v1  ;;  %v4691_v49 = vld [vmem:[%s6127_s5 + $0x68] sm:$0xff]  }
 0x1a7   : > { %v4549_v54 = vpop.permute.xlu1 %4548  ;;  %v2025_v3 = vsel %vm1994_vm7, %v1992_v9, %v4545_v53  ;;  %v2026_v56 = vsel %vm1994_vm7, %v1993_v50, %v4546_v52  ;;  %3849 = vmatpush3.bf16.msra.mxu1 %v4688_v17  ;;  %v4692_v53 = vld [vmem:[%s6127_s5 + $0x28] sm:$0xff]  }
 0x1a8   : > { %v4551_v2 = vunpack.i.h.bf16 %v4549_v54  ;;  %v4550_v55 = vunpack.i.l.bf16 %v4549_v54  ;;  %3850 = vmatprep.subr.bf16.mxu1 %v4689_v42 }
 0x1aa   : > { %v2058_v31 = vsel %vm2027_vm8, %v2025_v3, %v4550_v55  ;;  %v2059_v58 = vsel %vm2027_vm8, %v2026_v56, %v4551_v2  ;;  %v4693_v2 = vld [vmem:[%s6127_s5 + $0x70] sm:$0xff]   ;;  %v4695_v56 = vld [vmem:[%s6127_s5 + $0x78] sm:$0xff]  }
 0x1ab   : > { %v2090_v33 = vpack.c.bf16 %v2059_v58, %v2058_v31  ;;  %3851 = vmatpush3.bf16.msra.mxu1 %v4690_v45  ;;  %v4694_v3 = vld [vmem:[%s6127_s5 + $0x30] sm:$0xff]   ;;  %v4696_v31 = vld [vmem:[%s6127_s5 + $0x38] sm:$0xff]  }
 0x1ac   : > { %3852 = vmatprep.subr.bf16.mxu1 %v4691_v49 }
 0x1ad   : > { %v2246_v36 = vpop.f32.mrb[0].mxu0  ;;  %2365 = vmatmul.mubr.bf16.gmra.mrb[60].mxu0 %v2090_v33 }
 0x1ae   : > { %vm2373_vm11 = vcmp.gt.f32.partialorder %v2246_v36, 0.0  ;;  %v2412_v28 = vmul.f32 %v5773_v61, %v2246_v36  ;;  %v2248_v4 = vpop.f32.mrb[1].mxu0 }
 0x1af   : > { %v2249_v57 = vpop.f32.mrb[2].mxu0  ;;  %3853 = vmatpush3.bf16.msra.mxu1 %v4692_v53 }
 0x1b0   : > { %v2444_v34 = vsel %vm2373_vm11, %v2246_v36, %v2412_v28  ;;  %vm2374_vm12 = vcmp.gt.f32.partialorder %v2249_v57, 0.0  ;;  %v2413_v35 = vmul.f32 %v5773_v61, %v2249_v57  ;;  %v2251_v62 = vpop.f32.mrb[3].mxu0  ;;  %3854 = vmatprep.subr.bf16.mxu1 %v4693_v2 }
 0x1b1   : > { %2477 = vst.msk [vmem:[#allocation3 + $0x19] sm:$0xff] %vm1862_vm0, %v2444_v34 }
 0x1b2   : > { %v2445_v5 = vsel %vm2374_vm12, %v2249_v57, %v2413_v35 }
 0x1b3   : > { %2478 = vst.msk [vmem:[#allocation3 + $0x21] sm:$0xff] %vm1862_vm0, %v2445_v5  ;;  %3855 = vmatpush3.bf16.msra.mxu1 %v4694_v3 }
 0x1b4   : > { %3856 = vmatprep.subr.bf16.mxu1 %v4695_v56 }
 0x1b7   : > { %3857 = vmatpush3.bf16.msra.mxu1 %v4696_v31 }
 0x1ba   : > { %v2629_v19 = vld [vmem:[#allocation3 + $0x1a] ss:$2 sm:$0xff] }
 0x1bb   : > { %v2597_v63 = vld [vmem:[#allocation3 + $0x18] ss:$2 sm:$0xff] }
 0x1bc   : > { %v2254_v12 = vpop.f32.mrb[4].mxu0 }
 0x1bd   : > { %vm2375_vm13 = vcmp.gt.f32.partialorder %v2254_v12, 0.0  ;;  %v2414_v51 = vmul.f32 %v5773_v61, %v2254_v12  ;;  %v2256_v48 = vpop.f32.mrb[5].mxu0 }
 0x1be   : > { %v2257_v6 = vpop.f32.mrb[6].mxu0 }
 0x1bf   : > { %v2446_v7 = vsel %vm2375_vm13, %v2254_v12, %v2414_v51  ;;  %vm2376_vm14 = vcmp.gt.f32.partialorder %v2257_v6, 0.0  ;;  %v2415_v8 = vmul.f32 %v5773_v61, %v2257_v6  ;;  %v2259_v13 = vpop.f32.mrb[7].mxu0 }
 0x1c0   : > { %2479 = vst.msk [vmem:[#allocation3 + $0x31] sm:$0xff] %vm1862_vm0, %v2446_v7 }
 0x1c1   : > { %v2447_v14 = vsel %vm2376_vm14, %v2257_v6, %v2415_v8 }
 0x1c2   : > { %2480 = vst.msk [vmem:[#allocation3 + $0x39] sm:$0xff] %vm1862_vm0, %v2447_v14 }
 0x1c9   : > { %v2262_v20 = vpop.f32.mrb[8].mxu0  ;;  %v2568_v21 = vld [vmem:[#allocation3 + $0x31] ss:$2 sm:$0xff]  ;;  %v2584_v25 = vld [vmem:[#allocation3 + $0x32] ss:$2 sm:$0xff] }
 0x1ca   : > { %vm2377_vm15 = vcmp.gt.f32.partialorder %v2262_v20, 0.0  ;;  %v2416_v60 = vmul.f32 %v5773_v61, %v2262_v20  ;;  %v2264_v23 = vpop.f32.mrb[9].mxu0  ;;  %v4552_v29 = vpack.i.bf16 %v2568_v21, %v2566_v18  ;;  %v4557_v39 = vpack.i.bf16 %v2584_v25, %v2582_v11  ;;  %v2645_v33 = vld [vmem:[#allocation3 + $0x30] ss:$2 sm:$0xff]  ;;  %v2661_v51 = vld [vmem:[#allocation3 + $0x31] ss:$2 sm:$0xff] }
 0x1cb   : > { %v2265_v10 = vpop.f32.mrb[10].mxu0 }
 0x1cc   : > { %v2448_v26 = vsel %vm2377_vm15, %v2262_v20, %v2416_v60  ;;  %vm2378_vm2 = vcmp.gt.f32.partialorder %v2265_v10, 0.0  ;;  %v2417_v30 = vmul.f32 %v5773_v61, %v2265_v10  ;;  %4553 = vrot.lane.b32.xlu1 %v4552_v29, %s6145_s16  ;;  %v2267_v24 = vpop.f32.mrb[11].mxu0 }
 0x1cd   : > { %2481 = vst.msk [vmem:[#allocation3 + $0x49] sm:$0xff] %vm1862_vm0, %v2448_v26 }
 0x1ce   : > { %v2449_v38 = vsel %vm2378_vm2, %v2265_v10, %v2417_v30 }
 0x1cf   : > { %2482 = vst.msk [vmem:[#allocation3 + $0x51] sm:$0xff] %vm1862_vm0, %v2449_v38 }
 0x1d0   : > { %4558 = vrot.lane.b32.xlu1 %v4557_v39, %s6156_s15 }
 0x1d6   : > { %v2631_v43 = vld [vmem:[#allocation3 + $0x4a] ss:$2 sm:$0xff] }
 0x1d7   : > { %v2599_v44 = vld [vmem:[#allocation3 + $0x48] ss:$2 sm:$0xff]  ;;  %v4562_v46 = vpack.i.bf16 %v2631_v43, %v2629_v19 }
 0x1d8   : > { %v4567_v47 = vpack.i.bf16 %v2599_v44, %v2597_v63  ;;  %v2270_v1 = vpop.f32.mrb[12].mxu0 }
 0x1d9   : > { %vm2379_vm3 = vcmp.gt.f32.partialorder %v2270_v1, 0.0  ;;  %v2418_v41 = vmul.f32 %v5773_v61, %v2270_v1  ;;  %4563 = vrot.lane.b32.xlu0 %v4562_v46, %s6145_s16  ;;  %v2272_v22 = vpop.f32.mrb[13].mxu0  ;;  %s6158_s16 = smov 32  }
 0x1da   : > { %4568 = vrot.lane.b32.xlu1 %v4567_v47, %s6157_s25  ;;  %v2273_v52 = vpop.f32.mrb[14].mxu0 }
 0x1db   : > { %v2450_v9 = vsel %vm2379_vm3, %v2270_v1, %v2418_v41  ;;  %vm2380_vm4 = vcmp.gt.f32.partialorder %v2273_v52, 0.0  ;;  %v2419_v50 = vmul.f32 %v5773_v61, %v2273_v52  ;;  %v2275_v54 = vpop.f32.mrb[15].mxu0 }
 0x1dc   : > { %2483 = vst.msk [vmem:[#allocation3 + $0x61] sm:$0xff] %vm1862_vm0, %v2450_v9 }
 0x1dd   : > { %v2451_v55 = vsel %vm2380_vm4, %v2273_v52, %v2419_v50 }
 0x1de   : > { %2484 = vst.msk [vmem:[#allocation3 + $0x69] sm:$0xff] %vm1862_vm0, %v2451_v55 }
 0x1e5   : > { %v2278_v58 = vpop.f32.mrb[16].mxu0  ;;  %v2647_v36 = vld [vmem:[#allocation3 + $0x60] ss:$2 sm:$0xff]  ;;  %v2663_v35 = vld [vmem:[#allocation3 + $0x61] ss:$2 sm:$0xff] }
 0x1e6   : > { %vm2381_vm6 = vcmp.gt.f32.partialorder %v2278_v58, 0.0  ;;  %v2420_v28 = vmul.f32 %v5773_v61, %v2278_v58  ;;  %v2280_v4 = vpop.f32.mrb[17].mxu0  ;;  %v4572_v57 = vpack.i.bf16 %v2647_v36, %v2645_v33  ;;  %v4577_v6 = vpack.i.bf16 %v2663_v35, %v2661_v51  ;;  %v2570_v59 = vld [vmem:[#allocation3 + $0x61] ss:$2 sm:$0xff]  ;;  %v2586_v24 = vld [vmem:[#allocation3 + $0x62] ss:$2 sm:$0xff] }
 0x1e7   : > { %v2281_v34 = vpop.f32.mrb[18].mxu0 }
 0x1e8   : > { %v2452_v62 = vsel %vm2381_vm6, %v2278_v58, %v2420_v28  ;;  %vm2382_vm8 = vcmp.gt.f32.partialorder %v2281_v34, 0.0  ;;  %v2421_v5 = vmul.f32 %v5773_v61, %v2281_v34  ;;  %4573 = vrot.lane.b32.xlu0 %v4572_v57, %s6156_s15  ;;  %v2283_v12 = vpop.f32.mrb[19].mxu0 }
 0x1e9   : > { %2485 = vst.msk [vmem:[#allocation3 + $0x79] sm:$0xff] %vm1862_vm0, %v2452_v62 }
 0x1ea   : > { %v2453_v48 = vsel %vm2382_vm8, %v2281_v34, %v2421_v5 }
 0x1eb   : > { %2486 = vst.msk [vmem:[#allocation3 + $0x81] sm:$0xff] %vm1862_vm0, %v2453_v48 }
 0x1ec   : > { %4578 = vrot.lane.b32.xlu0 %v4577_v6, %s6157_s25 }
 0x1f2   : > { %v2633_v39 = vld [vmem:[#allocation3 + $0x7a] ss:$2 sm:$0xff] }
 0x1f3   : > { %v2601_v40 = vld [vmem:[#allocation3 + $0x78] ss:$2 sm:$0xff] }
 0x1f4   : > { %v2286_v7 = vpop.f32.mrb[20].mxu0 }
 0x1f5   : > { %vm2383_vm9 = vcmp.gt.f32.partialorder %v2286_v7, 0.0  ;;  %v2422_v8 = vmul.f32 %v5773_v61, %v2286_v7  ;;  %v2288_v13 = vpop.f32.mrb[21].mxu0 }
 0x1f6   : > { %v2289_v14 = vpop.f32.mrb[22].mxu0 }
 0x1f7   : > { %v2454_v15 = vsel %vm2383_vm9, %v2286_v7, %v2422_v8  ;;  %vm2384_vm10 = vcmp.gt.f32.partialorder %v2289_v14, 0.0  ;;  %v2423_v16 = vmul.f32 %v5773_v61, %v2289_v14  ;;  %v2291_v18 = vpop.f32.mrb[23].mxu0 }
 0x1f8   : > { %2487 = vst.msk [vmem:[#allocation3 + $0x91] sm:$0xff] %vm1862_vm0, %v2454_v15 }
 0x1f9   : > { %v2455_v20 = vsel %vm2384_vm10, %v2289_v14, %v2423_v16 }
 0x1fa   : > { %2488 = vst.msk [vmem:[#allocation3 + $0x99] sm:$0xff] %vm1862_vm0, %v2455_v20 }
 0x201   : > { %v2294_v21 = vpop.f32.mrb[24].mxu0  ;;  %v2572_v60 = vld [vmem:[#allocation3 + $0x91] ss:$2 sm:$0xff]  ;;  %v2588_v25 = vld [vmem:[#allocation3 + $0x92] ss:$2 sm:$0xff] }
 0x202   : > { %vm2385_vm11 = vcmp.gt.f32.partialorder %v2294_v21, 0.0  ;;  %v2424_v23 = vmul.f32 %v5773_v61, %v2294_v21  ;;  %v2296_v29 = vpop.f32.mrb[25].mxu0  ;;  %v4582_v10 = vpack.i.bf16 %v2572_v60, %v2570_v59  ;;  %v4587_v38 = vpack.i.bf16 %v2588_v25, %v2586_v24  ;;  %v2649_v49 = vld [vmem:[#allocation3 + $0x90] ss:$2 sm:$0xff]  ;;  %v2665_v31 = vld [vmem:[#allocation3 + $0x91] ss:$2 sm:$0xff] }
 0x203   : > { %v2297_v11 = vpop.f32.mrb[26].mxu0 }
 0x204   : > { %v2456_v27 = vsel %vm2385_vm11, %v2294_v21, %v2424_v23  ;;  %vm2386_vm12 = vcmp.gt.f32.partialorder %v2297_v11, 0.0  ;;  %v2425_v26 = vmul.f32 %v5773_v61, %v2297_v11  ;;  %4583 = vrot.lane.b32.xlu1 %v4582_v10, %s6158_s16  ;;  %v2299_v30 = vpop.f32.mrb[27].mxu0 }
 0x205   : > { %2489 = vst.msk [vmem:[#allocation3 + $0xa9] sm:$0xff] %vm1862_vm0, %v2456_v27 }
 0x206   : > { %v2457_v37 = vsel %vm2386_vm12, %v2297_v11, %v2425_v26 }
 0x207   : > { %2490 = vst.msk [vmem:[#allocation3 + $0xb1] sm:$0xff] %vm1862_vm0, %v2457_v37 }
 0x208   : > { %4588 = vrot.lane.b32.xlu1 %v4587_v38, %s6156_s15 }
 0x20e   : > { %v2635_v32 = vld [vmem:[#allocation3 + $0xaa] ss:$2 sm:$0xff] }
 0x20f   : > { %v2603_v17 = vld [vmem:[#allocation3 + $0xa8] ss:$2 sm:$0xff]  ;;  %v4592_v19 = vpack.i.bf16 %v2635_v32, %v2633_v39 }
 0x210   : > { %v4597_v63 = vpack.i.bf16 %v2603_v17, %v2601_v40  ;;  %v2302_v42 = vpop.f32.mrb[28].mxu0 }
 0x211   : > { %vm2387_vm13 = vcmp.gt.f32.partialorder %v2302_v42, 0.0  ;;  %v2426_v43 = vmul.f32 %v5773_v61, %v2302_v42  ;;  %4593 = vrot.lane.b32.xlu0 %v4592_v19, %s6158_s16  ;;  %v2304_v44 = vpop.f32.mrb[29].mxu0 }
 0x212   : > { %4598 = vrot.lane.b32.xlu1 %v4597_v63, %s6157_s25  ;;  %v2305_v45 = vpop.f32.mrb[30].mxu0 }
 0x213   : > { %v2458_v46 = vsel %vm2387_vm13, %v2302_v42, %v2426_v43  ;;  %vm2388_vm14 = vcmp.gt.f32.partialorder %v2305_v45, 0.0  ;;  %v2427_v47 = vmul.f32 %v5773_v61, %v2305_v45  ;;  %v2307_v1 = vpop.f32.mrb[31].mxu0 }
 0x214   : > { %2491 = vst.msk [vmem:[#allocation3 + $0xc1] sm:$0xff] %vm1862_vm0, %v2458_v46 }
 0x215   : > { %v2459_v41 = vsel %vm2388_vm14, %v2305_v45, %v2427_v47 }
 0x216   : > { %2492 = vst.msk [vmem:[#allocation3 + $0xc9] sm:$0xff] %vm1862_vm0, %v2459_v41 }
 0x21d   : > { %v2310_v22 = vpop.f32.mrb[32].mxu0  ;;  %v2651_v52 = vld [vmem:[#allocation3 + $0xc0] ss:$2 sm:$0xff]  ;;  %v2667_v2 = vld [vmem:[#allocation3 + $0xc1] ss:$2 sm:$0xff] }
 0x21e   : > { %vm2389_vm15 = vcmp.gt.f32.partialorder %v2310_v22, 0.0  ;;  %v2428_v53 = vmul.f32 %v5773_v61, %v2310_v22  ;;  %v2312_v9 = vpop.f32.mrb[33].mxu0  ;;  %v4602_v50 = vpack.i.bf16 %v2651_v52, %v2649_v49  ;;  %v4607_v33 = vpack.i.bf16 %v2667_v2, %v2665_v31  ;;  %v2574_v51 = vld [vmem:[#allocation3 + $0xc1] ss:$2 sm:$0xff]  ;;  %v2590_v20 = vld [vmem:[#allocation3 + $0xc2] ss:$2 sm:$0xff] }
 0x21f   : > { %v2313_v54 = vpop.f32.mrb[34].mxu0 }
 0x220   : > { %v2460_v55 = vsel %vm2389_vm15, %v2310_v22, %v2428_v53  ;;  %vm2390_vm2 = vcmp.gt.f32.partialorder %v2313_v54, 0.0  ;;  %v2429_v3 = vmul.f32 %v5773_v61, %v2313_v54  ;;  %4603 = vrot.lane.b32.xlu0 %v4602_v50, %s6156_s15  ;;  %v2315_v56 = vpop.f32.mrb[35].mxu0 }
 0x221   : > { %2493 = vst.msk [vmem:[#allocation3 + $0xd9] sm:$0xff] %vm1862_vm0, %v2460_v55 }
 0x222   : > { %v2461_v58 = vsel %vm2390_vm2, %v2313_v54, %v2429_v3  ;;  %v2550_v54 = vld [vmem:[#allocation3] ss:$2 sm:$0xff] }
 0x223   : > { %2494 = vst.msk [vmem:[#allocation3 + $0xe1] sm:$0xff] %vm1862_vm0, %v2461_v58 }
 0x224   : > { %4608 = vrot.lane.b32.xlu0 %v4607_v33, %s6157_s25 }
 0x22a   : > { %v2637_v60 = vld [vmem:[#allocation3 + $0xda] ss:$2 sm:$0xff] }
 0x22b   : > { %v2605_v29 = vld [vmem:[#allocation3 + $0xd8] ss:$2 sm:$0xff] }
 0x22c   : > { %v2318_v36 = vpop.f32.mrb[36].mxu0 }
 0x22d   : > { %vm2391_vm3 = vcmp.gt.f32.partialorder %v2318_v36, 0.0  ;;  %v2430_v28 = vmul.f32 %v5773_v61, %v2318_v36  ;;  %v2320_v4 = vpop.f32.mrb[37].mxu0 }
 0x22e   : > { %v2321_v57 = vpop.f32.mrb[38].mxu0 }
 0x22f   : > { %v2462_v34 = vsel %vm2391_vm3, %v2318_v36, %v2430_v28  ;;  %vm2392_vm4 = vcmp.gt.f32.partialorder %v2321_v57, 0.0  ;;  %v2431_v35 = vmul.f32 %v5773_v61, %v2321_v57  ;;  %v2323_v62 = vpop.f32.mrb[39].mxu0  ;;  %v2552_v36 = vld [vmem:[#allocation3 + $0x30] ss:$2 sm:$0xff] }
 0x230   : > { %2495 = vst.msk [vmem:[#allocation3 + $0xf1] sm:$0xff] %vm1862_vm0, %v2462_v34 }
 0x231   : > { %v2463_v5 = vsel %vm2392_vm4, %v2321_v57, %v2431_v35 }
 0x232   : > { %2496 = vst.msk [vmem:[#allocation3 + $0xf9] sm:$0xff] %vm1862_vm0, %v2463_v5 }
 0x239   : > { %v2326_v12 = vpop.f32.mrb[40].mxu0  ;;  %v2576_v48 = vld [vmem:[#allocation3 + $0xf1] ss:$2 sm:$0xff]  ;;  %v2592_v14 = vld [vmem:[#allocation3 + $0xf2] ss:$2 sm:$0xff] }
 0x23a   : > { %vm2393_vm6 = vcmp.gt.f32.partialorder %v2326_v12, 0.0  ;;  %v2432_v6 = vmul.f32 %v5773_v61, %v2326_v12  ;;  %v2328_v7 = vpop.f32.mrb[41].mxu0  ;;  %v4612_v8 = vpack.i.bf16 %v2576_v48, %v2574_v51  ;;  %v4617_v59 = vpack.i.bf16 %v2592_v14, %v2590_v20  ;;  %v2653_v63 = vld [vmem:[#allocation3 + $0xf0] ss:$2 sm:$0xff]  ;;  %v2669_v50 = vld [vmem:[#allocation3 + $0xf1] ss:$2 sm:$0xff] }
 0x23b   : > { %v2329_v13 = vpop.f32.mrb[42].mxu0  ;;  %v2613_v48 = vld [vmem:[#allocation3 + $0x19] ss:$2 sm:$0xff] }
 0x23c   : > { %v2464_v15 = vsel %vm2393_vm6, %v2326_v12, %v2432_v6  ;;  %vm2394_vm8 = vcmp.gt.f32.partialorder %v2329_v13, 0.0  ;;  %v2433_v16 = vmul.f32 %v5773_v61, %v2329_v13  ;;  %4613 = vrot.lane.b32.xlu1 %v4612_v8, %s6158_s16  ;;  %v2331_v18 = vpop.f32.mrb[43].mxu0  ;;  %v2615_v6 = vld [vmem:[#allocation3 + $0x49] ss:$2 sm:$0xff]  ;;  %vm4818_vm6 = vmmov 0  }
 0x23d   : > { %2497 = vst.msk [vmem:[#allocation3 + $0x109] sm:$0xff] %vm1862_vm0, %v2464_v15 }
 0x23e   : > { %v2465_v21 = vsel %vm2394_vm8, %v2329_v13, %v2433_v16  ;;  %v4554_v40 = vpop.permute.xlu1 %4553  ;;  %vm3349_vm8 = vcmask 1040384  }
 0x23f   : > { %2498 = vst.msk [vmem:[#allocation3 + $0x111] sm:$0xff] %vm1862_vm0, %v2465_v21  ;;  %v4556_v52 = vunpack.i.h.bf16 %v4554_v40  ;;  %v4555_v53 = vunpack.i.l.bf16 %v4554_v40 }
 0x240   : > { %4618 = vrot.lane.b32.xlu1 %v4617_v59, %s6156_s15 }
 0x241   : > { %v2884_v35 = vsel %vm1862_vm0, %v2550_v54, %v4555_v53  ;;  %v2885_v62 = vsel %vm1862_vm0, %v2552_v36, %v4556_v52 }
 0x242   : > { %v4559_v17 = vpop.permute.xlu1 %4558 }
 0x243   : > { %v4561_v2 = vunpack.i.h.bf16 %v4559_v17  ;;  %v4560_v55 = vunpack.i.l.bf16 %v4559_v17 }
 0x245   : > { %v2892_v5 = vsel %vm1928_vm5, %v2884_v35, %v4560_v55  ;;  %v2893_v12 = vsel %vm1928_vm5, %v2885_v62, %v4561_v2 }
 0x246   : > { %v2639_v23 = vld [vmem:[#allocation3 + $0x10a] ss:$2 sm:$0xff] }
 0x247   : > { %v2607_v10 = vld [vmem:[#allocation3 + $0x108] ss:$2 sm:$0xff]  ;;  %v4622_v11 = vpack.i.bf16 %v2639_v23, %v2637_v60 }
 0x248   : > { %v4627_v25 = vpack.i.bf16 %v2607_v10, %v2605_v29  ;;  %v2334_v27 = vpop.f32.mrb[44].mxu0 }
 0x249   : > { %vm2395_vm9 = vcmp.gt.f32.partialorder %v2334_v27, 0.0  ;;  %v2434_v26 = vmul.f32 %v5773_v61, %v2334_v27  ;;  %4623 = vrot.lane.b32.xlu0 %v4622_v11, %s6158_s16  ;;  %v2336_v30 = vpop.f32.mrb[45].mxu0 }
 0x24a   : > { %4628 = vrot.lane.b32.xlu1 %v4627_v25, %s6157_s25  ;;  %v2337_v24 = vpop.f32.mrb[46].mxu0 }
 0x24b   : > { %v2466_v37 = vsel %vm2395_vm9, %v2334_v27, %v2434_v26  ;;  %vm2396_vm10 = vcmp.gt.f32.partialorder %v2337_v24, 0.0  ;;  %v2435_v38 = vmul.f32 %v5773_v61, %v2337_v24  ;;  %v2339_v39 = vpop.f32.mrb[47].mxu0  ;;  %v4564_v43 = vpop.permute.xlu0 %4563  ;;  %vm3345_vm9 = vcmask 15360  }
 0x24c   : > { %2499 = vst.msk [vmem:[#allocation3 + $0x121] sm:$0xff] %vm1862_vm0, %v2466_v37  ;;  %v4569_v9 = vpop.permute.xlu1 %4568  ;;  %v4566_v58 = vunpack.i.h.bf16 %v4564_v43  ;;  %v4565_v33 = vunpack.i.l.bf16 %v4564_v43 }
 0x24d   : > { %v2467_v32 = vsel %vm2396_vm10, %v2337_v24, %v2435_v38  ;;  %v4571_v28 = vunpack.i.h.bf16 %v4569_v9  ;;  %v4570_v4 = vunpack.i.l.bf16 %v4569_v9 }
 0x24e   : > { %2500 = vst.msk [vmem:[#allocation3 + $0x129] sm:$0xff] %vm1862_vm0, %v2467_v32  ;;  %v2908_v13 = vsel %vm1862_vm0, %v2613_v48, %v4565_v33  ;;  %v2909_v14 = vsel %vm1862_vm0, %v2615_v6, %v4566_v58  ;;  %v4698_v33 = vld [vmem:[%s6127_s5 + $0x88] sm:$0xff]  }
 0x24f   : > { %v2900_v18 = vsel %vm1994_vm7, %v2892_v5, %v4570_v4  ;;  %v2901_v20 = vsel %vm1994_vm7, %v2893_v12, %v4571_v28 }
 0x250   : > { %v2932_v23 = vpack.c.bf16 %v2901_v20, %v2900_v18 }
 0x255   : > { %v2342_v19 = vpop.f32.mrb[48].mxu0  ;;  %v2655_v42 = vld [vmem:[#allocation3 + $0x120] ss:$2 sm:$0xff]  ;;  %v2671_v1 = vld [vmem:[#allocation3 + $0x121] ss:$2 sm:$0xff] }
 0x256   : > { %vm2397_vm11 = vcmp.gt.f32.partialorder %v2342_v19, 0.0  ;;  %v2436_v44 = vmul.f32 %v5773_v61, %v2342_v19  ;;  %v2344_v45 = vpop.f32.mrb[49].mxu0  ;;  %v4632_v46 = vpack.i.bf16 %v2655_v42, %v2653_v63  ;;  %v4637_v31 = vpack.i.bf16 %v2671_v1, %v2669_v50  ;;  %v2578_v38 = vld [vmem:[#allocation3 + $0x121] ss:$2 sm:$0xff]  ;;  %v4697_v1 = vld [vmem:[%s6127_s5 + $0x80] sm:$0xff]  }
 0x257   : > { %v2345_v47 = vpop.f32.mrb[50].mxu0  ;;  %v2594_v45 = vld [vmem:[#allocation3 + $0x122] ss:$2 sm:$0xff]  ;;  %3898 = vmatprep.subr.bf16.mxu1 %v4697_v1 }
 0x258   : > { %v2468_v41 = vsel %vm2397_vm11, %v2342_v19, %v2436_v44  ;;  %vm2398_vm12 = vcmp.gt.f32.partialorder %v2345_v47, 0.0  ;;  %v2437_v22 = vmul.f32 %v5773_v61, %v2345_v47  ;;  %4633 = vrot.lane.b32.xlu0 %v4632_v46, %s6156_s15  ;;  %v2347_v49 = vpop.f32.mrb[51].mxu0 }
 0x259   : > { %2501 = vst.msk [vmem:[#allocation3 + $0x139] sm:$0xff] %vm1862_vm0, %v2468_v41 }
 0x25a   : > { %v2469_v3 = vsel %vm2398_vm12, %v2345_v47, %v2437_v22  ;;  %v4574_v56 = vpop.permute.xlu0 %4573 }
 0x25b   : > { %2502 = vst.msk [vmem:[#allocation3 + $0x141] sm:$0xff] %vm1862_vm0, %v2469_v3  ;;  %v4576_v57 = vunpack.i.h.bf16 %v4574_v56  ;;  %v4575_v34 = vunpack.i.l.bf16 %v4574_v56 }
 0x25c   : > { %4638 = vrot.lane.b32.xlu0 %v4637_v31, %s6157_s25 }
 0x25d   : > { %v2916_v15 = vsel %vm1928_vm5, %v2908_v13, %v4575_v34  ;;  %v2917_v16 = vsel %vm1928_vm5, %v2909_v14, %v4576_v57 }
 0x25e   : > { %v4579_v51 = vpop.permute.xlu0 %4578 }
 0x25f   : > { %v4581_v7 = vunpack.i.h.bf16 %v4579_v51  ;;  %v4580_v8 = vunpack.i.l.bf16 %v4579_v51 }
 0x261   : > { %v2924_v21 = vsel %vm1994_vm7, %v2916_v15, %v4580_v8  ;;  %v2925_v59 = vsel %vm1994_vm7, %v2917_v16, %v4581_v7  ;;  %v2554_v15 = vld [vmem:[#allocation3 + $0x60] ss:$2 sm:$0xff]  ;;  %v2556_v16 = vld [vmem:[#allocation3 + $0x90] ss:$2 sm:$0xff] }
 0x262   : > { %v2933_v60 = vpack.c.bf16 %v2925_v59, %v2924_v21  ;;  %v2641_v41 = vld [vmem:[#allocation3 + $0x13a] ss:$2 sm:$0xff] }
 0x263   : > { %v2609_v49 = vld [vmem:[#allocation3 + $0x138] ss:$2 sm:$0xff] }
 0x264   : > { %v2350_v29 = vpop.f32.mrb[52].mxu0  ;;  %3132 = vmatprep.mubr.bf16.mxu1 %v2933_v60 }
 0x265   : > { %vm2399_vm13 = vcmp.gt.f32.partialorder %v2350_v29, 0.0  ;;  %v2438_v10 = vmul.f32 %v5773_v61, %v2350_v29  ;;  %v2352_v11 = vpop.f32.mrb[53].mxu0  ;;  %3133 = vmatmul.mubr.bf16.vlgmr.msra.gmra.mrb[0].mxu1 %v2932_v23 }
 0x266   : > { %v2353_v25 = vpop.f32.mrb[54].mxu0  ;;  %3899 = vmatpush3.bf16.msra.mxu1 %v4697_v1  ;;  %v2617_v11 = vld [vmem:[#allocation3 + $0x79] ss:$2 sm:$0xff] }
 0x267   : > { %v2470_v27 = vsel %vm2399_vm13, %v2350_v29, %v2438_v10  ;;  %vm2400_vm14 = vcmp.gt.f32.partialorder %v2353_v25, 0.0  ;;  %v2439_v26 = vmul.f32 %v5773_v61, %v2353_v25  ;;  %v2355_v30 = vpop.f32.mrb[55].mxu0  ;;  %3900 = vmatprep.subr.bf16.mxu1 %v4698_v33 }
 0x268   : > { %2503 = vst.msk [vmem:[#allocation3 + $0x151] sm:$0xff] %vm1862_vm0, %v2470_v27 }
 0x269   : > { %v2471_v24 = vsel %vm2400_vm14, %v2353_v25, %v2439_v26  ;;  %v2619_v25 = vld [vmem:[#allocation3 + $0xa9] ss:$2 sm:$0xff] }
 0x26a   : > { %2504 = vst.msk [vmem:[#allocation3 + $0x159] sm:$0xff] %vm1862_vm0, %v2471_v24  ;;  %3901 = vmatpush3.bf16.msra.mxu1 %v4698_v33 }
 0x26b   : > { %3910 = vmatprep.subr.bf16.mxu1 %v4809_v0 }
 0x271   : > { %v2358_v37 = vpop.f32.mrb[56].mxu0  ;;  %v2580_v39 = vld [vmem:[#allocation3 + $0x151] ss:$2 sm:$0xff]  ;;  %v2596_v63 = vld [vmem:[#allocation3 + $0x152] ss:$2 sm:$0xff] }
 0x272   : > { %vm2401_vm15 = vcmp.gt.f32.partialorder %v2358_v37, 0.0  ;;  %v2440_v32 = vmul.f32 %v5773_v61, %v2358_v37  ;;  %v2360_v40 = vpop.f32.mrb[57].mxu0  ;;  %v4642_v17 = vpack.i.bf16 %v2580_v39, %v2578_v38  ;;  %v4647_v47 = vpack.i.bf16 %v2596_v63, %v2594_v45  ;;  %v2657_v4 = vld [vmem:[#allocation3 + $0x150] ss:$2 sm:$0xff]  ;;  %v2673_v51 = vld [vmem:[#allocation3 + $0x151] ss:$2 sm:$0xff] }
 0x273   : > { %v2361_v19 = vpop.f32.mrb[58].mxu0 }
 0x274   : > { %v2472_v42 = vsel %vm2401_vm15, %v2358_v37, %v2440_v32  ;;  %vm2402_vm2 = vcmp.gt.f32.partialorder %v2361_v19, 0.0  ;;  %v2441_v43 = vmul.f32 %v5773_v61, %v2361_v19  ;;  %4643 = vrot.lane.b32.xlu1 %v4642_v17, %s6158_s16  ;;  %v2363_v44 = vpop.f32.mrb[59].mxu0 }
 0x275   : > { %2505 = vst.msk [vmem:[#allocation3 + $0x169] sm:$0xff] %vm1862_vm0, %v2472_v42 }
 0x276   : > { %v2473_v46 = vsel %vm2402_vm2, %v2361_v19, %v2441_v43  ;;  %v4584_v36 = vpop.permute.xlu1 %4583 }
 0x277   : > { %2506 = vst.msk [vmem:[#allocation3 + $0x171] sm:$0xff] %vm1862_vm0, %v2473_v46  ;;  %v4586_v62 = vunpack.i.h.bf16 %v4584_v36  ;;  %v4585_v5 = vunpack.i.l.bf16 %v4584_v36  ;;  %v2621_v36 = vld [vmem:[#allocation3 + $0xd9] ss:$2 sm:$0xff] }
 0x278   : > { %4648 = vrot.lane.b32.xlu1 %v4647_v47, %s6156_s15 }
 0x279   : > { %v2886_v60 = vsel %vm1862_vm0, %v2554_v15, %v4585_v5  ;;  %v2887_v23 = vsel %vm1862_vm0, %v2556_v16, %v4586_v62 }
 0x27a   : > { %v4589_v28 = vpop.permute.xlu1 %4588 }
 0x27b   : > { %v4591_v48 = vunpack.i.h.bf16 %v4589_v28  ;;  %v4590_v6 = vunpack.i.l.bf16 %v4589_v28  ;;  %v2623_v28 = vld [vmem:[#allocation3 + $0x109] ss:$2 sm:$0xff] }
 0x27d   : > { %v2894_v29 = vsel %vm1928_vm5, %v2886_v60, %v4590_v6  ;;  %v2895_v10 = vsel %vm1928_vm5, %v2887_v23, %v4591_v48 }
 0x27e   : > { %v2643_v22 = vld [vmem:[#allocation3 + $0x16a] ss:$2 sm:$0xff] }
 0x27f   : > { %v2611_v52 = vld [vmem:[#allocation3 + $0x168] ss:$2 sm:$0xff]  ;;  %v4652_v53 = vpack.i.bf16 %v2643_v22, %v2641_v41 }
 0x280   : > { %v4667_v9 = vpack.i.bf16 %v2611_v52, %v2609_v49  ;;  %v2366_v50 = vpop.f32.mrb[60].mxu0 }
 0x281   : > { %vm2403_vm3 = vcmp.gt.f32.partialorder %v2366_v50, 0.0  ;;  %v2442_v54 = vmul.f32 %v5773_v61, %v2366_v50  ;;  %4653 = vrot.lane.b32.xlu0 %v4652_v53, %s6158_s16  ;;  %v2368_v2 = vpop.f32.mrb[61].mxu0 }
 0x282   : > { %4668 = vrot.lane.b32.xlu1 %v4667_v9, %s6157_s25  ;;  %v2369_v55 = vpop.f32.mrb[62].mxu0  ;;  %v2558_v9 = vld [vmem:[#allocation3 + $0xc0] ss:$2 sm:$0xff] }
 0x283   : > { %v2474_v3 = vsel %vm2403_vm3, %v2366_v50, %v2442_v54  ;;  %vm2404_vm4 = vcmp.gt.f32.partialorder %v2369_v55, 0.0  ;;  %v2443_v56 = vmul.f32 %v5773_v61, %v2369_v55  ;;  %v2371_v31 = vpop.f32.mrb[63].mxu0  ;;  %v4594_v34 = vpop.permute.xlu0 %4593  ;;  %v2560_v50 = vld [vmem:[#allocation3 + $0xf0] ss:$2 sm:$0xff] }
 0x284   : > { %2507 = vst.msk [vmem:[#allocation3 + $0x181] sm:$0xff] %vm1862_vm0, %v2474_v3  ;;  %v4599_v12 = vpop.permute.xlu1 %4598  ;;  %v4596_v13 = vunpack.i.h.bf16 %v4594_v34  ;;  %v4595_v14 = vunpack.i.l.bf16 %v4594_v34 }
 0x285   : > { %v2475_v58 = vsel %vm2404_vm4, %v2369_v55, %v2443_v56  ;;  %v4601_v18 = vunpack.i.h.bf16 %v4599_v12  ;;  %v4600_v20 = vunpack.i.l.bf16 %v4599_v12 }
 0x286   : > { %2508 = vst.msk [vmem:[#allocation3 + $0x189] sm:$0xff] %vm1862_vm0, %v2475_v58  ;;  %v2910_v26 = vsel %vm1862_vm0, %v2617_v11, %v4595_v14  ;;  %v2911_v30 = vsel %vm1862_vm0, %v2619_v25, %v4596_v13  ;;  %v2564_v11 = vld [vmem:[#allocation3 + $0x150] ss:$2 sm:$0xff] }
 0x287   : > { %v2902_v32 = vsel %vm1994_vm7, %v2894_v29, %v4600_v20  ;;  %v2903_v40 = vsel %vm1994_vm7, %v2895_v10, %v4601_v18  ;;  %v2562_v10 = vld [vmem:[#allocation3 + $0x120] ss:$2 sm:$0xff] }
 0x288   : > { %v2935_v42 = vpack.c.bf16 %v2903_v40, %v2902_v32  ;;  %v2625_v32 = vld [vmem:[#allocation3 + $0x139] ss:$2 sm:$0xff]  ;;  %v2627_v40 = vld [vmem:[#allocation3 + $0x169] ss:$2 sm:$0xff] }
 0x28d   : > { %v2659_v57 = vld [vmem:[#allocation3 + $0x180] ss:$2 sm:$0xff]  ;;  %v2675_v35 = vld [vmem:[#allocation3 + $0x181] ss:$2 sm:$0xff] }
 0x28e   : > { %v4657_v61 = vpack.i.bf16 %v2659_v57, %v2657_v4  ;;  %v4662_v8 = vpack.i.bf16 %v2675_v35, %v2673_v51 }
 0x290   : > { %4658 = vrot.lane.b32.xlu0 %v4657_v61, %s6156_s15 }
 0x292   : > { %v4604_v7 = vpop.permute.xlu0 %4603 }
 0x293   : > { %v4606_v21 = vunpack.i.h.bf16 %v4604_v7  ;;  %v4605_v59 = vunpack.i.l.bf16 %v4604_v7 }
 0x294   : > { %4663 = vrot.lane.b32.xlu0 %v4662_v8, %s6157_s25 }
 0x295   : > { %v2919_v38 = vsel %vm1928_vm5, %v2911_v30, %v4606_v21  ;;  %v2918_v39 = vsel %vm1928_vm5, %v2910_v26, %v4605_v59 }
 0x296   : > { %v4609_v27 = vpop.permute.xlu0 %4608 }
 0x297   : > { %v4611_v24 = vunpack.i.h.bf16 %v4609_v27  ;;  %v4610_v37 = vunpack.i.l.bf16 %v4609_v27 }
 0x299   : > { %v2926_v17 = vsel %vm1994_vm7, %v2918_v39, %v4610_v37  ;;  %v2927_v19 = vsel %vm1994_vm7, %v2919_v38, %v4611_v24 }
 0x29a   : > { %v2936_v63 = vpack.c.bf16 %v2927_v19, %v2926_v17 }
 0x29c   : > { %3140 = vmatprep.mubr.bf16.mxu1 %v2936_v63 }
 0x29d   : > { %3141 = vmatmul.mubr.bf16.gmra.mrb[4].mxu1 %v2935_v42 }
 0x2ae   : > { %v4614_v43 = vpop.permute.xlu1 %4613 }
 0x2af   : > { %v4616_v46 = vunpack.i.h.bf16 %v4614_v43  ;;  %v4615_v47 = vunpack.i.l.bf16 %v4614_v43 }
 0x2b1   : > { %v2888_v56 = vsel %vm1862_vm0, %v2558_v9, %v4615_v47  ;;  %v2889_v31 = vsel %vm1862_vm0, %v2560_v50, %v4616_v46  ;;  %v2683_v50 = vld [vmem:[#allocation3 + $0xc2] ss:$2 sm:$0xff] }
 0x2b2   : > { %v4619_v44 = vpop.permute.xlu1 %4618 }
 0x2b3   : > { %v4621_v41 = vunpack.i.h.bf16 %v4619_v44  ;;  %v4620_v22 = vunpack.i.l.bf16 %v4619_v44 }
 0x2b5   : > { %v2896_v58 = vsel %vm1928_vm5, %v2888_v56, %v4620_v22  ;;  %v2897_v33 = vsel %vm1928_vm5, %v2889_v31, %v4621_v41  ;;  %v2679_v22 = vld [vmem:[#allocation3 + $0x62] ss:$2 sm:$0xff] }
 0x2b6   : > { %v2691_v31 = vld [vmem:[#allocation3 + $0x182] ss:$2 sm:$0xff] }
 0x2bb   : > { %v4624_v45 = vpop.permute.xlu0 %4623 }
 0x2bc   : > { %v4629_v1 = vpop.permute.xlu1 %4628  ;;  %v4626_v52 = vunpack.i.h.bf16 %v4624_v45  ;;  %v4625_v53 = vunpack.i.l.bf16 %v4624_v45 }
 0x2bd   : > { %v4631_v54 = vunpack.i.h.bf16 %v4629_v1  ;;  %v4630_v2 = vunpack.i.l.bf16 %v4629_v1 }
 0x2be   : > { %v2912_v57 = vsel %vm1862_vm0, %v2621_v36, %v4625_v53  ;;  %v2913_v34 = vsel %vm1862_vm0, %v2623_v28, %v4626_v52  ;;  %v2677_v53 = vld [vmem:[#allocation3 + $0x32] ss:$2 sm:$0xff] }
 0x2bf   : > { %v2904_v12 = vsel %vm1994_vm7, %v2896_v58, %v4630_v2  ;;  %v2905_v51 = vsel %vm1994_vm7, %v2897_v33, %v4631_v54  ;;  %v2934_v9 = vpack.c.bf16 %v2679_v22, %v2677_v53  ;;  %v2687_v54 = vld [vmem:[#allocation3 + $0x122] ss:$2 sm:$0xff]  ;;  %v2681_v2 = vld [vmem:[#allocation3 + $0x92] ss:$2 sm:$0xff] }
 0x2c0   : > { %v2938_v8 = vpack.c.bf16 %v2905_v51, %v2904_v12  ;;  %v2689_v58 = vld [vmem:[#allocation3 + $0x152] ss:$2 sm:$0xff] }
 0x2c1   : > { %v2943_v33 = vpack.c.bf16 %v2691_v31, %v2689_v58 }
 0x2ca   : > { %v4634_v49 = vpop.permute.xlu0 %4633 }
 0x2cb   : > { %v4636_v55 = vunpack.i.h.bf16 %v4634_v49  ;;  %v4635_v3 = vunpack.i.l.bf16 %v4634_v49 }
 0x2cd   : > { %v2921_v62 = vsel %vm1928_vm5, %v2913_v34, %v4636_v55  ;;  %v2920_v5 = vsel %vm1928_vm5, %v2912_v57, %v4635_v3  ;;  %v2937_v55 = vpack.c.bf16 %v2683_v50, %v2681_v2  ;;  %v2685_v3 = vld [vmem:[#allocation3 + $0xf2] ss:$2 sm:$0xff] }
 0x2ce   : > { %v4639_v4 = vpop.permute.xlu0 %4638  ;;  %v2940_v56 = vpack.c.bf16 %v2687_v54, %v2685_v3 }
 0x2cf   : > { %v4641_v61 = vunpack.i.h.bf16 %v4639_v4  ;;  %v4640_v35 = vunpack.i.l.bf16 %v4639_v4 }
 0x2d1   : > { %v2928_v48 = vsel %vm1994_vm7, %v2920_v5, %v4640_v35  ;;  %v2929_v6 = vsel %vm1994_vm7, %v2921_v62, %v4641_v61 }
 0x2d2   : > { %v2939_v7 = vpack.c.bf16 %v2929_v6, %v2928_v48  ;;  %v4699_v6 = vld [vmem:[%s6130_s8] sm:$0xff]  }
 0x2d4   : > { %3148 = vmatprep.mubr.bf16.mxu1 %v2939_v7  ;;  %v4700_v7 = vld [vmem:[%s6130_s8 + $0x8] sm:$0xff]  }
 0x2d5   : > { %3149 = vmatmul.mubr.bf16.gmra.mrb[8].mxu1 %v2938_v8 }
 0x2e6   : > { %v4644_v13 = vpop.permute.xlu1 %4643 }
 0x2e7   : > { %v4646_v16 = vunpack.i.h.bf16 %v4644_v13  ;;  %v4645_v18 = vunpack.i.l.bf16 %v4644_v13 }
 0x2e9   : > { %v2890_v24 = vsel %vm1862_vm0, %v2562_v10, %v4645_v18  ;;  %v2891_v37 = vsel %vm1862_vm0, %v2564_v11, %v4646_v16 }
 0x2ea   : > { %v4649_v14 = vpop.permute.xlu1 %4648 }
 0x2eb   : > { %v4651_v21 = vunpack.i.h.bf16 %v4649_v14  ;;  %v4650_v59 = vunpack.i.l.bf16 %v4649_v14 }
 0x2ed   : > { %v2898_v38 = vsel %vm1928_vm5, %v2890_v24, %v4650_v59  ;;  %v2899_v39 = vsel %vm1928_vm5, %v2891_v37, %v4651_v21  ;;  %v3815_v24 = vld [vmem:[%s6129_s7] ss:$0 sm:$0xff] }
 0x2f3   : > { %v4654_v15 = vpop.permute.xlu0 %4653 }
 0x2f4   : > { %v4669_v20 = vpop.permute.xlu1 %4668  ;;  %v4656_v23 = vunpack.i.h.bf16 %v4654_v15  ;;  %v4655_v29 = vunpack.i.l.bf16 %v4654_v15 }
 0x2f5   : > { %v4671_v25 = vunpack.i.h.bf16 %v4669_v20  ;;  %v4670_v27 = vunpack.i.l.bf16 %v4669_v20 }
 0x2f6   : > { %v2914_v19 = vsel %vm1862_vm0, %v2625_v32, %v4655_v29  ;;  %v2915_v63 = vsel %vm1862_vm0, %v2627_v40, %v4656_v23 }
 0x2f7   : > { %v2906_v46 = vsel %vm1994_vm7, %v2898_v38, %v4670_v27  ;;  %v2907_v47 = vsel %vm1994_vm7, %v2899_v39, %v4671_v25  ;;  %v3814_v25 = vld [vmem:[%s6128_s6] ss:$0 sm:$0xff] }
 0x2f8   : > { %v2941_v52 = vpack.c.bf16 %v2907_v47, %v2906_v46 }
 0x302   : > { %v4659_v60 = vpop.permute.xlu0 %4658 }
 0x303   : > { %v4661_v26 = vunpack.i.h.bf16 %v4659_v60  ;;  %v4660_v30 = vunpack.i.l.bf16 %v4659_v60 }
 0x305   : > { %v2923_v44 = vsel %vm1928_vm5, %v2915_v63, %v4661_v26  ;;  %v2922_v45 = vsel %vm1928_vm5, %v2914_v19, %v4660_v30 }
 0x306   : > { %v4664_v17 = vpop.permute.xlu0 %4663 }
 0x307   : > { %v4666_v42 = vunpack.i.h.bf16 %v4664_v17  ;;  %v4665_v43 = vunpack.i.l.bf16 %v4664_v17 }
 0x309   : > { %v2930_v1 = vsel %vm1994_vm7, %v2922_v45, %v4665_v43  ;;  %v2931_v41 = vsel %vm1994_vm7, %v2923_v44, %v4666_v42 }
 0x30a   : > { %v2942_v49 = vpack.c.bf16 %v2931_v41, %v2930_v1 }
 0x30c   : > { %3156 = vmatprep.mubr.bf16.mxu1 %v2942_v49 }
 0x30d   : > { %3157 = vmatmul.mubr.bf16.gmra.mrb[12].mxu1 %v2941_v52 }
 0x30e   : > { %3902 = vmatprep.mubr.msk.bf16.mxu1 %vm1862_vm0, %v2934_v9 }
 0x315   : > { %3903 = vmatmul.mubr.msk.bf16.vlgmr.msra.gmra.mrb[16].mxu1 %vm1862_vm0, %v2937_v55 }
 0x316   : > { %3906 = vmatprep.mubr.msk.bf16.mxu1 %vm1862_vm0, %v2940_v56  ;;  %3911 = vmatpush3.bf16.msra.mxu1 %v4699_v6 }
 0x317   : > { %3912 = vmatprep.subr.bf16.mxu1 %v4809_v0 }
 0x31a   : > { %3913 = vmatpush3.bf16.msra.mxu1 %v4700_v7 }
 0x31b   : > { %3918 = vmatprep.subr.bf16.mxu1 %v4809_v0 }
 0x31d   : > { %3907 = vmatmul.mubr.msk.bf16.gmra.mrb[20].mxu1 %vm1862_vm0, %v2943_v33 }
 0x31e   : > { %3914 = vmatprep.mubr.msk.bf16.mxu1 %vm4818_vm6, %v4809_v0 }
 0x338   : > { %v3858_v36 = vpop.f32.mrb[0].mxu1 }
 0x339   : > { %v3859_v28 = vpop.f32.mrb[1].mxu1 }
 0x33a   : > { %v3860_v4 = vadd.f32 %v3859_v28, %v3858_v36  ;;  %v3861_v57 = vpop.f32.mrb[2].mxu1 }
 0x33b   : > { %v3862_v34 = vpop.f32.mrb[3].mxu1 }
 0x33c   : > { %v3863_v61 = vadd.f32 %v3862_v34, %v3861_v57 }
 0x370   : > { %v3864_v35 = vpop.f32.mrb[4].mxu1 }
 0x371   : > { %v3865_v62 = vpop.f32.mrb[5].mxu1 }
 0x372   : > { %v3866_v5 = vadd.f32 %v3865_v62, %v3864_v35  ;;  %v3867_v12 = vpop.f32.mrb[6].mxu1 }
 0x373   : > { %v3868_v51 = vpop.f32.mrb[7].mxu1 }
 0x374   : > { %v3869_v48 = vadd.f32 %v3868_v51, %v3867_v12 }
 0x3a8   : > { %v3870_v8 = vpop.f32.mrb[8].mxu1 }
 0x3a9   : > { %v3871_v13 = vpop.f32.mrb[9].mxu1 }
 0x3aa   : > { %v3872_v14 = vadd.f32 %v3871_v13, %v3870_v8  ;;  %v3873_v15 = vpop.f32.mrb[10].mxu1 }
 0x3ab   : > { %v3874_v16 = vpop.f32.mrb[11].mxu1 }
 0x3ac   : > { %v3875_v18 = vadd.f32 %v3874_v16, %v3873_v15  ;;  %v3344_v16 = vld [vmem:[%s6131_s9] sm:$0x1] }
 0x3e0   : > { %v3876_v20 = vpop.f32.mrb[12].mxu1 }
 0x3e1   : > { %v3877_v21 = vpop.f32.mrb[13].mxu1 }
 0x3e2   : > { %v3878_v59 = vadd.f32 %v3877_v21, %v3876_v20  ;;  %v3879_v60 = vpop.f32.mrb[14].mxu1  ;;  %v3351_v21 = vsel %vm3349_vm8, %v3344_v16, 0 }
 0x3e3   : > { %v3880_v23 = vpop.f32.mrb[15].mxu1 }
 0x3e4   : > { %v3881_v29 = vadd.f32 %v3880_v23, %v3879_v60  ;;  %v3399_v60 = vld [vmem:[%s4998_s18] ss:$2 sm:$0xff] }
 0x3e5   : > { %v3821_v23 = vld [vmem:[%s4998_s18 + $0x20] ss:$2 sm:$0xff] }
 0x3e8   : > { %v3904_v10 = vpop.f32.mrb[16].mxu1 }
 0x3e9   : > { %v3208_v11 = vadd.f32 %v3904_v10, %v3866_v5  ;;  %v3199_v27 = vpop.f32.mrb[17].mxu1 }
 0x3ea   : > { %v3200_v26 = vadd.f32 %v3860_v4, %v3199_v27  ;;  %v3905_v30 = vpop.f32.mrb[18].mxu1  ;;  %v3414_v27 = vpack.c.bf16 %v3821_v23, %v3399_v60 }
 0x3eb   : > { %v3211_v37 = vadd.f32 %v3905_v30, %v3869_v48  ;;  %v3202_v38 = vpop.f32.mrb[19].mxu1  ;;  %v3239_v39 = vmul.f32 %v3814_v25, %v3208_v11  ;;  %v3822_v30 = vld [vmem:[%s4998_s18 + $0x40] ss:$2 sm:$0xff] }
 0x3ec   : > { %v3237_v32 = vmul.f32 %v3814_v25, %v3200_v26  ;;  %v3203_v40 = vadd.f32 %v3863_v61, %v3202_v38  ;;  %v3825_v38 = vld [vmem:[%s4998_s18 + $0xa0] ss:$2 sm:$0xff] }
 0x3ed   : > { %v3240_v19 = vmul.f32 %v3814_v25, %v3211_v37  ;;  %v5988_v42 = vadd.f32 %v3815_v24, %v3239_v39  ;;  %v3824_v37 = vld [vmem:[%s4998_s18 + $0x80] ss:$2 sm:$0xff] }
 0x3ee   : > { %v5986_v17 = vadd.f32 %v3815_v24, %v3237_v32  ;;  %v3238_v63 = vmul.f32 %v3814_v25, %v3203_v40  ;;  %v3416_v32 = vpack.c.bf16 %v3825_v38, %v3824_v37  ;;  %v3826_v40 = vld [vmem:[%s4998_s18 + $0xc0] ss:$2 sm:$0xff] }
 0x3ef   : > { %v5994_v1 = vadd.f32 %v3815_v24, %v3240_v19  ;;  %v3263_v50 = vsel %vm1862_vm0, %v5988_v42, 0.0  ;;  %v3827_v19 = vld [vmem:[%s4998_s18 + $0xe0] ss:$2 sm:$0xff] }
 0x3f0   : > { %v5990_v43 = vadd.f32 %v3815_v24, %v3238_v63  ;;  %v3908_v44 = vpop.f32.mrb[20].mxu1  ;;  %v3260_v47 = vsel %vm1862_vm0, %v5986_v17, 0.0  ;;  %v3417_v63 = vpack.c.bf16 %v3827_v19, %v3826_v40 }
 0x3f1   : > { %v3224_v45 = vadd.f32 %v3908_v44, %v3878_v59  ;;  %v3215_v46 = vpop.f32.mrb[21].mxu1  ;;  %v3265_v56 = vsel %vm1862_vm0, %v5994_v1, 0.0  ;;  %v4701_v59 = vld [vmem:[%s6132_s10] sm:$0xff]  }
 0x3f2   : > { %v3261_v41 = vsel %vm1862_vm0, %v5990_v43, 0.0  ;;  %v3216_v22 = vadd.f32 %v3872_v14, %v3215_v46  ;;  %v3909_v49 = vpop.f32.mrb[22].mxu1 }
 0x3f3   : > { %v3262_v52 = vadd.f32 %v3261_v41, %v3260_v47  ;;  %v3227_v53 = vadd.f32 %v3909_v49, %v3881_v29  ;;  %v3218_v9 = vpop.f32.mrb[23].mxu1  ;;  %v3243_v54 = vmul.f32 %v3814_v25, %v3224_v45 }
 0x3f4   : > { %v3241_v2 = vmul.f32 %v3814_v25, %v3216_v22  ;;  %v3219_v55 = vadd.f32 %v3875_v18, %v3218_v9 }
 0x3f5   : > { %v3264_v3 = vadd.f32 %v3263_v50, %v3262_v52  ;;  %v3244_v58 = vmul.f32 %v3814_v25, %v3227_v53  ;;  %v6004_v28 = vadd.f32 %v3815_v24, %v3243_v54  ;;  %v3533_v54 = vlaneseq }
 0x3f6   : > { %v6002_v31 = vadd.f32 %v3815_v24, %v3241_v2  ;;  %v3242_v33 = vmul.f32 %v3814_v25, %v3219_v55 }
 0x3f7   : > { %v3266_v36 = vadd.f32 %v3265_v56, %v3264_v3  ;;  %v6010_v61 = vadd.f32 %v3815_v24, %v3244_v58  ;;  %v3271_v5 = vsel %vm1862_vm0, %v6004_v28, 0.0  ;;  %v3534_v56 = vshrl.u32 %v3533_v54, 7  ;;  %v3833_v58 = vld [vmem:[%s6133_s11] ss:$0 sm:$0xff] }
 0x3f8   : > { %v3267_v4 = vsel %vm1862_vm0, %v6002_v31, 0.0  ;;  %v6008_v57 = vadd.f32 %v3815_v24, %v3242_v33  ;;  %v3823_v24 = vld [vmem:[%s4998_s18 + $0x60] ss:$2 sm:$0xff] }
 0x3f9   : > { %v3268_v34 = vadd.f32 %v3267_v4, %v3266_v36  ;;  %v3273_v51 = vsel %vm1862_vm0, %v6010_v61, 0.0  ;;  %v3415_v39 = vpack.c.bf16 %v3823_v24, %v3822_v30  ;;  %v3535_v4 = vsub.s32 0, %v3534_v56 }
 0x3fa   : > { %v3269_v35 = vsel %vm1862_vm0, %v6008_v57, 0.0 }
 0x3fb   : > { %v3270_v62 = vadd.f32 %v3269_v35, %v3268_v34  ;;  %v3834_v34 = vld [vmem:[%s6134_s12] ss:$0 sm:$0xff] }
 0x3fd   : > { %v3272_v12 = vadd.f32 %v3271_v5, %v3270_v62 }
 0x3ff   : > { %v3274_v48 = vadd.f32 %v3273_v51, %v3272_v12 }
 0x401   : > { %v3275_v6 = vrot.slane %v3274_v48, 4 }
 0x403   : > { %v3276_v7 = vadd.f32 %v3275_v6, %v3274_v48 }
 0x405   : > { %v3277_v8 = vrot.slane %v3276_v7, 2 }
 0x407   : > { %v3278_v13 = vadd.f32 %v3277_v8, %v3276_v7 }
 0x409   : > { %v3279_v14 = vrot.slane %v3278_v13, 1 }
 0x40b   : > { %v3280_v15 = vadd.f32 %v3279_v14, %v3278_v13 }
 0x40d   : > { %v3281_v18 = vmul.f32 0.015625, %v3280_v15 }
 0x40f   : > { %v3282_v20 = vpack.c.bf16 %v3281_v18, %v3281_v18 }
 0x411   : > { %3915 = vmatmul.mubr.msk.bf16.vlgmr.msra.gmra.mrb[24].mxu1 %vm1862_vm0, %v3282_v20 }
 0x412   : > { %3919 = vmatpush3.bf16.msra.mxu1 %v3351_v21  ;;  %3920 = vmatprep.mubr.msk.bf16.mxu1 %vm4818_vm6, %v4809_v0 }
 0x413   : > { %3924 = vmatprep.subr.bf16.mxu1 %v4701_v59 }
 0x4e4   : > { %v3336_v29 = vpop.f32.mrb[24].mxu1 }
 0x4e5   : > { %v3342_v10 = vmax.f32 %v3336_v29, 0.0  ;;  %v3916_v11 = vpop.f32.mrb[25].mxu1 }
 0x4e6   : > { %v3339_v25 = vpop.f32.mrb[26].mxu1 }
 0x4e7   : > { %v3343_v0 = vpack.c.bf16 %v3342_v10, %v3342_v10  ;;  %v3917_v26 = vpop.f32.mrb[27].mxu1 }
 0x4e9   : > { %3921 = vmatmul.mubr.msk.bf16.vlgmr.msra.gmra.mrb[28].mxu1 %vm3345_vm9, %v3343_v0 }
 0x4ea   : > { %3925 = vmatpush3.bf16.msra.mxu1 %v4701_v59  ;;  %3926 = vmatprep.mubr.msk.bf16.mxu1 %vm571_vm1, %v3414_v27 }
 0x4f1   : > { %3927 = vmatmul.mubr.msk.bf16.vlgmr.msra.gmra.mrb[32].mxu1 %vm571_vm1, %v3415_v39 }
 0x4f2   : > { %3930 = vmatprep.mubr.msk.bf16.mxu1 %vm571_vm1, %v3416_v32 }
 0x4f9   : > { %3931 = vmatmul.mubr.msk.bf16.gmra.mrb[36].mxu1 %vm571_vm1, %v3417_v63 }
 0x5bc   : > { %v3387_v44 = vpop.f32.mrb[28].mxu1 }
 0x5bd   : > { %v3820_v45 = vmul.f32 -1.442695, %v3387_v44  ;;  %v3922_v46 = vpop.f32.mrb[29].mxu1 }
 0x5be   : > { %v3390_v47 = vpop.f32.mrb[30].mxu1 }
 0x5bf   : > { %4702 = vpow2.f32 %v3820_v45  ;;  %v3923_v41 = vpop.f32.mrb[31].mxu1 }
 0x5c4   : > { %v3928_v22 = vpop.f32.mrb[32].mxu1 }
 0x5c5   : > { %v3472_v49 = vpop.f32.mrb[33].mxu1  ;;  %v3512_v36 = vmul.f32 %v3928_v22, %v3833_v58 }
 0x5c6   : > { %v3929_v52 = vpop.f32.mrb[34].mxu1  ;;  %v3510_v35 = vmul.f32 %v3833_v58, %v3472_v49 }
 0x5c7   : > { %v3475_v53 = vpop.f32.mrb[35].mxu1  ;;  %v3513_v62 = vmul.f32 %v3929_v52, %v3833_v58  ;;  %v3527_v8 = vadd.f32 %v3834_v34, %v3512_v36 }
 0x5c8   : > { %v3511_v5 = vmul.f32 %v3833_v58, %v3475_v53  ;;  %v3525_v14 = vadd.f32 %v3834_v34, %v3510_v35 }
 0x5c9   : > { %v4703_v9 = vpop.eup %4702  ;;  %v3528_v15 = vadd.f32 %v3834_v34, %v3513_v62 }
 0x5ca   : > { %v3396_v50 = vadd.f32 1.0, %v4703_v9  ;;  %v3526_v16 = vadd.f32 %v3834_v34, %v3511_v5 }
 0x5cc   : > { %4704 = vrcp.f32 %v3396_v50  ;;  %v3932_v2 = vpop.f32.mrb[36].mxu1 }
 0x5cd   : > { %v3488_v55 = vpop.f32.mrb[37].mxu1  ;;  %v3516_v12 = vmul.f32 %v3932_v2, %v3833_v58 }
 0x5ce   : > { %v3933_v3 = vpop.f32.mrb[38].mxu1  ;;  %v3514_v51 = vmul.f32 %v3833_v58, %v3488_v55 }
 0x5cf   : > { %v3491_v33 = vpop.f32.mrb[39].mxu1  ;;  %v3517_v48 = vmul.f32 %v3933_v3, %v3833_v58  ;;  %v3531_v18 = vadd.f32 %v3834_v34, %v3516_v12 }
 0x5d0   : > { %v3515_v6 = vmul.f32 %v3833_v58, %v3491_v33  ;;  %v3529_v20 = vadd.f32 %v3834_v34, %v3514_v51 }
 0x5d1   : > { %v3532_v21 = vadd.f32 %v3834_v34, %v3517_v48 }
 0x5d2   : > { %v3530_v59 = vadd.f32 %v3834_v34, %v3515_v6 }
 0x5d6   : > { %v4705_v7 = vpop.eup %4704 }
 0x5d7   : > { %v3536_v13 = vrot.slane %v4705_v7, %v3535_v4 }
 0x5d9   : > { %v3539_v60 = vmul.f32 %v3536_v13, %v5988_v42  ;;  %v3537_v23 = vmul.f32 %v3536_v13, %v5986_v17  ;;  %v3540_v29 = vmul.f32 %v3536_v13, %v5994_v1  ;;  %v3538_v10 = vmul.f32 %v3536_v13, %v5990_v43 }
 0x5da   : > { %v3543_v11 = vmul.f32 %v3536_v13, %v6004_v28  ;;  %v3541_v25 = vmul.f32 %v3536_v13, %v6002_v31  ;;  %v3544_v27 = vmul.f32 %v3536_v13, %v6010_v61  ;;  %v3542_v0 = vmul.f32 %v3536_v13, %v6008_v57 }
 0x5db   : > { %v3547_v26 = vadd.f32 %v3539_v60, %v3527_v8  ;;  %v3545_v30 = vadd.f32 %v3537_v23, %v3525_v14  ;;  %v3548_v24 = vadd.f32 %v3540_v29, %v3528_v15  ;;  %v3546_v37 = vadd.f32 %v3538_v10, %v3526_v16 }
 0x5dc   : > { %v3551_v38 = vadd.f32 %v3543_v11, %v3531_v18  ;;  %v3549_v42 = vadd.f32 %v3541_v25, %v3529_v20  ;;  %v3552_v39 = vadd.f32 %v3544_v27, %v3532_v21  ;;  %v3550_v17 = vadd.f32 %v3542_v0, %v3530_v59 }
 0x5dd   : > { %3555 = vst.msk [vmem:[#allocation4 + $0x10] sm:$0xff] %vm1862_vm0, %v3547_v26  ;;  %3553 = vst.msk [vmem:[#allocation4] sm:$0xff] %vm1862_vm0, %v3545_v30 }
 0x5de   : > { %3556 = vst.msk [vmem:[#allocation4 + $0x18] sm:$0xff] %vm1862_vm0, %v3548_v24  ;;  %3554 = vst.msk [vmem:[#allocation4 + $0x8] sm:$0xff] %vm1862_vm0, %v3546_v37 }
 0x5df   : > { %3559 = vst.msk [vmem:[#allocation4 + $0x30] sm:$0xff] %vm1862_vm0, %v3551_v38  ;;  %3557 = vst.msk [vmem:[#allocation4 + $0x20] sm:$0xff] %vm1862_vm0, %v3549_v42 }
 0x5e0   : > { %3560 = vst.msk [vmem:[#allocation4 + $0x38] sm:$0xff] %vm1862_vm0, %v3552_v39  ;;  %3558 = vst.msk [vmem:[#allocation4 + $0x28] sm:$0xff] %vm1862_vm0, %v3550_v17 }
 0x5e5   : > { %v3581_v43 = vld [vmem:[#allocation4 + $0x5] ss:$8 sm:$0xf]  ;;  %v3565_v1 = vld [vmem:[#allocation4 + $0x1] ss:$8 sm:$0xf] }
 0x5e6   : > { %v3585_v32 = vld [vmem:[#allocation4 + $0x6] ss:$8 sm:$0xf]  ;;  %v3569_v19 = vld [vmem:[#allocation4 + $0x2] ss:$8 sm:$0xf] }
 0x5e7   : > { %v3582_v31 = vld [vmem:[#allocation4 + $0x5] ss:$8 sm:$0xf0]  ;;  %v3566_v28 = vld [vmem:[#allocation4 + $0x1] ss:$8 sm:$0xf0] }
 0x5e8   : > { %v3583_v57 = vor.u32 %v3582_v31, %v3581_v43  ;;  %v3567_v61 = vor.u32 %v3566_v28, %v3565_v1  ;;  %v3586_v40 = vld [vmem:[#allocation4 + $0x6] ss:$8 sm:$0xf0]  ;;  %v3570_v63 = vld [vmem:[#allocation4 + $0x2] ss:$8 sm:$0xf0] }
 0x5e9   : > { %v3587_v44 = vor.u32 %v3586_v40, %v3585_v32  ;;  %v3571_v45 = vor.u32 %v3570_v63, %v3569_v19  ;;  %v3589_v46 = vld [vmem:[#allocation4 + $0x7] ss:$8 sm:$0xf]  ;;  %v3573_v41 = vld [vmem:[#allocation4 + $0x3] ss:$8 sm:$0xf] }
 0x5ea   : > { %3605 = vrot.lane.b32.xlu1 %v3583_v57, %s6158_s16  ;;  %3593 = vrot.lane.b32.xlu0 %v3567_v61, %s6158_s16  ;;  %v3590_v47 = vld [vmem:[#allocation4 + $0x7] ss:$8 sm:$0xf0]  ;;  %v3574_v22 = vld [vmem:[#allocation4 + $0x3] ss:$8 sm:$0xf0] }
 0x5eb   : > { %v3591_v49 = vor.u32 %v3590_v47, %v3589_v46  ;;  %v3575_v52 = vor.u32 %v3574_v22, %v3573_v41  ;;  %v3577_v50 = vld [vmem:[#allocation4 + $0x4] ss:$8 sm:$0xf]  ;;  %v3561_v2 = vld [vmem:[#allocation4] ss:$8 sm:$0xf] }
 0x5ec   : > { %v3578_v54 = vld [vmem:[#allocation4 + $0x4] ss:$8 sm:$0xf0]  ;;  %v3562_v55 = vld [vmem:[#allocation4] ss:$8 sm:$0xf0] }
 0x5ed   : > { %s458_s16 = scalar_lea.vmem [#allocation8], %s3763_s17  ;;  %v3579_v58 = vor.u32 %v3578_v54, %v3577_v50  ;;  %v3563_v33 = vor.u32 %v3562_v55, %v3561_v2 }
 0x5ee   : > { %3609 = vrot.lane.b32.xlu1 %v3587_v44, %s6156_s15  ;;  %3597 = vrot.lane.b32.xlu0 %v3571_v45, %s6156_s15  ;;  %s3639_s23 = sshll.u32 %s458_s16, 4  ;;  %s3841_s15 = sshll.u32 %s4911_s29, 8  ;;  %s6071_s23 = int_to_ptr.vmem [resolvable:$true] %s3639_s23 }
 0x5ef   : > { %s6078_s29 = scalar_lea.hbm %s6135_s13, %s3841_s15  ;;  %s4738_s18 = scalar_lea.vmem %s6071_s23, 256 }
 0x5f0   : > { %p4739_p6 = scmp.ne.s32.totalorder %s6071_s23, %s4738_s18  ;;  %p4745_p8 = scmp.lt.s32.totalorder %s6071_s23, %s4743_s19 }
 0x5f1   : > { %p4746_p10 = scmp.lt.s32.totalorder %s4744_s14, %s4738_s18 }
 0x5f2   : > { %3613 = vrot.lane.b32.xlu1 %v3591_v49, %s6157_s25  ;;  %3601 = vrot.lane.b32.xlu0 %v3575_v52, %s6157_s25  ;;  %p4740_p12 = pnand %p4739_p6, %p6159_p11 }
 0x5f3   : > { %p4747_p0 = por %p4746_p10, %p4745_p8 }
 0x5f4   : > { %p4741_p13 = pneg %p4740_p12 }
 0x5f6   : > { %p4748_p2 = pnand %p4747_p0, %p4741_p13 }
 0x65c   : > { %v3606_v53 = vpop.permute.xlu1 %3605  ;;  %v3594_v9 = vpop.permute.xlu0 %3593 }
 0x65d   : > { %v3619_v36 = vsel %vm1862_vm0, %v3579_v58, %v3606_v53  ;;  %v3616_v4 = vsel %vm1862_vm0, %v3563_v33, %v3594_v9 }
 0x660   : > { %v3610_v3 = vpop.permute.xlu1 %3609  ;;  %v3598_v56 = vpop.permute.xlu0 %3597 }
 0x661   : > { %v3620_v34 = vsel %vm1928_vm5, %v3619_v36, %v3610_v3  ;;  %v3617_v35 = vsel %vm1928_vm5, %v3616_v4, %v3598_v56 }
 0x664   : > { %v3614_v62 = vpop.permute.xlu1 %3613  ;;  %v3602_v5 = vpop.permute.xlu0 %3601 }
 0x665   : > { %v3621_v12 = vsel %vm1994_vm7, %v3620_v34, %v3614_v62  ;;  %v3618_v51 = vsel %vm1994_vm7, %v3617_v35, %v3602_v5 }
 0x666   : > { %3623 = vst [vmem:[%s458_s16 + $0x8] sm:$0xff] %v3621_v12  ;;  %3622 = vst [vmem:[%s458_s16] sm:$0xff] %v3618_v51 }
 0x667   : > { %4751 = shalt.err (!%p4748_p2)
}
 0x668   : > { %s4752_s30 = scalar_lea.hbm %s6078_s29, 256  ;;  %s4756_s15 = scalar_lea.hbm %s6135_s13, 512 }
 0x669   : > { %p4753_p4 = scmp.ne.s32.totalorder %s6078_s29, %s4752_s30  ;;  %p4757_p9 = scmp.lt.u32.totalorder %s6078_s29, %s6135_s13 }
 0x66a   : > { %p4758_p1 = scmp.lt.u32.totalorder %s4756_s15, %s4752_s30  ;;  %p4760_p6 = scmp.lt.u32.totalorder %s4752_s30, %s6078_s29 }
 0x66b   : > { %p4754_p5 = pnand %p4753_p4, %p6159_p11 }
 0x66c   : > { %p4759_p3 = por %p4758_p1, %p4757_p9 }
 0x66d   : > { %p4755_p7 = pneg %p4754_p5 }
 0x66e   : > { %p4761_p12 = por %p4760_p6, %p4759_p3 }
 0x670   : > { %p4762_p13 = pnand %p4761_p12, %p4755_p7 }
 0x672   : > { %4765 = shalt.err (!%p4762_p13)
}
 0x673   : > { %3936 = dma.vmem_to_hbm [thread:$0]  (%p6159_p11), %s6071_s23, 256, %s6078_s29, %s3625_s22  }
 0x674 PF: > { %s6160_s18 = sld [smem:[#allocation11_spill]]  ;;  %p6161_p8 = scmp.ne.s32.totalorder %s6154_s21, 0 }
 0x675   : > { %p6162_p10 = scmp.ge.s32.totalorder %s4804_s28, 2 }
 0x677   : > { %p3943_p0 = pnand %p6162_p10, %p6161_p8 }
 0x67a   : > { %s3651_s27 = sand.u32 1, %s6160_s18  }
 0x67b   : > { %s3652_s19 = scalar_lea.sflag [#allocation7], %s3651_s27 }
 0x67c   : > { %4787 = dma.done.wait (!%p3943_p0), %s3652_s19, 256  }
 0x67d   : > { %4789 = vsyncadd (!%p3943_p0), %s3652_s19, 4294967040  ;;  %s6163_s28 = sld [smem:[#allocation13_spill]]  ;;  %s6164_s14 = sld [smem:[#allocation12_spill]] }
 0x67e   : > { %s6165_s27 = sld [smem:[#allocation14_spill]]  ;;  %s6166_s25 = smov %s4796_s26 }
 0x683   : > { %p26_p2 = scmp.ge.s32.totalorder %s6163_s28, 4   ;;  %s6167_s26 = smov %s6164_s14 }
 0x685   :  { %28 = sbr.rel (!%p26_p2) target bundleno = 5 (0x5), region = 206 }
 0x68c   :  { %3657 = vsyncpa [#allocation6], 1 }
 0x68d   :  { %3659 = vsyncpa [#allocation6 + $0x1], 1 }
 0x68e   :  { %3660 = vsyncpa [#allocation7], 1 }
 0x68f   :  { %3662 = vsyncpa [#allocation7 + $0x1], 1 }

</bundles_post_ra>
